<compile_context>
chip_gen: v7x
topology: tpu7x:2x2x1
jax: 0.10.0
libtpu: 0.0.40
codegen_flags: <defaults>
</compile_context>

<pallas_src>
import jax
import jax.numpy as jnp
from jax.experimental import pallas as pl
from jax.experimental.pallas import tpu as pltpu

# ---- hyper-parameters (small, consistent with the reference module) ----------
VOCAB_SIZE = 65
N_EMBED = 128
N_HEAD = 4
HEAD_SIZE = N_EMBED // N_HEAD      # 32
HIDDEN = 4 * N_EMBED               # 512
N_LAYER = 2
BLOCK_SIZE = 64
DROPOUT = 0.1                      # identity at inference
LN_EPS = 1e-5                      # PyTorch nn.LayerNorm default


# ------------------------------------------------------------------------------
# Shared math (used verbatim by the Pallas kernel bodies AND the pure-JAX
# reference, so both paths follow the identical precision policy).
# ------------------------------------------------------------------------------
def _layer_norm(v, g, b):
    mu = jnp.mean(v, axis=-1, keepdims=True)
    var = jnp.mean(jnp.square(v - mu), axis=-1, keepdims=True)
    return (v - mu) * jax.lax.rsqrt(var + LN_EPS) * g + b


def _block_math(x_bf, g1, be1, wq, wk, wv, wp, bp, g2, be2, w1, b1, w2, b2):
    """One transformer block applied to a single (T, C) sequence."""
    T, C = x_bf.shape
    nh, _, hs = wq.shape

    xf = x_bf.astype(jnp.float32)

    # ---- LN1 + causal multi-head self-attention ------------------------------
    xn = _layer_norm(xf, g1, be1)
    xnb = xn.astype(jnp.bfloat16)

    row = jax.lax.broadcasted_iota(jnp.int32, (T, T), 0)
    col = jax.lax.broadcasted_iota(jnp.int32, (T, T), 1)
    causal = row >= col
    scale = float(hs) ** -0.5

    sa = jnp.zeros((T, C), jnp.float32)
    for h in range(nh):                                   # static unroll over heads
        q = jnp.dot(xnb, wq[h], preferred_element_type=jnp.float32)   # (T, hs)
        k = jnp.dot(xnb, wk[h], preferred_element_type=jnp.float32)
        v = jnp.dot(xnb, wv[h], preferred_element_type=jnp.float32)
        # q @ k^T without materializing a transpose (contract last dims).
        wei = jax.lax.dot_general(
            q.astype(jnp.bfloat16), k.astype(jnp.bfloat16),
            (((1,), (1,)), ((), ())),
            preferred_element_type=jnp.float32) * scale               # (T, T)
        wei = jnp.where(causal, wei, -1e30)
        wei = wei - jnp.max(wei, axis=-1, keepdims=True)
        p = jnp.exp(wei)
        p = p / jnp.sum(p, axis=-1, keepdims=True)
        oh = jnp.dot(p.astype(jnp.bfloat16), v.astype(jnp.bfloat16),
                     preferred_element_type=jnp.float32)              # (T, hs)
        # concat-over-heads + output projection folded into per-head (hs, C)
        # matmuls accumulated in f32.
        sa = sa + jnp.dot(oh.astype(jnp.bfloat16), wp[h],
                          preferred_element_type=jnp.float32)         # (T, C)
    sa = sa + bp                         # proj bias; dropout = identity (eval)

    x1 = xf + sa                         # residual 1 (f32)

    # ---- LN2 + FFN (Linear -> ReLU -> Linear), fused --------------------------
    xn2 = _layer_norm(x1, g2, be2)
    hdn = jnp.dot(xn2.astype(jnp.bfloat16), w1,
                  preferred_element_type=jnp.float32) + b1
    hdn = jnp.maximum(hdn, 0.0)
    ff = jnp.dot(hdn.astype(jnp.bfloat16), w2,
                 preferred_element_type=jnp.float32) + b2
    return x1 + ff                       # residual 2; dropout = identity (eval)


def _lm_head_math(x_bf, gf, bf, wlm, blm):
    xn = _layer_norm(x_bf.astype(jnp.float32), gf, bf)
    return jnp.dot(xn.astype(jnp.bfloat16), wlm,
                   preferred_element_type=jnp.float32) + blm


# ------------------------------------------------------------------------------
# Pallas kernels + wrappers
# ------------------------------------------------------------------------------
def _block_kernel(x_ref, g1_ref, be1_ref, wq_ref, wk_ref, wv_ref, wp_ref,
                  bp_ref, g2_ref, be2_ref, w1_ref, b1_ref, w2_ref, b2_ref,
                  o_ref):
    out = _block_math(
        x_ref[0],
        g1_ref[...], be1_ref[...],
        wq_ref[...], wk_ref[...], wv_ref[...], wp_ref[...],
        bp_ref[...], g2_ref[...], be2_ref[...],
        w1_ref[...], b1_ref[...], w2_ref[...], b2_ref[...])
    o_ref[0] = out.astype(o_ref.dtype)


def transformer_block(x, blk):
    """x: (B, T, C) bf16 -> (B, T, C) bf16.  One fused block per pallas_call."""
    B, T, C = x.shape
    nh, _, hs = blk["wq"].shape
    H = blk["w1"].shape[1]

    rep2 = lambda shape: pl.BlockSpec(shape, lambda b: (0, 0))     # resident
    rep3 = lambda shape: pl.BlockSpec(shape, lambda b: (0, 0, 0))  # resident

    flops = B * (6 * T * C * C        # q, k, v projections
                 + 4 * T * T * C      # attention logits + attn @ v
                 + 2 * T * C * C      # output projection
                 + 4 * T * C * H)     # FFN
    weight_bytes = sum(int(v.size) * v.dtype.itemsize
                       for v in jax.tree_util.tree_leaves(blk))
    cost = pl.CostEstimate(flops=flops,
                           transcendentals=B * nh * T * T,
                           bytes_accessed=2 * B * T * C * 2 + weight_bytes)

    return pl.pallas_call(
        _block_kernel,
        out_shape=jax.ShapeDtypeStruct((B, T, C), jnp.bfloat16),
        grid=(B,),
        in_specs=[
            pl.BlockSpec((1, T, C), lambda b: (b, 0, 0)),          # one sequence/step
            rep2((1, C)), rep2((1, C)),                            # ln1 gamma/beta
            rep3((nh, C, hs)), rep3((nh, C, hs)), rep3((nh, C, hs)),  # wq, wk, wv
            rep3((nh, hs, C)),                                     # w_proj (split per head)
            rep2((1, C)),                                          # proj bias
            rep2((1, C)), rep2((1, C)),                            # ln2 gamma/beta
            rep2((C, H)), rep2((1, H)),                            # ffn w1, b1
            rep2((H, C)), rep2((1, C)),                            # ffn w2, b2
        ],
        out_specs=pl.BlockSpec((1, T, C), lambda b: (b, 0, 0)),
        compiler_params=pltpu.CompilerParams(
            dimension_semantics=("parallel",),       # shard batch across TCs (v7x)
            vmem_limit_bytes=32 * 1024 * 1024),
        cost_estimate=cost,
    )(x, blk["g1"], blk["be1"], blk["wq"], blk["wk"], blk["wv"], blk["wp"],
      blk["bp"], blk["g2"], blk["be2"], blk["w1"], blk["b1"], blk["w2"],
      blk["b2"])


def _lm_head_kernel(x_ref, gf_ref, bf_ref, wlm_ref, blm_ref, o_ref):
    o_ref[...] = _lm_head_math(x_ref[...], gf_ref[...], bf_ref[...],
                               wlm_ref[...], blm_ref[...]).astype(o_ref.dtype)


def lm_head(x, gf, bf, wlm, blm, tile_m=128):
    """Final LayerNorm + lm_head.  Tiled over flattened tokens, weights resident."""
    B, T, C = x.shape
    V = wlm.shape[1]
    M = B * T
    x2 = x.reshape(M, C)

    tm = min(tile_m, M)
    while tm > 8 and M % tm:
        tm //= 2
    if M % tm:
        tm = M

    out = pl.pallas_call(
        _lm_head_kernel,
        out_shape=jax.ShapeDtypeStruct((M, V), jnp.float32),
        grid=(M // tm,),
        in_specs=[
            pl.BlockSpec((tm, C), lambda i: (i, 0)),   # streaming token tile
            pl.BlockSpec((1, C), lambda i: (0, 0)),    # ln_f gamma
            pl.BlockSpec((1, C), lambda i: (0, 0)),    # ln_f beta
            pl.BlockSpec((C, V), lambda i: (0, 0)),    # lm_head weight (resident)
            pl.BlockSpec((1, V), lambda i: (0, 0)),    # lm_head bias
        ],
        out_specs=pl.BlockSpec((tm, V), lambda i: (i, 0)),
        compiler_params=pltpu.CompilerParams(
            dimension_semantics=("parallel",),
            vmem_limit_bytes=32 * 1024 * 1024),
    )(x2, gf, bf, wlm, blm)
    return out.reshape(B, T, V)


def _embed(idx, params):
    # Embedding gather done in plain JAX (data-dependent gather) — see notes.
    tok = jnp.take(params["tok_emb"], idx, axis=0)       # (B, T, C) f32
    pos = params["pos_emb"][: idx.shape[1]]              # (T, C) f32
    return (tok + pos[None]).astype(jnp.bfloat16)


@jax.jit
def gpt_forward(idx, params):
    """idx: (B, T) int32 -> logits (B, T, vocab).  (targets=None path.)"""
    x = _embed(idx, params)
    for blk in params["blocks"]:
        x = transformer_block(x, blk)
    return lm_head(x, params["ln_f_g"], params["ln_f_b"],
                   params["wlm"], params["blm"])


@jax.jit
def gpt_forward_ref(idx, params):
    """Pure-JAX reference with the identical precision policy (for checking)."""
    x = _embed(idx, params)
    for blk in params["blocks"]:
        x = jax.vmap(lambda xs: _block_math(
            xs, blk["g1"], blk["be1"], blk["wq"], blk["wk"], blk["wv"],
            blk["wp"], blk["bp"], blk["g2"], blk["be2"], blk["w1"],
            blk["b1"], blk["w2"], blk["b2"]))(x).astype(jnp.bfloat16)
    B, T, C = x.shape
    logits = _lm_head_math(x.reshape(B * T, C), params["ln_f_g"],
                           params["ln_f_b"], params["wlm"], params["blm"])
    return logits.reshape(B, T, -1)


# ------------------------------------------------------------------------------
# Deterministic parameter init (normal(0, 0.02) like the PyTorch module; LN and
# biases get small random values so the bias/affine code paths are exercised).
# ------------------------------------------------------------------------------
def init_params(key):
    keys = iter(jax.random.split(key, 64))

    def nrm(shape, dtype=jnp.float32, std=0.02):
        return (std * jax.random.normal(next(keys), shape, jnp.float32)).astype(dtype)

    params = {
        "tok_emb": nrm((VOCAB_SIZE, N_EMBED)),
        "pos_emb": nrm((BLOCK_SIZE, N_EMBED)),
        "blocks": [],
        "ln_f_g": 1.0 + nrm((1, N_EMBED)),
        "ln_f_b": nrm((1, N_EMBED)),
        "wlm": nrm((N_EMBED, VOCAB_SIZE), jnp.bfloat16),
        "blm": nrm((1, VOCAB_SIZE)),
    }
    for _ in range(N_LAYER):
        params["blocks"].append(dict(
            g1=1.0 + nrm((1, N_EMBED)), be1=nrm((1, N_EMBED)),
            wq=nrm((N_HEAD, N_EMBED, HEAD_SIZE), jnp.bfloat16),
            wk=nrm((N_HEAD, N_EMBED, HEAD_SIZE), jnp.bfloat16),
            wv=nrm((N_HEAD, N_EMBED, HEAD_SIZE), jnp.bfloat16),
            wp=nrm((N_HEAD, HEAD_SIZE, N_EMBED), jnp.bfloat16),
            bp=nrm((1, N_EMBED)),
            g2=1.0 + nrm((1, N_EMBED)), be2=nrm((1, N_EMBED)),
            w1=nrm((N_EMBED, HIDDEN), jnp.bfloat16), b1=nrm((1, HIDDEN)),
            w2=nrm((HIDDEN, N_EMBED), jnp.bfloat16), b2=nrm((1, N_EMBED)),
        ))
    return params


if __name__ == "__main__":
    root = jax.random.PRNGKey(0)
    kp, ki = jax.random.split(root)
    params = init_params(kp)

    B, T = 4, BLOCK_SIZE
    idx = jax.random.randint(ki, (B, T), 0, VOCAB_SIZE, dtype=jnp.int32)

    logits = gpt_forward(idx, params)
    jax.block_until_ready(logits)
    assert logits.shape == (B, T, VOCAB_SIZE)
    assert logits.dtype == jnp.float32

    ref = gpt_forward_ref(idx, params)
    err = float(jnp.max(jnp.abs(logits - ref)))
    assert jnp.allclose(logits, ref, atol=5e-3, rtol=5e-3), f"max abs err={err}"

    print("KERNEL_OK")
</pallas_src>

<mosaic_0001>
module attributes {stable_mosaic.version = 11 : i64} {
  func.func @_lm_head_kernel(%arg0: i32, %arg1: memref<128x128xbf16, #tpu.memory_space<vmem>>, %arg2: memref<1x128xf32, #tpu.memory_space<vmem>>, %arg3: memref<1x128xf32, #tpu.memory_space<vmem>>, %arg4: memref<128x65xbf16, #tpu.memory_space<vmem>>, %arg5: memref<1x65xf32, #tpu.memory_space<vmem>>, %arg6: memref<128x65xf32, #tpu.memory_space<vmem>>) attributes {dimension_semantics = [#tpu.dimension_semantics<parallel>], iteration_bounds = array<i64: 2>, scalar_prefetch = 0 : i64, scratch_operands = 0 : i64, tpu.core_type = #tpu.core_type<tc>, window_params = [{transform_indices = @transform_0, window_bounds = array<i64: 128, 128>}, {pipeline_mode = #tpu.pipeline_mode<synchronous>, transform_indices = @transform_1, window_bounds = array<i64: 1, 128>}, {pipeline_mode = #tpu.pipeline_mode<synchronous>, transform_indices = @transform_2, window_bounds = array<i64: 1, 128>}, {pipeline_mode = #tpu.pipeline_mode<synchronous>, transform_indices = @transform_3, window_bounds = array<i64: 128, 65>}, {pipeline_mode = #tpu.pipeline_mode<synchronous>, transform_indices = @transform_4, window_bounds = array<i64: 1, 65>}, {transform_indices = @transform_5, window_bounds = array<i64: 128, 65>}]} {
    %c0 = arith.constant 0 : index
    %c0_0 = arith.constant 0 : index
    %0 = vector.load %arg1[%c0, %c0_0] : memref<128x128xbf16, #tpu.memory_space<vmem>>, vector<128x128xbf16>
    %c0_1 = arith.constant 0 : index
    %c0_2 = arith.constant 0 : index
    %1 = vector.load %arg2[%c0_1, %c0_2] : memref<1x128xf32, #tpu.memory_space<vmem>>, vector<1x128xf32>
    %c0_3 = arith.constant 0 : index
    %c0_4 = arith.constant 0 : index
    %2 = vector.load %arg3[%c0_3, %c0_4] : memref<1x128xf32, #tpu.memory_space<vmem>>, vector<1x128xf32>
    %c0_5 = arith.constant 0 : index
    %c0_6 = arith.constant 0 : index
    %3 = vector.load %arg4[%c0_5, %c0_6] : memref<128x65xbf16, #tpu.memory_space<vmem>>, vector<128x65xbf16>
    %c0_7 = arith.constant 0 : index
    %c0_8 = arith.constant 0 : index
    %4 = vector.load %arg5[%c0_7, %c0_8] : memref<1x65xf32, #tpu.memory_space<vmem>>, vector<1x65xf32>
    %5 = arith.extf %0 : vector<128x128xbf16> to vector<128x128xf32>
    %cst = arith.constant dense<0.000000e+00> : vector<128xf32>
    %6 = vector.multi_reduction <add>, %5, %cst [1] : vector<128x128xf32> to vector<128xf32>
    %7 = vector.shape_cast %6 : vector<128xf32> to vector<128x1xf32>
    %cst_9 = arith.constant 1.280000e+02 : f32
    %8 = vector.broadcast %cst_9 : f32 to vector<128x1xf32>
    %9 = arith.divf %7, %8 : vector<128x1xf32>
    %10 = vector.broadcast %9 : vector<128x1xf32> to vector<128x128xf32>
    %11 = arith.subf %5, %10 : vector<128x128xf32>
    %12 = arith.mulf %11, %11 : vector<128x128xf32>
    %cst_10 = arith.constant dense<0.000000e+00> : vector<128xf32>
    %13 = vector.multi_reduction <add>, %12, %cst_10 [1] : vector<128x128xf32> to vector<128xf32>
    %14 = vector.shape_cast %13 : vector<128xf32> to vector<128x1xf32>
    %cst_11 = arith.constant 1.280000e+02 : f32
    %15 = vector.broadcast %cst_11 : f32 to vector<128x1xf32>
    %16 = arith.divf %14, %15 : vector<128x1xf32>
    %17 = vector.broadcast %9 : vector<128x1xf32> to vector<128x128xf32>
    %18 = arith.subf %5, %17 : vector<128x128xf32>
    %cst_12 = arith.constant 9.99999974E-6 : f32
    %19 = vector.broadcast %cst_12 : f32 to vector<128x1xf32>
    %20 = arith.addf %16, %19 : vector<128x1xf32>
    %21 = math.rsqrt %20 : vector<128x1xf32>
    %22 = vector.broadcast %21 : vector<128x1xf32> to vector<128x128xf32>
    %23 = arith.mulf %18, %22 : vector<128x128xf32>
    %24 = vector.broadcast %1 : vector<1x128xf32> to vector<128x128xf32>
    %25 = arith.mulf %23, %24 : vector<128x128xf32>
    %26 = vector.broadcast %2 : vector<1x128xf32> to vector<128x128xf32>
    %27 = arith.addf %25, %26 : vector<128x128xf32>
    %28 = arith.truncf %27 : vector<128x128xf32> to vector<128x128xbf16>
    %cst_13 = arith.constant dense<0.000000e+00> : vector<128x65xf32>
    %29 = tpu.matmul %28, %3, %cst_13 {dimension_numbers = #tpu.dot_dimension_numbers<[1], [0], [0], [1], [0, 0, 1, 1], [], []>} : vector<128x128xbf16>, vector<128x65xbf16>, vector<128x65xf32> -> vector<128x65xf32>
    %30 = vector.broadcast %4 : vector<1x65xf32> to vector<128x65xf32>
    %31 = arith.addf %29, %30 : vector<128x65xf32>
    %c0_14 = arith.constant 0 : index
    %c0_15 = arith.constant 0 : index
    %32 = vector.load %arg6[%c0_14, %c0_15] : memref<128x65xf32, #tpu.memory_space<vmem>>, vector<128x65xf32>
    tpu.vector_store %arg6[%c0_14, %c0_15], %31 {strides = array<i32>} : memref<128x65xf32, #tpu.memory_space<vmem>>, vector<128x65xf32>,
    return
  }
  func.func @transform_0(%arg0: i32) -> (i32, i32) {
    %c0_i32 = arith.constant 0 : i32
    %c0_i32_0 = arith.constant 0 : i32
    return %arg0, %c0_i32 : i32, i32
  }
  func.func @transform_1(%arg0: i32) -> (i32, i32) {
    %c0_i32 = arith.constant 0 : i32
    %c0_i32_0 = arith.constant 0 : i32
    %c0_i32_1 = arith.constant 0 : i32
    return %c0_i32, %c0_i32_0 : i32, i32
  }
  func.func @transform_2(%arg0: i32) -> (i32, i32) {
    %c0_i32 = arith.constant 0 : i32
    %c0_i32_0 = arith.constant 0 : i32
    %c0_i32_1 = arith.constant 0 : i32
    return %c0_i32, %c0_i32_0 : i32, i32
  }
  func.func @transform_3(%arg0: i32) -> (i32, i32) {
    %c0_i32 = arith.constant 0 : i32
    %c0_i32_0 = arith.constant 0 : i32
    %c0_i32_1 = arith.constant 0 : i32
    return %c0_i32, %c0_i32_0 : i32, i32
  }
  func.func @transform_4(%arg0: i32) -> (i32, i32) {
    %c0_i32 = arith.constant 0 : i32
    %c0_i32_0 = arith.constant 0 : i32
    %c0_i32_1 = arith.constant 0 : i32
    return %c0_i32, %c0_i32_0 : i32, i32
  }
  func.func @transform_5(%arg0: i32) -> (i32, i32) {
    %c0_i32 = arith.constant 0 : i32
    %c0_i32_0 = arith.constant 0 : i32
    return %arg0, %c0_i32 : i32, i32
  }
}

module attributes {stable_mosaic.version = 11 : i64} {
  func.func @_block_kernel(%arg0: i32, %arg1: memref<1x64x128xbf16, #tpu.memory_space<vmem>>, %arg2: memref<1x128xf32, #tpu.memory_space<vmem>>, %arg3: memref<1x128xf32, #tpu.memory_space<vmem>>, %arg4: memref<4x128x32xbf16, #tpu.memory_space<vmem>>, %arg5: memref<4x128x32xbf16, #tpu.memory_space<vmem>>, %arg6: memref<4x128x32xbf16, #tpu.memory_space<vmem>>, %arg7: memref<4x32x128xbf16, #tpu.memory_space<vmem>>, %arg8: memref<1x128xf32, #tpu.memory_space<vmem>>, %arg9: memref<1x128xf32, #tpu.memory_space<vmem>>, %arg10: memref<1x128xf32, #tpu.memory_space<vmem>>, %arg11: memref<128x512xbf16, #tpu.memory_space<vmem>>, %arg12: memref<1x512xf32, #tpu.memory_space<vmem>>, %arg13: memref<512x128xbf16, #tpu.memory_space<vmem>>, %arg14: memref<1x128xf32, #tpu.memory_space<vmem>>, %arg15: memref<1x64x128xbf16, #tpu.memory_space<vmem>>) attributes {dimension_semantics = [#tpu.dimension_semantics<parallel>], iteration_bounds = array<i64: 4>, scalar_prefetch = 0 : i64, scratch_operands = 0 : i64, tpu.core_type = #tpu.core_type<tc>, window_params = [{transform_indices = @transform_0, window_bounds = array<i64: 1, 64, 128>}, {pipeline_mode = #tpu.pipeline_mode<synchronous>, transform_indices = @transform_1, window_bounds = array<i64: 1, 128>}, {pipeline_mode = #tpu.pipeline_mode<synchronous>, transform_indices = @transform_2, window_bounds = array<i64: 1, 128>}, {pipeline_mode = #tpu.pipeline_mode<synchronous>, transform_indices = @transform_3, window_bounds = array<i64: 4, 128, 32>}, {pipeline_mode = #tpu.pipeline_mode<synchronous>, transform_indices = @transform_4, window_bounds = array<i64: 4, 128, 32>}, {pipeline_mode = #tpu.pipeline_mode<synchronous>, transform_indices = @transform_5, window_bounds = array<i64: 4, 128, 32>}, {pipeline_mode = #tpu.pipeline_mode<synchronous>, transform_indices = @transform_6, window_bounds = array<i64: 4, 32, 128>}, {pipeline_mode = #tpu.pipeline_mode<synchronous>, transform_indices = @transform_7, window_bounds = array<i64: 1, 128>}, {pipeline_mode = #tpu.pipeline_mode<synchronous>, transform_indices = @transform_8, window_bounds = array<i64: 1, 128>}, {pipeline_mode = #tpu.pipeline_mode<synchronous>, transform_indices = @transform_9, window_bounds = array<i64: 1, 128>}, {pipeline_mode = #tpu.pipeline_mode<synchronous>, transform_indices = @transform_10, window_bounds = array<i64: 128, 512>}, {pipeline_mode = #tpu.pipeline_mode<synchronous>, transform_indices = @transform_11, window_bounds = array<i64: 1, 512>}, {pipeline_mode = #tpu.pipeline_mode<synchronous>, transform_indices = @transform_12, window_bounds = array<i64: 512, 128>}, {pipeline_mode = #tpu.pipeline_mode<synchronous>, transform_indices = @transform_13, window_bounds = array<i64: 1, 128>}, {transform_indices = @transform_14, window_bounds = array<i64: 1, 64, 128>}]} {
    %c0 = arith.constant 0 : index
    %c0_0 = arith.constant 0 : index
    %c0_1 = arith.constant 0 : index
    %0 = vector.load %arg1[%c0, %c0_0, %c0_1] : memref<1x64x128xbf16, #tpu.memory_space<vmem>>, vector<1x64x128xbf16>
    %1 = vector.shape_cast %0 : vector<1x64x128xbf16> to vector<64x128xbf16>
    %c0_2 = arith.constant 0 : index
    %c0_3 = arith.constant 0 : index
    %2 = vector.load %arg2[%c0_2, %c0_3] : memref<1x128xf32, #tpu.memory_space<vmem>>, vector<1x128xf32>
    %c0_4 = arith.constant 0 : index
    %c0_5 = arith.constant 0 : index
    %3 = vector.load %arg3[%c0_4, %c0_5] : memref<1x128xf32, #tpu.memory_space<vmem>>, vector<1x128xf32>
    %c0_6 = arith.constant 0 : index
    %c0_7 = arith.constant 0 : index
    %c0_8 = arith.constant 0 : index
    %4 = vector.load %arg4[%c0_6, %c0_7, %c0_8] : memref<4x128x32xbf16, #tpu.memory_space<vmem>>, vector<4x128x32xbf16>
    %c0_9 = arith.constant 0 : index
    %c0_10 = arith.constant 0 : index
    %c0_11 = arith.constant 0 : index
    %5 = vector.load %arg5[%c0_9, %c0_10, %c0_11] : memref<4x128x32xbf16, #tpu.memory_space<vmem>>, vector<4x128x32xbf16>
    %c0_12 = arith.constant 0 : index
    %c0_13 = arith.constant 0 : index
    %c0_14 = arith.constant 0 : index
    %6 = vector.load %arg6[%c0_12, %c0_13, %c0_14] : memref<4x128x32xbf16, #tpu.memory_space<vmem>>, vector<4x128x32xbf16>
    %c0_15 = arith.constant 0 : index
    %c0_16 = arith.constant 0 : index
    %c0_17 = arith.constant 0 : index
    %7 = vector.load %arg7[%c0_15, %c0_16, %c0_17] : memref<4x32x128xbf16, #tpu.memory_space<vmem>>, vector<4x32x128xbf16>
    %c0_18 = arith.constant 0 : index
    %c0_19 = arith.constant 0 : index
    %8 = vector.load %arg8[%c0_18, %c0_19] : memref<1x128xf32, #tpu.memory_space<vmem>>, vector<1x128xf32>
    %c0_20 = arith.constant 0 : index
    %c0_21 = arith.constant 0 : index
    %9 = vector.load %arg9[%c0_20, %c0_21] : memref<1x128xf32, #tpu.memory_space<vmem>>, vector<1x128xf32>
    %c0_22 = arith.constant 0 : index
    %c0_23 = arith.constant 0 : index
    %10 = vector.load %arg10[%c0_22, %c0_23] : memref<1x128xf32, #tpu.memory_space<vmem>>, vector<1x128xf32>
    %c0_24 = arith.constant 0 : index
    %c0_25 = arith.constant 0 : index
    %11 = vector.load %arg11[%c0_24, %c0_25] : memref<128x512xbf16, #tpu.memory_space<vmem>>, vector<128x512xbf16>
    %c0_26 = arith.constant 0 : index
    %c0_27 = arith.constant 0 : index
    %12 = vector.load %arg12[%c0_26, %c0_27] : memref<1x512xf32, #tpu.memory_space<vmem>>, vector<1x512xf32>
    %c0_28 = arith.constant 0 : index
    %c0_29 = arith.constant 0 : index
    %13 = vector.load %arg13[%c0_28, %c0_29] : memref<512x128xbf16, #tpu.memory_space<vmem>>, vector<512x128xbf16>
    %c0_30 = arith.constant 0 : index
    %c0_31 = arith.constant 0 : index
    %14 = vector.load %arg14[%c0_30, %c0_31] : memref<1x128xf32, #tpu.memory_space<vmem>>, vector<1x128xf32>
    %15 = arith.extf %1 : vector<64x128xbf16> to vector<64x128xf32>
    %cst = arith.constant dense<0.000000e+00> : vector<64xf32>
    %16 = vector.multi_reduction <add>, %15, %cst [1] : vector<64x128xf32> to vector<64xf32>
    %17 = vector.shape_cast %16 : vector<64xf32> to vector<64x1xf32>
    %cst_32 = arith.constant 1.280000e+02 : f32
    %18 = vector.broadcast %cst_32 : f32 to vector<64x1xf32>
    %19 = arith.divf %17, %18 : vector<64x1xf32>
    %20 = vector.broadcast %19 : vector<64x1xf32> to vector<64x128xf32>
    %21 = arith.subf %15, %20 : vector<64x128xf32>
    %22 = arith.mulf %21, %21 : vector<64x128xf32>
    %cst_33 = arith.constant dense<0.000000e+00> : vector<64xf32>
    %23 = vector.multi_reduction <add>, %22, %cst_33 [1] : vector<64x128xf32> to vector<64xf32>
    %24 = vector.shape_cast %23 : vector<64xf32> to vector<64x1xf32>
    %cst_34 = arith.constant 1.280000e+02 : f32
    %25 = vector.broadcast %cst_34 : f32 to vector<64x1xf32>
    %26 = arith.divf %24, %25 : vector<64x1xf32>
    %27 = vector.broadcast %19 : vector<64x1xf32> to vector<64x128xf32>
    %28 = arith.subf %15, %27 : vector<64x128xf32>
    %cst_35 = arith.constant 9.99999974E-6 : f32
    %29 = vector.broadcast %cst_35 : f32 to vector<64x1xf32>
    %30 = arith.addf %26, %29 : vector<64x1xf32>
    %31 = math.rsqrt %30 : vector<64x1xf32>
    %32 = vector.broadcast %31 : vector<64x1xf32> to vector<64x128xf32>
    %33 = arith.mulf %28, %32 : vector<64x128xf32>
    %34 = vector.broadcast %2 : vector<1x128xf32> to vector<64x128xf32>
    %35 = arith.mulf %33, %34 : vector<64x128xf32>
    %36 = vector.broadcast %3 : vector<1x128xf32> to vector<64x128xf32>
    %37 = arith.addf %35, %36 : vector<64x128xf32>
    %38 = arith.truncf %37 : vector<64x128xf32> to vector<64x128xbf16>
    %39 = tpu.iota {dimensions = array<i32: 0>} : vector<64x64xi32>
    %40 = tpu.iota {dimensions = array<i32: 1>} : vector<64x64xi32>
    %41 = arith.cmpi sge, %39, %40 : vector<64x64xi32>
    %cst_36 = arith.constant 0.000000e+00 : f32
    %42 = vector.broadcast %cst_36 : f32 to vector<64x128xf32>
    %43 = vector.extract_strided_slice %4 {offsets = [0, 0, 0], sizes = [1, 128, 32], strides = [1, 1, 1]} : vector<4x128x32xbf16> to vector<1x128x32xbf16>
    %44 = vector.shape_cast %43 : vector<1x128x32xbf16> to vector<128x32xbf16>
    %cst_37 = arith.constant dense<0.000000e+00> : vector<64x32xf32>
    %45 = tpu.matmul %38, %44, %cst_37 {dimension_numbers = #tpu.dot_dimension_numbers<[1], [0], [0], [1], [0, 0, 1, 1], [], []>} : vector<64x128xbf16>, vector<128x32xbf16>, vector<64x32xf32> -> vector<64x32xf32>
    %46 = vector.extract_strided_slice %5 {offsets = [0, 0, 0], sizes = [1, 128, 32], strides = [1, 1, 1]} : vector<4x128x32xbf16> to vector<1x128x32xbf16>
    %47 = vector.shape_cast %46 : vector<1x128x32xbf16> to vector<128x32xbf16>
    %cst_38 = arith.constant dense<0.000000e+00> : vector<64x32xf32>
    %48 = tpu.matmul %38, %47, %cst_38 {dimension_numbers = #tpu.dot_dimension_numbers<[1], [0], [0], [1], [0, 0, 1, 1], [], []>} : vector<64x128xbf16>, vector<128x32xbf16>, vector<64x32xf32> -> vector<64x32xf32>
    %49 = vector.extract_strided_slice %6 {offsets = [0, 0, 0], sizes = [1, 128, 32], strides = [1, 1, 1]} : vector<4x128x32xbf16> to vector<1x128x32xbf16>
    %50 = vector.shape_cast %49 : vector<1x128x32xbf16> to vector<128x32xbf16>
    %cst_39 = arith.constant dense<0.000000e+00> : vector<64x32xf32>
    %51 = tpu.matmul %38, %50, %cst_39 {dimension_numbers = #tpu.dot_dimension_numbers<[1], [0], [0], [1], [0, 0, 1, 1], [], []>} : vector<64x128xbf16>, vector<128x32xbf16>, vector<64x32xf32> -> vector<64x32xf32>
    %52 = arith.truncf %45 : vector<64x32xf32> to vector<64x32xbf16>
    %53 = arith.truncf %48 : vector<64x32xf32> to vector<64x32xbf16>
    %cst_40 = arith.constant dense<0.000000e+00> : vector<64x64xf32>
    %54 = tpu.matmul %52, %53, %cst_40 {dimension_numbers = #tpu.dot_dimension_numbers<[1], [1], [0], [0], [0, 0, 1, 0], [], []>} : vector<64x32xbf16>, vector<64x32xbf16>, vector<64x64xf32> -> vector<64x64xf32>
    %cst_41 = arith.constant 0.176776692 : f32
    %55 = vector.broadcast %cst_41 : f32 to vector<64x64xf32>
    %56 = arith.mulf %54, %55 : vector<64x64xf32>
    %cst_42 = arith.constant -1.000000e+30 : f32
    %57 = vector.broadcast %cst_42 : f32 to vector<64x64xf32>
    %58 = arith.select %41, %56, %57 : vector<64x64xi1>, vector<64x64xf32>
    %cst_43 = arith.constant dense<0xFF800000> : vector<64xf32>
    %59 = vector.multi_reduction <maximumf>, %58, %cst_43 [1] : vector<64x64xf32> to vector<64xf32>
    %60 = vector.shape_cast %59 : vector<64xf32> to vector<64x1xf32>
    %61 = vector.broadcast %60 : vector<64x1xf32> to vector<64x64xf32>
    %62 = arith.subf %58, %61 : vector<64x64xf32>
    %63 = math.exp %62 : vector<64x64xf32>
    %cst_44 = arith.constant dense<0.000000e+00> : vector<64xf32>
    %64 = vector.multi_reduction <add>, %63, %cst_44 [1] : vector<64x64xf32> to vector<64xf32>
    %65 = vector.shape_cast %64 : vector<64xf32> to vector<64x1xf32>
    %66 = vector.broadcast %65 : vector<64x1xf32> to vector<64x64xf32>
    %67 = arith.divf %63, %66 : vector<64x64xf32>
    %68 = arith.truncf %67 : vector<64x64xf32> to vector<64x64xbf16>
    %69 = arith.truncf %51 : vector<64x32xf32> to vector<64x32xbf16>
    %cst_45 = arith.constant dense<0.000000e+00> : vector<64x32xf32>
    %70 = tpu.matmul %68, %69, %cst_45 {dimension_numbers = #tpu.dot_dimension_numbers<[1], [0], [0], [1], [0, 0, 1, 1], [], []>} : vector<64x64xbf16>, vector<64x32xbf16>, vector<64x32xf32> -> vector<64x32xf32>
    %71 = arith.truncf %70 : vector<64x32xf32> to vector<64x32xbf16>
    %72 = vector.extract_strided_slice %7 {offsets = [0, 0, 0], sizes = [1, 32, 128], strides = [1, 1, 1]} : vector<4x32x128xbf16> to vector<1x32x128xbf16>
    %73 = vector.shape_cast %72 : vector<1x32x128xbf16> to vector<32x128xbf16>
    %cst_46 = arith.constant dense<0.000000e+00> : vector<64x128xf32>
    %74 = tpu.matmul %71, %73, %cst_46 {dimension_numbers = #tpu.dot_dimension_numbers<[1], [0], [0], [1], [0, 0, 1, 1], [], []>} : vector<64x32xbf16>, vector<32x128xbf16>, vector<64x128xf32> -> vector<64x128xf32>
    %75 = arith.addf %42, %74 : vector<64x128xf32>
    %76 = vector.extract_strided_slice %4 {offsets = [1, 0, 0], sizes = [1, 128, 32], strides = [1, 1, 1]} : vector<4x128x32xbf16> to vector<1x128x32xbf16>
    %77 = vector.shape_cast %76 : vector<1x128x32xbf16> to vector<128x32xbf16>
    %cst_47 = arith.constant dense<0.000000e+00> : vector<64x32xf32>
    %78 = tpu.matmul %38, %77, %cst_47 {dimension_numbers = #tpu.dot_dimension_numbers<[1], [0], [0], [1], [0, 0, 1, 1], [], []>} : vector<64x128xbf16>, vector<128x32xbf16>, vector<64x32xf32> -> vector<64x32xf32>
    %79 = vector.extract_strided_slice %5 {offsets = [1, 0, 0], sizes = [1, 128, 32], strides = [1, 1, 1]} : vector<4x128x32xbf16> to vector<1x128x32xbf16>
    %80 = vector.shape_cast %79 : vector<1x128x32xbf16> to vector<128x32xbf16>
    %cst_48 = arith.constant dense<0.000000e+00> : vector<64x32xf32>
    %81 = tpu.matmul %38, %80, %cst_48 {dimension_numbers = #tpu.dot_dimension_numbers<[1], [0], [0], [1], [0, 0, 1, 1], [], []>} : vector<64x128xbf16>, vector<128x32xbf16>, vector<64x32xf32> -> vector<64x32xf32>
    %82 = vector.extract_strided_slice %6 {offsets = [1, 0, 0], sizes = [1, 128, 32], strides = [1, 1, 1]} : vector<4x128x32xbf16> to vector<1x128x32xbf16>
    %83 = vector.shape_cast %82 : vector<1x128x32xbf16> to vector<128x32xbf16>
    %cst_49 = arith.constant dense<0.000000e+00> : vector<64x32xf32>
    %84 = tpu.matmul %38, %83, %cst_49 {dimension_numbers = #tpu.dot_dimension_numbers<[1], [0], [0], [1], [0, 0, 1, 1], [], []>} : vector<64x128xbf16>, vector<128x32xbf16>, vector<64x32xf32> -> vector<64x32xf32>
    %85 = arith.truncf %78 : vector<64x32xf32> to vector<64x32xbf16>
    %86 = arith.truncf %81 : vector<64x32xf32> to vector<64x32xbf16>
    %cst_50 = arith.constant dense<0.000000e+00> : vector<64x64xf32>
    %87 = tpu.matmul %85, %86, %cst_50 {dimension_numbers = #tpu.dot_dimension_numbers<[1], [1], [0], [0], [0, 0, 1, 0], [], []>} : vector<64x32xbf16>, vector<64x32xbf16>, vector<64x64xf32> -> vector<64x64xf32>
    %cst_51 = arith.constant 0.176776692 : f32
    %88 = vector.broadcast %cst_51 : f32 to vector<64x64xf32>
    %89 = arith.mulf %87, %88 : vector<64x64xf32>
    %cst_52 = arith.constant -1.000000e+30 : f32
    %90 = vector.broadcast %cst_52 : f32 to vector<64x64xf32>
    %91 = arith.select %41, %89, %90 : vector<64x64xi1>, vector<64x64xf32>
    %cst_53 = arith.constant dense<0xFF800000> : vector<64xf32>
    %92 = vector.multi_reduction <maximumf>, %91, %cst_53 [1] : vector<64x64xf32> to vector<64xf32>
    %93 = vector.shape_cast %92 : vector<64xf32> to vector<64x1xf32>
    %94 = vector.broadcast %93 : vector<64x1xf32> to vector<64x64xf32>
    %95 = arith.subf %91, %94 : vector<64x64xf32>
    %96 = math.exp %95 : vector<64x64xf32>
    %cst_54 = arith.constant dense<0.000000e+00> : vector<64xf32>
    %97 = vector.multi_reduction <add>, %96, %cst_54 [1] : vector<64x64xf32> to vector<64xf32>
    %98 = vector.shape_cast %97 : vector<64xf32> to vector<64x1xf32>
    %99 = vector.broadcast %98 : vector<64x1xf32> to vector<64x64xf32>
    %100 = arith.divf %96, %99 : vector<64x64xf32>
    %101 = arith.truncf %100 : vector<64x64xf32> to vector<64x64xbf16>
    %102 = arith.truncf %84 : vector<64x32xf32> to vector<64x32xbf16>
    %cst_55 = arith.constant dense<0.000000e+00> : vector<64x32xf32>
    %103 = tpu.matmul %101, %102, %cst_55 {dimension_numbers = #tpu.dot_dimension_numbers<[1], [0], [0], [1], [0, 0, 1, 1], [], []>} : vector<64x64xbf16>, vector<64x32xbf16>, vector<64x32xf32> -> vector<64x32xf32>
    %104 = arith.truncf %103 : vector<64x32xf32> to vector<64x32xbf16>
    %105 = vector.extract_strided_slice %7 {offsets = [1, 0, 0], sizes = [1, 32, 128], strides = [1, 1, 1]} : vector<4x32x128xbf16> to vector<1x32x128xbf16>
    %106 = vector.shape_cast %105 : vector<1x32x128xbf16> to vector<32x128xbf16>
    %cst_56 = arith.constant dense<0.000000e+00> : vector<64x128xf32>
    %107 = tpu.matmul %104, %106, %cst_56 {dimension_numbers = #tpu.dot_dimension_numbers<[1], [0], [0], [1], [0, 0, 1, 1], [], []>} : vector<64x32xbf16>, vector<32x128xbf16>, vector<64x128xf32> -> vector<64x128xf32>
    %108 = arith.addf %75, %107 : vector<64x128xf32>
    %109 = vector.extract_strided_slice %4 {offsets = [2, 0, 0], sizes = [1, 128, 32], strides = [1, 1, 1]} : vector<4x128x32xbf16> to vector<1x128x32xbf16>
    %110 = vector.shape_cast %109 : vector<1x128x32xbf16> to vector<128x32xbf16>
    %cst_57 = arith.constant dense<0.000000e+00> : vector<64x32xf32>
    %111 = tpu.matmul %38, %110, %cst_57 {dimension_numbers = #tpu.dot_dimension_numbers<[1], [0], [0], [1], [0, 0, 1, 1], [], []>} : vector<64x128xbf16>, vector<128x32xbf16>, vector<64x32xf32> -> vector<64x32xf32>
    %112 = vector.extract_strided_slice %5 {offsets = [2, 0, 0], sizes = [1, 128, 32], strides = [1, 1, 1]} : vector<4x128x32xbf16> to vector<1x128x32xbf16>
    %113 = vector.shape_cast %112 : vector<1x128x32xbf16> to vector<128x32xbf16>
    %cst_58 = arith.constant dense<0.000000e+00> : vector<64x32xf32>
    %114 = tpu.matmul %38, %113, %cst_58 {dimension_numbers = #tpu.dot_dimension_numbers<[1], [0], [0], [1], [0, 0, 1, 1], [], []>} : vector<64x128xbf16>, vector<128x32xbf16>, vector<64x32xf32> -> vector<64x32xf32>
    %115 = vector.extract_strided_slice %6 {offsets = [2, 0, 0], sizes = [1, 128, 32], strides = [1, 1, 1]} : vector<4x128x32xbf16> to vector<1x128x32xbf16>
    %116 = vector.shape_cast %115 : vector<1x128x32xbf16> to vector<128x32xbf16>
    %cst_59 = arith.constant dense<0.000000e+00> : vector<64x32xf32>
    %117 = tpu.matmul %38, %116, %cst_59 {dimension_numbers = #tpu.dot_dimension_numbers<[1], [0], [0], [1], [0, 0, 1, 1], [], []>} : vector<64x128xbf16>, vector<128x32xbf16>, vector<64x32xf32> -> vector<64x32xf32>
    %118 = arith.truncf %111 : vector<64x32xf32> to vector<64x32xbf16>
    %119 = arith.truncf %114 : vector<64x32xf32> to vector<64x32xbf16>
    %cst_60 = arith.constant dense<0.000000e+00> : vector<64x64xf32>
    %120 = tpu.matmul %118, %119, %cst_60 {dimension_numbers = #tpu.dot_dimension_numbers<[1], [1], [0], [0], [0, 0, 1, 0], [], []>} : vector<64x32xbf16>, vector<64x32xbf16>, vector<64x64xf32> -> vector<64x64xf32>
    %cst_61 = arith.constant 0.176776692 : f32
    %121 = vector.broadcast %cst_61 : f32 to vector<64x64xf32>
    %122 = arith.mulf %120, %121 : vector<64x64xf32>
    %cst_62 = arith.constant -1.000000e+30 : f32
    %123 = vector.broadcast %cst_62 : f32 to vector<64x64xf32>
    %124 = arith.select %41, %122, %123 : vector<64x64xi1>, vector<64x64xf32>
    %cst_63 = arith.constant dense<0xFF800000> : vector<64xf32>
    %125 = vector.multi_reduction <maximumf>, %124, %cst_63 [1] : vector<64x64xf32> to vector<64xf32>
    %126 = vector.shape_cast %125 : vector<64xf32> to vector<64x1xf32>
    %127 = vector.broadcast %126 : vector<64x1xf32> to vector<64x64xf32>
    %128 = arith.subf %124, %127 : vector<64x64xf32>
    %129 = math.exp %128 : vector<64x64xf32>
    %cst_64 = arith.constant dense<0.000000e+00> : vector<64xf32>
    %130 = vector.multi_reduction <add>, %129, %cst_64 [1] : vector<64x64xf32> to vector<64xf32>
    %131 = vector.shape_cast %130 : vector<64xf32> to vector<64x1xf32>
    %132 = vector.broadcast %131 : vector<64x1xf32> to vector<64x64xf32>
    %133 = arith.divf %129, %132 : vector<64x64xf32>
    %134 = arith.truncf %133 : vector<64x64xf32> to vector<64x64xbf16>
    %135 = arith.truncf %117 : vector<64x32xf32> to vector<64x32xbf16>
    %cst_65 = arith.constant dense<0.000000e+00> : vector<64x32xf32>
    %136 = tpu.matmul %134, %135, %cst_65 {dimension_numbers = #tpu.dot_dimension_numbers<[1], [0], [0], [1], [0, 0, 1, 1], [], []>} : vector<64x64xbf16>, vector<64x32xbf16>, vector<64x32xf32> -> vector<64x32xf32>
    %137 = arith.truncf %136 : vector<64x32xf32> to vector<64x32xbf16>
    %138 = vector.extract_strided_slice %7 {offsets = [2, 0, 0], sizes = [1, 32, 128], strides = [1, 1, 1]} : vector<4x32x128xbf16> to vector<1x32x128xbf16>
    %139 = vector.shape_cast %138 : vector<1x32x128xbf16> to vector<32x128xbf16>
    %cst_66 = arith.constant dense<0.000000e+00> : vector<64x128xf32>
    %140 = tpu.matmul %137, %139, %cst_66 {dimension_numbers = #tpu.dot_dimension_numbers<[1], [0], [0], [1], [0, 0, 1, 1], [], []>} : vector<64x32xbf16>, vector<32x128xbf16>, vector<64x128xf32> -> vector<64x128xf32>
    %141 = arith.addf %108, %140 : vector<64x128xf32>
    %142 = vector.extract_strided_slice %4 {offsets = [3, 0, 0], sizes = [1, 128, 32], strides = [1, 1, 1]} : vector<4x128x32xbf16> to vector<1x128x32xbf16>
    %143 = vector.shape_cast %142 : vector<1x128x32xbf16> to vector<128x32xbf16>
    %cst_67 = arith.constant dense<0.000000e+00> : vector<64x32xf32>
    %144 = tpu.matmul %38, %143, %cst_67 {dimension_numbers = #tpu.dot_dimension_numbers<[1], [0], [0], [1], [0, 0, 1, 1], [], []>} : vector<64x128xbf16>, vector<128x32xbf16>, vector<64x32xf32> -> vector<64x32xf32>
    %145 = vector.extract_strided_slice %5 {offsets = [3, 0, 0], sizes = [1, 128, 32], strides = [1, 1, 1]} : vector<4x128x32xbf16> to vector<1x128x32xbf16>
    %146 = vector.shape_cast %145 : vector<1x128x32xbf16> to vector<128x32xbf16>
    %cst_68 = arith.constant dense<0.000000e+00> : vector<64x32xf32>
    %147 = tpu.matmul %38, %146, %cst_68 {dimension_numbers = #tpu.dot_dimension_numbers<[1], [0], [0], [1], [0, 0, 1, 1], [], []>} : vector<64x128xbf16>, vector<128x32xbf16>, vector<64x32xf32> -> vector<64x32xf32>
    %148 = vector.extract_strided_slice %6 {offsets = [3, 0, 0], sizes = [1, 128, 32], strides = [1, 1, 1]} : vector<4x128x32xbf16> to vector<1x128x32xbf16>
    %149 = vector.shape_cast %148 : vector<1x128x32xbf16> to vector<128x32xbf16>
    %cst_69 = arith.constant dense<0.000000e+00> : vector<64x32xf32>
    %150 = tpu.matmul %38, %149, %cst_69 {dimension_numbers = #tpu.dot_dimension_numbers<[1], [0], [0], [1], [0, 0, 1, 1], [], []>} : vector<64x128xbf16>, vector<128x32xbf16>, vector<64x32xf32> -> vector<64x32xf32>
    %151 = arith.truncf %144 : vector<64x32xf32> to vector<64x32xbf16>
    %152 = arith.truncf %147 : vector<64x32xf32> to vector<64x32xbf16>
    %cst_70 = arith.constant dense<0.000000e+00> : vector<64x64xf32>
    %153 = tpu.matmul %151, %152, %cst_70 {dimension_numbers = #tpu.dot_dimension_numbers<[1], [1], [0], [0], [0, 0, 1, 0], [], []>} : vector<64x32xbf16>, vector<64x32xbf16>, vector<64x64xf32> -> vector<64x64xf32>
    %cst_71 = arith.constant 0.176776692 : f32
    %154 = vector.broadcast %cst_71 : f32 to vector<64x64xf32>
    %155 = arith.mulf %153, %154 : vector<64x64xf32>
    %cst_72 = arith.constant -1.000000e+30 : f32
    %156 = vector.broadcast %cst_72 : f32 to vector<64x64xf32>
    %157 = arith.select %41, %155, %156 : vector<64x64xi1>, vector<64x64xf32>
    %cst_73 = arith.constant dense<0xFF800000> : vector<64xf32>
    %158 = vector.multi_reduction <maximumf>, %157, %cst_73 [1] : vector<64x64xf32> to vector<64xf32>
    %159 = vector.shape_cast %158 : vector<64xf32> to vector<64x1xf32>
    %160 = vector.broadcast %159 : vector<64x1xf32> to vector<64x64xf32>
    %161 = arith.subf %157, %160 : vector<64x64xf32>
    %162 = math.exp %161 : vector<64x64xf32>
    %cst_74 = arith.constant dense<0.000000e+00> : vector<64xf32>
    %163 = vector.multi_reduction <add>, %162, %cst_74 [1] : vector<64x64xf32> to vector<64xf32>
    %164 = vector.shape_cast %163 : vector<64xf32> to vector<64x1xf32>
    %165 = vector.broadcast %164 : vector<64x1xf32> to vector<64x64xf32>
    %166 = arith.divf %162, %165 : vector<64x64xf32>
    %167 = arith.truncf %166 : vector<64x64xf32> to vector<64x64xbf16>
    %168 = arith.truncf %150 : vector<64x32xf32> to vector<64x32xbf16>
    %cst_75 = arith.constant dense<0.000000e+00> : vector<64x32xf32>
    %169 = tpu.matmul %167, %168, %cst_75 {dimension_numbers = #tpu.dot_dimension_numbers<[1], [0], [0], [1], [0, 0, 1, 1], [], []>} : vector<64x64xbf16>, vector<64x32xbf16>, vector<64x32xf32> -> vector<64x32xf32>
    %170 = arith.truncf %169 : vector<64x32xf32> to vector<64x32xbf16>
    %171 = vector.extract_strided_slice %7 {offsets = [3, 0, 0], sizes = [1, 32, 128], strides = [1, 1, 1]} : vector<4x32x128xbf16> to vector<1x32x128xbf16>
    %172 = vector.shape_cast %171 : vector<1x32x128xbf16> to vector<32x128xbf16>
    %cst_76 = arith.constant dense<0.000000e+00> : vector<64x128xf32>
    %173 = tpu.matmul %170, %172, %cst_76 {dimension_numbers = #tpu.dot_dimension_numbers<[1], [0], [0], [1], [0, 0, 1, 1], [], []>} : vector<64x32xbf16>, vector<32x128xbf16>, vector<64x128xf32> -> vector<64x128xf32>
    %174 = arith.addf %141, %173 : vector<64x128xf32>
    %175 = vector.broadcast %8 : vector<1x128xf32> to vector<64x128xf32>
    %176 = arith.addf %174, %175 : vector<64x128xf32>
    %177 = arith.addf %15, %176 : vector<64x128xf32>
    %cst_77 = arith.constant dense<0.000000e+00> : vector<64xf32>
    %178 = vector.multi_reduction <add>, %177, %cst_77 [1] : vector<64x128xf32> to vector<64xf32>
    %179 = vector.shape_cast %178 : vector<64xf32> to vector<64x1xf32>
    %cst_78 = arith.constant 1.280000e+02 : f32
    %180 = vector.broadcast %cst_78 : f32 to vector<64x1xf32>
    %181 = arith.divf %179, %180 : vector<64x1xf32>
    %182 = vector.broadcast %181 : vector<64x1xf32> to vector<64x128xf32>
    %183 = arith.subf %177, %182 : vector<64x128xf32>
    %184 = arith.mulf %183, %183 : vector<64x128xf32>
    %cst_79 = arith.constant dense<0.000000e+00> : vector<64xf32>
    %185 = vector.multi_reduction <add>, %184, %cst_79 [1] : vector<64x128xf32> to vector<64xf32>
    %186 = vector.shape_cast %185 : vector<64xf32> to vector<64x1xf32>
    %cst_80 = arith.constant 1.280000e+02 : f32
    %187 = vector.broadcast %cst_80 : f32 to vector<64x1xf32>
    %188 = arith.divf %186, %187 : vector<64x1xf32>
    %189 = vector.broadcast %181 : vector<64x1xf32> to vector<64x128xf32>
    %190 = arith.subf %177, %189 : vector<64x128xf32>
    %cst_81 = arith.constant 9.99999974E-6 : f32
    %191 = vector.broadcast %cst_81 : f32 to vector<64x1xf32>
    %192 = arith.addf %188, %191 : vector<64x1xf32>
    %193 = math.rsqrt %192 : vector<64x1xf32>
    %194 = vector.broadcast %193 : vector<64x1xf32> to vector<64x128xf32>
    %195 = arith.mulf %190, %194 : vector<64x128xf32>
    %196 = vector.broadcast %9 : vector<1x128xf32> to vector<64x128xf32>
    %197 = arith.mulf %195, %196 : vector<64x128xf32>
    %198 = vector.broadcast %10 : vector<1x128xf32> to vector<64x128xf32>
    %199 = arith.addf %197, %198 : vector<64x128xf32>
    %200 = arith.truncf %199 : vector<64x128xf32> to vector<64x128xbf16>
    %cst_82 = arith.constant dense<0.000000e+00> : vector<64x512xf32>
    %201 = tpu.matmul %200, %11, %cst_82 {dimension_numbers = #tpu.dot_dimension_numbers<[1], [0], [0], [1], [0, 0, 1, 1], [], []>} : vector<64x128xbf16>, vector<128x512xbf16>, vector<64x512xf32> -> vector<64x512xf32>
    %202 = vector.broadcast %12 : vector<1x512xf32> to vector<64x512xf32>
    %203 = arith.addf %201, %202 : vector<64x512xf32>
    %cst_83 = arith.constant 0.000000e+00 : f32
    %204 = vector.broadcast %cst_83 : f32 to vector<64x512xf32>
    %205 = arith.maximumf %203, %204 : vector<64x512xf32>
    %206 = arith.truncf %205 : vector<64x512xf32> to vector<64x512xbf16>
    %cst_84 = arith.constant dense<0.000000e+00> : vector<64x128xf32>
    %207 = tpu.matmul %206, %13, %cst_84 {dimension_numbers = #tpu.dot_dimension_numbers<[1], [0], [0], [1], [0, 0, 1, 1], [], []>} : vector<64x512xbf16>, vector<512x128xbf16>, vector<64x128xf32> -> vector<64x128xf32>
    %208 = vector.broadcast %14 : vector<1x128xf32> to vector<64x128xf32>
    %209 = arith.addf %207, %208 : vector<64x128xf32>
    %210 = arith.addf %177, %209 : vector<64x128xf32>
    %211 = arith.truncf %210 : vector<64x128xf32> to vector<64x128xbf16>
    %c0_85 = arith.constant 0 : index
    %c0_86 = arith.constant 0 : index
    %c0_87 = arith.constant 0 : index
    %212 = vector.load %arg15[%c0_85, %c0_86, %c0_87] : memref<1x64x128xbf16, #tpu.memory_space<vmem>>, vector<1x64x128xbf16>
    %213 = vector.shape_cast %212 : vector<1x64x128xbf16> to vector<64x128xbf16>
    %214 = vector.shape_cast %211 : vector<64x128xbf16> to vector<1x64x128xbf16>
    tpu.vector_store %arg15[%c0_85, %c0_86, %c0_87], %214 {strides = array<i32>} : memref<1x64x128xbf16, #tpu.memory_space<vmem>>, vector<1x64x128xbf16>,
    return
  }
  func.func @transform_0(%arg0: i32) -> (i32, i32, i32) {
    %c0_i32 = arith.constant 0 : i32
    %c0_i32_0 = arith.constant 0 : i32
    %c0_i32_1 = arith.constant 0 : i32
    return %arg0, %c0_i32, %c0_i32_0 : i32, i32, i32
  }
  func.func @transform_1(%arg0: i32) -> (i32, i32) {
    %c0_i32 = arith.constant 0 : i32
    %c0_i32_0 = arith.constant 0 : i32
    %c0_i32_1 = arith.constant 0 : i32
    return %c0_i32, %c0_i32_0 : i32, i32
  }
  func.func @transform_2(%arg0: i32) -> (i32, i32) {
    %c0_i32 = arith.constant 0 : i32
    %c0_i32_0 = arith.constant 0 : i32
    %c0_i32_1 = arith.constant 0 : i32
    return %c0_i32, %c0_i32_0 : i32, i32
  }
  func.func @transform_3(%arg0: i32) -> (i32, i32, i32) {
    %c0_i32 = arith.constant 0 : i32
    %c0_i32_0 = arith.constant 0 : i32
    %c0_i32_1 = arith.constant 0 : i32
    %c0_i32_2 = arith.constant 0 : i32
    return %c0_i32, %c0_i32_0, %c0_i32_1 : i32, i32, i32
  }
  func.func @transform_4(%arg0: i32) -> (i32, i32, i32) {
    %c0_i32 = arith.constant 0 : i32
    %c0_i32_0 = arith.constant 0 : i32
    %c0_i32_1 = arith.constant 0 : i32
    %c0_i32_2 = arith.constant 0 : i32
    return %c0_i32, %c0_i32_0, %c0_i32_1 : i32, i32, i32
  }
  func.func @transform_5(%arg0: i32) -> (i32, i32, i32) {
    %c0_i32 = arith.constant 0 : i32
    %c0_i32_0 = arith.constant 0 : i32
    %c0_i32_1 = arith.constant 0 : i32
    %c0_i32_2 = arith.constant 0 : i32
    return %c0_i32, %c0_i32_0, %c0_i32_1 : i32, i32, i32
  }
  func.func @transform_6(%arg0: i32) -> (i32, i32, i32) {
    %c0_i32 = arith.constant 0 : i32
    %c0_i32_0 = arith.constant 0 : i32
    %c0_i32_1 = arith.constant 0 : i32
    %c0_i32_2 = arith.constant 0 : i32
    return %c0_i32, %c0_i32_0, %c0_i32_1 : i32, i32, i32
  }
  func.func @transform_7(%arg0: i32) -> (i32, i32) {
    %c0_i32 = arith.constant 0 : i32
    %c0_i32_0 = arith.constant 0 : i32
    %c0_i32_1 = arith.constant 0 : i32
    return %c0_i32, %c0_i32_0 : i32, i32
  }
  func.func @transform_8(%arg0: i32) -> (i32, i32) {
    %c0_i32 = arith.constant 0 : i32
    %c0_i32_0 = arith.constant 0 : i32
    %c0_i32_1 = arith.constant 0 : i32
    return %c0_i32, %c0_i32_0 : i32, i32
  }
  func.func @transform_9(%arg0: i32) -> (i32, i32) {
    %c0_i32 = arith.constant 0 : i32
    %c0_i32_0 = arith.constant 0 : i32
    %c0_i32_1 = arith.constant 0 : i32
    return %c0_i32, %c0_i32_0 : i32, i32
  }
  func.func @transform_10(%arg0: i32) -> (i32, i32) {
    %c0_i32 = arith.constant 0 : i32
    %c0_i32_0 = arith.constant 0 : i32
    %c0_i32_1 = arith.constant 0 : i32
    return %c0_i32, %c0_i32_0 : i32, i32
  }
  func.func @transform_11(%arg0: i32) -> (i32, i32) {
    %c0_i32 = arith.constant 0 : i32
    %c0_i32_0 = arith.constant 0 : i32
    %c0_i32_1 = arith.constant 0 : i32
    return %c0_i32, %c0_i32_0 : i32, i32
  }
  func.func @transform_12(%arg0: i32) -> (i32, i32) {
    %c0_i32 = arith.constant 0 : i32
    %c0_i32_0 = arith.constant 0 : i32
    %c0_i32_1 = arith.constant 0 : i32
    return %c0_i32, %c0_i32_0 : i32, i32
  }
  func.func @transform_13(%arg0: i32) -> (i32, i32) {
    %c0_i32 = arith.constant 0 : i32
    %c0_i32_0 = arith.constant 0 : i32
    %c0_i32_1 = arith.constant 0 : i32
    return %c0_i32, %c0_i32_0 : i32, i32
  }
  func.func @transform_14(%arg0: i32) -> (i32, i32, i32) {
    %c0_i32 = arith.constant 0 : i32
    %c0_i32_0 = arith.constant 0 : i32
    %c0_i32_1 = arith.constant 0 : i32
    return %arg0, %c0_i32, %c0_i32_0 : i32, i32, i32
  }
}

</mosaic_0001>

<bundles_post_ra>
// kernel: gpt_forward.5
= control target key start
LH: loop header
LB: loop body
LE: loop exit
PB: predicated region body
PF: predicated region fallthrough
CT: control target
= control target key end

     0   :  { %10 = vsyncpa [#allocation3], 0  ;;  %s1396_s0 = inlined_call_operand.vmem [shape: bf16[256,128], index: 0, kind: input, shape index: {}]   ;;  %s1397_s1 = inlined_call_operand.vmem [shape: f32[1,128], index: 1, kind: input, shape index: {}]   ;;  %s1398_s2 = inlined_call_operand.vmem [shape: f32[1,128], index: 2, kind: input, shape index: {}]   ;;  %s1399_s3 = inlined_call_operand.vmem [shape: bf16[128,65], index: 3, kind: input, shape index: {}]   ;;  %s1400_s4 = inlined_call_operand.vmem [shape: f32[1,65], index: 4, kind: input, shape index: {}]   ;;  %s1401_s5 = inlined_call_operand.hbm [shape: f32[256,65], index: 5, kind: output, shape index: {}]  }
   0x1   :  { %12 = vsyncpa [#allocation3 + $0x1], 0  ;;  %s1056_s18 = smov 0   ;;  %s1058_s19 = smov 0  }
   0x2   :  { %s1060_s20 = smov 0   ;;  %s1062_s21 = smov 0  }
   0x3 LB: > { %s1077_s22 = sadd.s32 4294967295, %s1021_s21   ;;  %s751_s23 = sadd.s32 4294967294, %s1021_s21   ;;  %s1021_s21 = sphi %s1062_s21, %s1407_s21   ;;  %s1017_s20 = sphi %s1060_s20, %s1406_s20   ;;  %s1013_s19 = sphi %s1058_s19, %s1405_s19   ;;  %s1009_s18 = sphi %s1056_s18, %s1404_s18  }
   0x4   : > { %s1081_s24 = sadd.s32 1, %s1021_s21   ;;  %s135_s25 = sadd.s32 1, %s1017_s20 }
   0x5   : > { %s132_s26 = ssub.s32 %s1021_s21, %s1081_s24  ;;  %p145_p0 = scmp.ne.s32.totalorder %s1017_s20, %s1013_s19 }
   0x6   : > { %p133_p1 = scmp.eq.s32.totalorder %s132_s26, 0  ;;  %p146_p2 = scmp.eq.s32.totalorder %s1077_s22, 1 }
   0x7   : > { %p151_p3 = scmp.ne.s32.totalorder %s1013_s19, %s1009_s18  ;;  %p152_p4 = scmp.eq.s32.totalorder %s751_s23, 1 }
   0x8   : > { %s1092_s27 = scalar_select %p133_p1, %s1017_s20, %s135_s25  }
   0x9   : > { %p1094_p5 = por %p146_p2, %p145_p0  ;;  %p1098_p6 = por %p152_p4, %p151_p3 }
   0xa   : > { %p754_p7 = scmp.ge.s32.totalorder %s1021_s21, 1  ;;  %p191_p8 = scmp.lt.s32.totalorder %s1021_s21, 3 }
   0xc   : > { %p192_p9 = pnand %p754_p7, %p191_p8 }
   0xd   : > { %s756_s30 = sshll.u32 (!%p192_p9), %s1077_s22, 4  ;;  %s216_s14 = sand.u32 (!%p192_p9), 1, %s1013_s19   ;;  %vm658_vm0 = vcmask (!%p192_p9), 531456  }
   0xe   : > { %195 = sbr.rel (%p192_p9) target bundleno = 604 (0x25c), region = 40  ;;  %p220_p10 = scmp.lt.s32.totalorder (!%p192_p9), %s756_s30, 31 }
   0xf   : > { %s755_s15 = sshll.u32 (!%p192_p9), %s216_s14, 7  ;;  %s774_s25 = sshll.u32 (!%p192_p9), %s1077_s22, 11 }
  0x10   : > { %s1310_s23 = scalar_lea.vmem (!%p192_p9), [#allocation2], %s755_s15  ;;  %s1343_s22 = scalar_lea.hbm (!%p192_p9), %s1401_s5, %s774_s25 }
  0x11   : > { %s689_s26 = sshll.u32 (!%p192_p9), %s1310_s23, 4  ;;  %s1355_s7 = scalar_lea.sflag (!%p192_p9), [#allocation3], %s216_s14  ;;  %s1345_s26 = int_to_ptr.vmem [resolvable:$true] %s689_s26 }
  0x12   : > { %s959_s8 = scalar_lea.vmem (!%p192_p9), %s1345_s26, 2048 }
  0x13   : > { %p960_p11 = scmp.ne.s32.totalorder (!%p192_p9), %s1345_s26, %s959_s8 }
  0x15   : > { %s1409_s30 = smov (!%p220_p10, %s756_s30), 31  ;;  %p961_p12 = pnand %p960_p11, %p1094_p5 }
  0x16   : > { %s757_s6 = sshll.u32 %s1409_s30, 2 }
  0x17   : > { %s1108_s9 = scalar_lea.vmem %s1396_s0, %s757_s6  ;;  %p962_p13 = pneg %p961_p12 }
  0x18   : > { %v776_v0 = vld [vmem:[%s1108_s9] sm:$0xff]   ;;  %v807_v6 = vld [vmem:[%s1108_s9 + $0x8] sm:$0xff]   ;;  %v1115_v12 = vld [vmem:[%s1108_s9 + $0x10] sm:$0xff]  }
  0x19   : > { %v810_v1 = vld [vmem:[%s1108_s9 + $0x20] sm:$0xff]   ;;  %v777_v2 = vunpack.c.l.bf16 %v776_v0  ;;  %v778_v4 = vunpack.c.h.bf16 %v776_v0  ;;  %v781_v7 = vunpack.c.l.bf16 %v807_v6  ;;  %v782_v8 = vunpack.c.h.bf16 %v807_v6  ;;  %v811_v9 = vld [vmem:[%s1108_s9 + $0x28] sm:$0xff]   ;;  %v1120_v15 = vld [vmem:[%s1108_s9 + $0x30] sm:$0xff]  }
  0x1a   : > { %v793_v3 = vunpack.c.l.bf16 %v810_v1  ;;  %v794_v5 = vunpack.c.h.bf16 %v810_v1  ;;  %v797_v10 = vunpack.c.l.bf16 %v811_v9  ;;  %v798_v11 = vunpack.c.h.bf16 %v811_v9  ;;  %v1125_v18 = vld [vmem:[%s1108_s9 + $0x18] sm:$0xff]  }
  0x1b   : > { %278 = vadd.xlane.f32.xlu0 %v777_v2  ;;  %v785_v13 = vunpack.c.l.bf16 %v1115_v12  ;;  %v786_v14 = vunpack.c.h.bf16 %v1115_v12  ;;  %v801_v16 = vunpack.c.l.bf16 %v1120_v15  ;;  %v802_v17 = vunpack.c.h.bf16 %v1120_v15  ;;  %v1134_v21 = vld [vmem:[%s1108_s9 + $0x38] sm:$0xff]   ;;  %v920_v15 = vld [vmem:[%s1399_s3 + $0x8] sm:$0xff]   ;;  %s1023_s9 = smov [#allocation2]  }
  0x1c   : > { %294 = vadd.xlane.f32.xlu1 %v793_v3  ;;  %v789_v19 = vunpack.c.l.bf16 %v1125_v18  ;;  %v790_v20 = vunpack.c.h.bf16 %v1125_v18  ;;  %v805_v22 = vunpack.c.l.bf16 %v1134_v21  ;;  %v806_v23 = vunpack.c.h.bf16 %v1134_v21  ;;  %s963_s10 = sshll.u32 %s1023_s9, 4  ;;  %s964_s10 = int_to_ptr.vmem [resolvable:$false] %s963_s10 }
  0x1d   : > { %s965_s11 = scalar_lea.vmem %s964_s10, 4096  ;;  %p966_p0 = scmp.lt.s32.totalorder %s1345_s26, %s964_s10 }
  0x1e   : > { %p967_p1 = scmp.lt.s32.totalorder %s965_s11, %s959_s8 }
  0x1f   : > { %280 = vadd.xlane.f32.xlu0 %v778_v4 }
  0x20   : > { %296 = vadd.xlane.f32.xlu1 %v794_v5  ;;  %p968_p2 = por %p967_p1, %p966_p0 }
  0x22   : > { %p969_p3 = pnand %p968_p2, %p962_p13 }
  0x23   : > { %282 = vadd.xlane.f32.xlu0 %v781_v7 }
  0x24   : > { %284 = vadd.xlane.f32.xlu1 %v782_v8 }
  0x27   : > { %298 = vadd.xlane.f32.xlu0 %v797_v10 }
  0x28   : > { %300 = vadd.xlane.f32.xlu1 %v798_v11 }
  0x2b   : > { %286 = vadd.xlane.f32.xlu0 %v785_v13 }
  0x2c   : > { %288 = vadd.xlane.f32.xlu1 %v786_v14 }
  0x2f   : > { %302 = vadd.xlane.f32.xlu0 %v801_v16 }
  0x30   : > { %304 = vadd.xlane.f32.xlu1 %v802_v17 }
  0x33   : > { %290 = vadd.xlane.f32.xlu0 %v789_v19 }
  0x34   : > { %292 = vadd.xlane.f32.xlu1 %v790_v20 }
  0x37   : > { %306 = vadd.xlane.f32.xlu0 %v805_v22 }
  0x38   : > { %308 = vadd.xlane.f32.xlu1 %v806_v23 }
  0xa8   : > { %v279_v24 = vpop.xlane.xlu0 %278 }
  0xa9   : > { %v295_v25 = vpop.xlane.xlu1 %294  ;;  %v311_v26 = vmul.f32 0.0078125, %v279_v24 }
  0xaa   : > { %v319_v27 = vmul.f32 0.0078125, %v295_v25 }
  0xab   : > { %v1146_v28 = vsub.f32 %v777_v2, %v311_v26 }
  0xac   : > { %v1148_v29 = vsub.f32 %v793_v3, %v319_v27  ;;  %v281_v30 = vpop.xlane.xlu0 %280  ;;  %v919_v3 = vld [vmem:[%s1399_s3] sm:$0xff]   ;;  %v921_v27 = vld [vmem:[%s1399_s3 + $0x10] sm:$0xff]  }
  0xad   : > { %v297_v31 = vpop.xlane.xlu1 %296  ;;  %v312_v32 = vmul.f32 0.0078125, %v281_v30  ;;  %v343_v33 = vmul.f32 %v1146_v28, %v1146_v28  ;;  %830 = vmatprep.subr.bf16.mxu0 %v919_v3  ;;  %862 = vmatprep.subr.bf16.mxu1 %v919_v3 }
  0xae   : > { %v320_v34 = vmul.f32 0.0078125, %v297_v31  ;;  %v351_v37 = vmul.f32 %v1148_v29, %v1148_v29  ;;  %831 = vmatpush3.bf16.msra.mxu0 %v919_v3  ;;  %870 = vmatpush3.bf16.msra.mxu1 %v919_v3  ;;  %v924_v31 = vld [vmem:[%s1399_s3 + $0x28] sm:$0xff]  }
  0xaf   : > { %v1152_v35 = vsub.f32 %v778_v4, %v312_v32  ;;  %359 = vadd.xlane.f32.xlu0 %v343_v33  ;;  %832 = vmatprep.subr.bf16.mxu0 %v920_v15  ;;  %v925_v32 = vld [vmem:[%s1399_s3 + $0x30] sm:$0xff]   ;;  %v926_v33 = vld [vmem:[%s1399_s3 + $0x38] sm:$0xff]  }
  0xb0   : > { %v1154_v36 = vsub.f32 %v794_v5, %v320_v34  ;;  %v283_v38 = vpop.xlane.xlu0 %282  ;;  %863 = vmatprep.subr.bf16.mxu1 %v920_v15 }
  0xb1   : > { %v285_v39 = vpop.xlane.xlu1 %284  ;;  %v313_v40 = vmul.f32 0.0078125, %v283_v38  ;;  %v344_v41 = vmul.f32 %v1152_v35, %v1152_v35 }
  0xb2   : > { %v314_v42 = vmul.f32 0.0078125, %v285_v39  ;;  %v352_v45 = vmul.f32 %v1154_v36, %v1154_v36  ;;  %833 = vmatpush3.bf16.msra.mxu0 %v920_v15  ;;  %871 = vmatpush3.bf16.msra.mxu1 %v920_v15 }
  0xb3   : > { %v1160_v43 = vsub.f32 %v781_v7, %v313_v40  ;;  %375 = vadd.xlane.f32.xlu0 %v351_v37  ;;  %361 = vadd.xlane.f32.xlu1 %v344_v41 }
  0xb4   : > { %v1162_v44 = vsub.f32 %v782_v8, %v314_v42  ;;  %v299_v46 = vpop.xlane.xlu0 %298  ;;  %834 = vmatprep.subr.bf16.mxu0 %v921_v27  ;;  %864 = vmatprep.subr.bf16.mxu1 %v921_v27 }
  0xb5   : > { %v301_v47 = vpop.xlane.xlu1 %300  ;;  %v321_v48 = vmul.f32 0.0078125, %v299_v46  ;;  %v345_v49 = vmul.f32 %v1160_v43, %v1160_v43 }
  0xb6   : > { %v322_v50 = vmul.f32 0.0078125, %v301_v47  ;;  %v346_v53 = vmul.f32 %v1162_v44, %v1162_v44  ;;  %835 = vmatpush3.bf16.msra.mxu0 %v921_v27  ;;  %872 = vmatpush3.bf16.msra.mxu1 %v921_v27 }
  0xb7   : > { %v1168_v51 = vsub.f32 %v797_v10, %v321_v48  ;;  %377 = vadd.xlane.f32.xlu1 %v352_v45  ;;  %363 = vadd.xlane.f32.xlu0 %v345_v49 }
  0xb8   : > { %v1170_v52 = vsub.f32 %v798_v11, %v322_v50  ;;  %v287_v54 = vpop.xlane.xlu0 %286 }
  0xb9   : > { %v289_v55 = vpop.xlane.xlu1 %288  ;;  %v315_v56 = vmul.f32 0.0078125, %v287_v54  ;;  %v353_v57 = vmul.f32 %v1168_v51, %v1168_v51 }
  0xba   : > { %v316_v58 = vmul.f32 0.0078125, %v289_v55  ;;  %v354_v61 = vmul.f32 %v1170_v52, %v1170_v52 }
  0xbb   : > { %v1176_v59 = vsub.f32 %v785_v13, %v315_v56  ;;  %365 = vadd.xlane.f32.xlu1 %v346_v53  ;;  %379 = vadd.xlane.f32.xlu0 %v353_v57 }
  0xbc   : > { %v1178_v60 = vsub.f32 %v786_v14, %v316_v58  ;;  %v303_v62 = vpop.xlane.xlu0 %302 }
  0xbd   : > { %v305_v63 = vpop.xlane.xlu1 %304  ;;  %v323_v0 = vmul.f32 0.0078125, %v303_v62  ;;  %v347_v1 = vmul.f32 %v1176_v59, %v1176_v59 }
  0xbe   : > { %v324_v2 = vmul.f32 0.0078125, %v305_v63  ;;  %v348_v6 = vmul.f32 %v1178_v60, %v1178_v60 }
  0xbf   : > { %v1189_v4 = vsub.f32 %v801_v16, %v323_v0  ;;  %381 = vadd.xlane.f32.xlu1 %v354_v61  ;;  %367 = vadd.xlane.f32.xlu0 %v347_v1 }
  0xc0   : > { %v1193_v5 = vsub.f32 %v802_v17, %v324_v2  ;;  %v291_v7 = vpop.xlane.xlu0 %290 }
  0xc1   : > { %v293_v8 = vpop.xlane.xlu1 %292  ;;  %v317_v9 = vmul.f32 0.0078125, %v291_v7  ;;  %v355_v10 = vmul.f32 %v1189_v4, %v1189_v4  ;;  %v1250_v7 = vld [vmem:[%s1397_s1] ss:$0 sm:$0xff] }
  0xc2   : > { %v318_v11 = vmul.f32 0.0078125, %v293_v8  ;;  %v356_v14 = vmul.f32 %v1193_v5, %v1193_v5 }
  0xc3   : > { %v1201_v12 = vsub.f32 %v789_v19, %v317_v9  ;;  %369 = vadd.xlane.f32.xlu1 %v348_v6  ;;  %383 = vadd.xlane.f32.xlu0 %v355_v10 }
  0xc4   : > { %v1205_v13 = vsub.f32 %v790_v20, %v318_v11  ;;  %v307_v16 = vpop.xlane.xlu0 %306 }
  0xc5   : > { %v309_v17 = vpop.xlane.xlu1 %308  ;;  %v325_v24 = vmul.f32 0.0078125, %v307_v16  ;;  %v349_v19 = vmul.f32 %v1201_v12, %v1201_v12 }
  0xc6   : > { %v326_v25 = vmul.f32 0.0078125, %v309_v17  ;;  %v350_v26 = vmul.f32 %v1205_v13, %v1205_v13 }
  0xc7   : > { %v1216_v18 = vsub.f32 %v805_v22, %v325_v24  ;;  %385 = vadd.xlane.f32.xlu1 %v356_v14  ;;  %371 = vadd.xlane.f32.xlu0 %v349_v19  ;;  %v922_v22 = vld [vmem:[%s1399_s3 + $0x18] sm:$0xff]   ;;  %v1257_v19 = vld [vmem:[%s1398_s2] ss:$0 sm:$0xff] }
  0xc8   : > { %v1220_v20 = vsub.f32 %v806_v23, %v326_v25  ;;  %836 = vmatprep.subr.bf16.mxu0 %v922_v22  ;;  %865 = vmatprep.subr.bf16.mxu1 %v922_v22  ;;  %v923_v23 = vld [vmem:[%s1399_s3 + $0x20] sm:$0xff]  }
  0xc9   : > { %v357_v30 = vmul.f32 %v1216_v18, %v1216_v18  ;;  %837 = vmatpush3.bf16.msra.mxu0 %v922_v22  ;;  %873 = vmatpush3.bf16.msra.mxu1 %v922_v22 }
  0xca   : > { %v358_v21 = vmul.f32 %v1220_v20, %v1220_v20  ;;  %838 = vmatprep.subr.bf16.mxu0 %v923_v23  ;;  %866 = vmatprep.subr.bf16.mxu1 %v923_v23 }
  0xcb   : > { %373 = vadd.xlane.f32.xlu1 %v350_v26  ;;  %387 = vadd.xlane.f32.xlu0 %v357_v30 }
  0xcd   : > { %839 = vmatpush3.bf16.msra.mxu0 %v923_v23  ;;  %874 = vmatpush3.bf16.msra.mxu1 %v923_v23 }
  0xce   : > { %840 = vmatprep.subr.bf16.mxu0 %v924_v31  ;;  %867 = vmatprep.subr.bf16.mxu1 %v924_v31 }
  0xcf   : > { %389 = vadd.xlane.f32.xlu1 %v358_v21 }
  0xd1   : > { %841 = vmatpush3.bf16.msra.mxu0 %v924_v31  ;;  %875 = vmatpush3.bf16.msra.mxu1 %v924_v31 }
  0xd2   : > { %842 = vmatprep.subr.bf16.mxu0 %v925_v32  ;;  %868 = vmatprep.subr.bf16.mxu1 %v925_v32 }
  0xd5   : > { %843 = vmatpush3.bf16.msra.mxu0 %v925_v32  ;;  %876 = vmatpush3.bf16.msra.mxu1 %v925_v32 }
  0xd6   : > { %844 = vmatprep.subr.bf16.mxu0 %v926_v33  ;;  %869 = vmatprep.subr.bf16.mxu1 %v926_v33 }
  0xd9   : > { %845 = vmatpush3.bf16.msra.mxu0 %v926_v33  ;;  %877 = vmatpush3.bf16.msra.mxu1 %v926_v33 }
 0x13c   : > { %v360_v34 = vpop.xlane.xlu0 %359 }
 0x13d   : > { %v391_v37 = vmul.f32 0.0078125, %v360_v34 }
 0x13f   : > { %v407_v38 = vadd.f32 1e-05, %v391_v37 }
 0x140   : > { %v362_v39 = vpop.xlane.xlu1 %361  ;;  %v376_v40 = vpop.xlane.xlu0 %375 }
 0x141   : > { %927 = vrsqrt.f32 %v407_v38  ;;  %v392_v41 = vmul.f32 0.0078125, %v362_v39  ;;  %v399_v42 = vmul.f32 0.0078125, %v376_v40 }
 0x143   : > { %v408_v45 = vadd.f32 1e-05, %v392_v41  ;;  %v415_v46 = vadd.f32 1e-05, %v399_v42 }
 0x144   : > { %v378_v47 = vpop.xlane.xlu1 %377  ;;  %v364_v48 = vpop.xlane.xlu0 %363 }
 0x145   : > { %929 = vrsqrt.f32 %v408_v45  ;;  %v400_v49 = vmul.f32 0.0078125, %v378_v47  ;;  %v393_v50 = vmul.f32 0.0078125, %v364_v48 }
 0x146   : > { %931 = vrsqrt.f32 %v415_v46 }
 0x147   : > { %v416_v53 = vadd.f32 1e-05, %v400_v49  ;;  %v409_v54 = vadd.f32 1e-05, %v393_v50 }
 0x148   : > { %v366_v55 = vpop.xlane.xlu1 %365  ;;  %v380_v56 = vpop.xlane.xlu0 %379 }
 0x149   : > { %933 = vrsqrt.f32 %v416_v53  ;;  %v394_v57 = vmul.f32 0.0078125, %v366_v55  ;;  %v401_v58 = vmul.f32 0.0078125, %v380_v56 }
 0x14a   : > { %935 = vrsqrt.f32 %v409_v54 }
 0x14b   : > { %v928_v61 = vpop.eup %927  ;;  %v410_v62 = vadd.f32 1e-05, %v394_v57  ;;  %v417_v63 = vadd.f32 1e-05, %v401_v58 }
 0x14c   : > { %v382_v0 = vpop.xlane.xlu1 %381  ;;  %v368_v1 = vpop.xlane.xlu0 %367  ;;  %v439_v2 = vmul.f32 %v928_v61, %v1146_v28 }
 0x14d   : > { %937 = vrsqrt.f32 %v410_v62  ;;  %v402_v3 = vmul.f32 0.0078125, %v382_v0  ;;  %v395_v6 = vmul.f32 0.0078125, %v368_v1 }
 0x14e   : > { %939 = vrsqrt.f32 %v417_v63  ;;  %v461_v17 = vmul.f32 %v1250_v7, %v439_v2 }
 0x14f   : > { %v930_v8 = vpop.eup %929  ;;  %v418_v9 = vadd.f32 1e-05, %v402_v3  ;;  %v411_v10 = vadd.f32 1e-05, %v395_v6 }
 0x150   : > { %v932_v11 = vpop.eup %931  ;;  %v370_v14 = vpop.xlane.xlu1 %369  ;;  %v440_v16 = vmul.f32 %v930_v8, %v1152_v35  ;;  %v483_v31 = vadd.f32 %v1257_v19, %v461_v17 }
 0x151   : > { %v384_v15 = vpop.xlane.xlu0 %383  ;;  %941 = vrsqrt.f32 %v418_v9  ;;  %v396_v28 = vmul.f32 0.0078125, %v370_v14  ;;  %v447_v25 = vmul.f32 %v932_v11, %v1148_v29 }
 0x152   : > { %v403_v24 = vmul.f32 0.0078125, %v384_v15  ;;  %943 = vrsqrt.f32 %v411_v10  ;;  %v462_v26 = vmul.f32 %v1250_v7, %v440_v16 }
 0x153   : > { %v934_v27 = vpop.eup %933  ;;  %v412_v30 = vadd.f32 1e-05, %v396_v28  ;;  %v469_v34 = vmul.f32 %v1250_v7, %v447_v25 }
 0x154   : > { %v419_v21 = vadd.f32 1e-05, %v403_v24  ;;  %v936_v22 = vpop.eup %935  ;;  %v386_v35 = vpop.xlane.xlu1 %385  ;;  %v484_v32 = vadd.f32 %v1257_v19, %v462_v26  ;;  %v448_v33 = vmul.f32 %v934_v27, %v1154_v36 }
 0x155   : > { %v372_v23 = vpop.xlane.xlu0 %371  ;;  %945 = vrsqrt.f32 %v412_v30  ;;  %v404_v37 = vmul.f32 0.0078125, %v386_v35  ;;  %v441_v40 = vmul.f32 %v936_v22, %v1160_v43  ;;  %v491_v36 = vadd.f32 %v1257_v19, %v469_v34 }
 0x156   : > { %v397_v29 = vmul.f32 0.0078125, %v372_v23  ;;  %947 = vrsqrt.f32 %v419_v21  ;;  %v499_v38 = vpack.c.bf16 %v484_v32, %v483_v31  ;;  %v470_v39 = vmul.f32 %v1250_v7, %v448_v33 }
 0x157   : > { %v938_v41 = vpop.eup %937  ;;  %v420_v42 = vadd.f32 1e-05, %v404_v37  ;;  %v463_v53 = vmul.f32 %v1250_v7, %v441_v40 }
 0x158   : > { %v413_v45 = vadd.f32 1e-05, %v397_v29  ;;  %v940_v46 = vpop.eup %939  ;;  %v374_v47 = vpop.xlane.xlu1 %373  ;;  %846 = vmatprep.mubr.bf16.mxu0 %v499_v38  ;;  %v492_v49 = vadd.f32 %v1257_v19, %v470_v39  ;;  %v442_v50 = vmul.f32 %v938_v41, %v1162_v44 }
 0x159   : > { %v388_v48 = vpop.xlane.xlu0 %387  ;;  %949 = vrsqrt.f32 %v420_v42  ;;  %v398_v54 = vmul.f32 0.0078125, %v374_v47  ;;  %v449_v43 = vmul.f32 %v940_v46, %v1168_v51  ;;  %v485_v1 = vadd.f32 %v1257_v19, %v463_v53 }
 0x15a   : > { %v405_v55 = vmul.f32 0.0078125, %v388_v48  ;;  %951 = vrsqrt.f32 %v413_v45  ;;  %v503_v56 = vpack.c.bf16 %v492_v49, %v491_v36  ;;  %v464_v57 = vmul.f32 %v1250_v7, %v442_v50  ;;  %v760_v48 = vld [vmem:[%s1400_s4] ss:$0 sm:$0xff] }
 0x15b   : > { %v942_v58 = vpop.eup %941  ;;  %v414_v61 = vadd.f32 1e-05, %v398_v54  ;;  %v471_v3 = vmul.f32 %v1250_v7, %v449_v43 }
 0x15c   : > { %v421_v62 = vadd.f32 1e-05, %v405_v55  ;;  %v944_v63 = vpop.eup %943  ;;  %v390_v0 = vpop.xlane.xlu1 %389  ;;  %854 = vmatprep.mubr.bf16.mxu1 %v503_v56  ;;  %v486_v44 = vadd.f32 %v1257_v19, %v464_v57  ;;  %v450_v2 = vmul.f32 %v942_v58, %v1170_v52 }
 0x15d   : > { %953 = vrsqrt.f32 %v414_v61  ;;  %v406_v51 = vmul.f32 0.0078125, %v390_v0  ;;  %v443_v6 = vmul.f32 %v944_v63, %v1176_v59  ;;  %v493_v15 = vadd.f32 %v1257_v19, %v471_v3 }
 0x15e   : > { %955 = vrsqrt.f32 %v421_v62  ;;  %v500_v8 = vpack.c.bf16 %v486_v44, %v485_v1  ;;  %v472_v9 = vmul.f32 %v1250_v7, %v450_v2 }
 0x15f   : > { %v946_v10 = vpop.eup %945  ;;  %v422_v11 = vadd.f32 1e-05, %v406_v51  ;;  %v465_v17 = vmul.f32 %v1250_v7, %v443_v6 }
 0x160   : > { %v948_v14 = vpop.eup %947  ;;  %847 = vmatmul.mubr.bf16.vlgmr.msra.gmra.mrb[0].mxu0 %v500_v8  ;;  %v494_v16 = vadd.f32 %v1257_v19, %v472_v9  ;;  %v444_v52 = vmul.f32 %v946_v10, %v1178_v60 }
 0x161   : > { %957 = vrsqrt.f32 %v422_v11  ;;  %v451_v28 = vmul.f32 %v948_v14, %v1189_v4  ;;  %v487_v27 = vadd.f32 %v1257_v19, %v465_v17 }
 0x162   : > { %v504_v59 = vpack.c.bf16 %v494_v16, %v493_v15  ;;  %v466_v24 = vmul.f32 %v1250_v7, %v444_v52 }
 0x163   : > { %v950_v25 = vpop.eup %949  ;;  %v473_v22 = vmul.f32 %v1250_v7, %v451_v28 }
 0x164   : > { %v952_v26 = vpop.eup %951  ;;  %855 = vmatmul.mubr.bf16.vlgmr.msra.gmra.mrb[0].mxu1 %v504_v59  ;;  %v488_v30 = vadd.f32 %v1257_v19, %v466_v24  ;;  %v452_v21 = vmul.f32 %v950_v25, %v1193_v5 }
 0x165   : > { %v445_v60 = vmul.f32 %v952_v26, %v1201_v12  ;;  %v495_v32 = vadd.f32 %v1257_v19, %v473_v22 }
 0x166   : > { %v501_v35 = vpack.c.bf16 %v488_v30, %v487_v27  ;;  %v474_v23 = vmul.f32 %v1250_v7, %v452_v21 }
 0x167   : > { %v954_v4 = vpop.eup %953  ;;  %v467_v37 = vmul.f32 %v1250_v7, %v445_v60 }
 0x168   : > { %v956_v31 = vpop.eup %955  ;;  %850 = vmatprep.mubr.bf16.mxu0 %v501_v35  ;;  %v496_v33 = vadd.f32 %v1257_v19, %v474_v23  ;;  %v446_v34 = vmul.f32 %v954_v4, %v1205_v13 }
 0x169   : > { %v453_v5 = vmul.f32 %v956_v31, %v1216_v18  ;;  %v489_v39 = vadd.f32 %v1257_v19, %v467_v37 }
 0x16a   : > { %v505_v29 = vpack.c.bf16 %v496_v33, %v495_v32  ;;  %v468_v12 = vmul.f32 %v1250_v7, %v446_v34 }
 0x16b   : > { %v958_v38 = vpop.eup %957  ;;  %v475_v42 = vmul.f32 %v1250_v7, %v453_v5 }
 0x16c   : > { %858 = vmatprep.mubr.bf16.mxu1 %v505_v29  ;;  %v490_v40 = vadd.f32 %v1257_v19, %v468_v12  ;;  %v454_v41 = vmul.f32 %v958_v38, %v1220_v20 }
 0x16d   : > { %v497_v18 = vadd.f32 %v1257_v19, %v475_v42 }
 0x16e   : > { %v502_v13 = vpack.c.bf16 %v490_v40, %v489_v39  ;;  %v476_v45 = vmul.f32 %v1250_v7, %v454_v41 }
 0x170   : > { %851 = vmatmul.mubr.bf16.gmra.mrb[4].mxu0 %v502_v13  ;;  %v498_v46 = vadd.f32 %v1257_v19, %v476_v45 }
 0x172   : > { %v506_v47 = vpack.c.bf16 %v498_v46, %v497_v18 }
 0x174   : > { %859 = vmatmul.mubr.bf16.gmra.mrb[4].mxu1 %v506_v47 }
 0x233   : > { %v848_v20 = vpop.f32.mrb[0].mxu0 }
 0x234   : > { %v604_v36 = vadd.f32 %v848_v20, %v760_v48  ;;  %v595_v49 = vpop.f32.mrb[1].mxu0 }
 0x235   : > { %v596_v50 = vadd.f32 %v760_v48, %v595_v49  ;;  %v849_v7 = vpop.f32.mrb[2].mxu0 }
 0x236   : > { %661 = vst.msk [vmem:[%s1310_s23 + $0x10] sm:$0xff] %vm658_vm0, %v604_v36  ;;  %v607_v19 = vadd.f32 %v849_v7, %v760_v48  ;;  %v598_v53 = vpop.f32.mrb[3].mxu0 }
 0x237   : > { %659 = vst.msk [vmem:[%s1310_s23] sm:$0xff] %vm658_vm0, %v596_v50  ;;  %v599_v54 = vadd.f32 %v760_v48, %v598_v53  ;;  %v856_v55 = vpop.f32.mrb[0].mxu1 }
 0x238   : > { %662 = vst.msk [vmem:[%s1310_s23 + $0x18] sm:$0xff] %vm658_vm0, %v607_v19  ;;  %v636_v43 = vadd.f32 %v856_v55, %v760_v48  ;;  %v627_v56 = vpop.f32.mrb[1].mxu1 }
 0x239   : > { %660 = vst.msk [vmem:[%s1310_s23 + $0x8] sm:$0xff] %vm658_vm0, %v599_v54  ;;  %v628_v57 = vadd.f32 %v760_v48, %v627_v56  ;;  %v857_v58 = vpop.f32.mrb[2].mxu1 }
 0x23a   : > { %669 = vst.msk [vmem:[%s1310_s23 + $0x50] sm:$0xff] %vm658_vm0, %v636_v43  ;;  %v639_v61 = vadd.f32 %v857_v58, %v760_v48  ;;  %v630_v62 = vpop.f32.mrb[3].mxu1 }
 0x23b   : > { %667 = vst.msk [vmem:[%s1310_s23 + $0x40] sm:$0xff] %vm658_vm0, %v628_v57  ;;  %v631_v63 = vadd.f32 %v760_v48, %v630_v62 }
 0x23c   : > { %670 = vst.msk [vmem:[%s1310_s23 + $0x58] sm:$0xff] %vm658_vm0, %v639_v61 }
 0x23d   : > { %668 = vst.msk [vmem:[%s1310_s23 + $0x48] sm:$0xff] %vm658_vm0, %v631_v63 }
 0x243   : > { %v852_v0 = vpop.f32.mrb[4].mxu0 }
 0x244   : > { %v620_v1 = vadd.f32 %v852_v0, %v760_v48  ;;  %v611_v44 = vpop.f32.mrb[5].mxu0 }
 0x245   : > { %v612_v2 = vadd.f32 %v760_v48, %v611_v44  ;;  %v853_v3 = vpop.f32.mrb[6].mxu0 }
 0x246   : > { %665 = vst.msk [vmem:[%s1310_s23 + $0x30] sm:$0xff] %vm658_vm0, %v620_v1  ;;  %v623_v51 = vadd.f32 %v853_v3, %v760_v48  ;;  %v614_v6 = vpop.f32.mrb[7].mxu0 }
 0x247   : > { %663 = vst.msk [vmem:[%s1310_s23 + $0x20] sm:$0xff] %vm658_vm0, %v612_v2  ;;  %v615_v8 = vadd.f32 %v760_v48, %v614_v6  ;;  %v860_v9 = vpop.f32.mrb[4].mxu1 }
 0x248   : > { %666 = vst.msk [vmem:[%s1310_s23 + $0x38] sm:$0xff] %vm658_vm0, %v623_v51  ;;  %v652_v10 = vadd.f32 %v860_v9, %v760_v48  ;;  %v643_v11 = vpop.f32.mrb[5].mxu1 }
 0x249   : > { %664 = vst.msk [vmem:[%s1310_s23 + $0x28] sm:$0xff] %vm658_vm0, %v615_v8  ;;  %v644_v14 = vadd.f32 %v760_v48, %v643_v11  ;;  %v861_v15 = vpop.f32.mrb[6].mxu1 }
 0x24a   : > { %673 = vst.msk [vmem:[%s1310_s23 + $0x70] sm:$0xff] %vm658_vm0, %v652_v10  ;;  %v655_v16 = vadd.f32 %v861_v15, %v760_v48  ;;  %v646_v52 = vpop.f32.mrb[7].mxu1 }
 0x24b   : > { %671 = vst.msk [vmem:[%s1310_s23 + $0x60] sm:$0xff] %vm658_vm0, %v644_v14  ;;  %v647_v17 = vadd.f32 %v760_v48, %v646_v52 }
 0x24c   : > { %674 = vst.msk [vmem:[%s1310_s23 + $0x78] sm:$0xff] %vm658_vm0, %v655_v16 }
 0x24d   : > { %672 = vst.msk [vmem:[%s1310_s23 + $0x68] sm:$0xff] %vm658_vm0, %v647_v17 }
 0x24e   : > { %972 = shalt.err (!%p969_p3)
}
 0x24f   : > { %s973_s12 = scalar_lea.hbm %s1343_s22, 2048  ;;  %s977_s15 = scalar_lea.hbm %s1401_s5, 4096 }
 0x250   : > { %p974_p4 = scmp.ne.s32.totalorder %s1343_s22, %s973_s12  ;;  %p978_p9 = scmp.lt.u32.totalorder %s1343_s22, %s1401_s5 }
 0x251   : > { %p979_p10 = scmp.lt.u32.totalorder %s977_s15, %s973_s12  ;;  %p981_p12 = scmp.lt.u32.totalorder %s973_s12, %s1343_s22 }
 0x252   : > { %p975_p7 = pnand %p974_p4, %p1094_p5 }
 0x253   : > { %p980_p11 = por %p979_p10, %p978_p9 }
 0x254   : > { %p976_p8 = pneg %p975_p7 }
 0x255   : > { %p982_p13 = por %p981_p12, %p980_p11 }
 0x257   : > { %p983_p0 = pnand %p982_p13, %p976_p8 }
 0x259   : > { %986 = shalt.err (!%p983_p0)
}
 0x25a   : > { %s1024_s23 = smov 128   ;;  %s1025_s25 = smov 8  }
 0x25b   : > { %878 = dma.vmem_to_hbm [thread:$0]  (%p1094_p5), %s1345_s26, 2048, %s1343_s22, %s1355_s7, %s1024_s23, %s1024_s23, %s1025_s25  }
 0x25c PF: > { %p884_p1 = scmp.ge.s32.totalorder %s1021_s21, 2  ;;  %s704_s30 = sand.u32 1, %s1009_s18  }
 0x25d   : > { %s705_s6 = scalar_lea.sflag [#allocation3], %s704_s30 }
 0x25e   : > { %p881_p2 = pnand %p884_p1, %p1098_p6 }
 0x260   : > { %1004 = dma.done.wait (!%p881_p2), %s705_s6, 2048  }
 0x261   : > { %1006 = vsyncadd (!%p881_p2), %s705_s6, 4294965248  ;;  %p15_p3 = scmp.ge.s32.totalorder %s1081_s24, 4   ;;  %s1404_s18 = smov %s1013_s19 }
 0x262   : > { %s1405_s19 = smov %s1017_s20  ;;  %s1406_s20 = smov %s1092_s27 }
 0x263   : > { %s1407_s21 = smov %s1081_s24  ;;  %17 = sbr.rel (!%p15_p3) target bundleno = 3 (0x3), region = 75 }
 0x26a   :  { %710 = vsyncpa [#allocation3], 1 }
 0x26b   :  { %712 = vsyncpa [#allocation3 + $0x1], 1 }

// kernel: gpt_forward.3
= control target key start
LH: loop header
LB: loop body
LE: loop exit
PB: predicated region body
PF: predicated region fallthrough
CT: control target
= control target key end

     0   :  { %s6320_s29 = smov 0   ;;  %s7512_s0 = inlined_call_operand.vmem [shape: bf16[4,64,128], index: 0, kind: input, shape index: {}]   ;;  %s7513_s1 = inlined_call_operand.vmem [shape: f32[1,128], index: 1, kind: input, shape index: {}]   ;;  %s7514_s2 = inlined_call_operand.vmem [shape: f32[1,128], index: 2, kind: input, shape index: {}]   ;;  %s7515_s3 = inlined_call_operand.vmem [shape: bf16[4,128,32], index: 3, kind: input, shape index: {}]   ;;  %s7516_s4 = inlined_call_operand.vmem [shape: bf16[4,128,32], index: 4, kind: input, shape index: {}]   ;;  %s7517_s5 = inlined_call_operand.vmem [shape: bf16[4,128,32], index: 5, kind: input, shape index: {}]   ;;  %s7518_s6 = inlined_call_operand.vmem [shape: bf16[4,32,128], index: 6, kind: input, shape index: {}]   ;;  %s7519_s7 = inlined_call_operand.vmem [shape: f32[1,128], index: 7, kind: input, shape index: {}]   ;;  %s7520_s8 = inlined_call_operand.vmem [shape: f32[1,128], index: 8, kind: input, shape index: {}]   ;;  %s7521_s9 = inlined_call_operand.vmem [shape: f32[1,128], index: 9, kind: input, shape index: {}]   ;;  %s7522_s10 = inlined_call_operand.vmem [shape: bf16[128,512], index: 10, kind: input, shape index: {}]   ;;  %s7523_s11 = inlined_call_operand.vmem [shape: f32[1,512], index: 11, kind: input, shape index: {}]   ;;  %s7524_s12 = inlined_call_operand.vmem [shape: bf16[512,128], index: 12, kind: input, shape index: {}]   ;;  %s7525_s13 = inlined_call_operand.vmem [shape: f32[1,128], index: 13, kind: input, shape index: {}]   ;;  %s7526_s14 = inlined_call_operand.vmem [shape: bf16[4,64,128], index: 14, kind: output, shape index: {}]  }
   0x1 LB: > { %s4774_s30 = sadd.s32 4294967295, %s6242_s29   ;;  %p4778_p0 = scmp.ge.s32.totalorder %s6242_s29, 1  ;;  %s6242_s29 = sphi %s6320_s29, %s24_s29  }
   0x2   : > { %p412_p1 = scmp.lt.s32.totalorder %s6242_s29, 5 }
   0x4   : > { %p413_p2 = pnand %p4778_p0, %p412_p1 }
   0x5   : > { %p458_p3 = scmp.lt.s32.totalorder (!%p413_p2), %s4774_s30, 3  ;;  %v5892_v12 = vld [vmem:[%s7515_s3] sm:$0xff] (!%p413_p2)   ;;  %v5894_v46 = vld [vmem:[%s7515_s3 + $0x8] sm:$0xff] (!%p413_p2)   ;;  %v5896_v48 = vld [vmem:[%s7515_s3 + $0x10] sm:$0xff] (!%p413_p2)   ;;  %vm1283_vm0 = vcmask (!%p413_p2), 261120   ;;  %vm1389_vm2 = vcmask (!%p413_p2), 523264  }
   0x6   : > { %416 = sbr.rel (%p413_p2) target bundleno = 5227 (0x146b), region = 76  ;;  %v5893_v13 = vld [vmem:[%s7516_s4] sm:$0xff] (!%p413_p2)   ;;  %5379 = vmatprep.subr.bf16.mxu0 (!%p413_p2), %v5892_v12  ;;  %v5895_v47 = vld [vmem:[%s7516_s4 + $0x8] sm:$0xff] (!%p413_p2)   ;;  %v5897_v49 = vld [vmem:[%s7516_s4 + $0x10] sm:$0xff] (!%p413_p2)  }
   0x7   : > { %5403 = vmatprep.subr.bf16.mxu1 (!%p413_p2), %v5893_v13  ;;  %5380 = vmatpush3.bf16.msra.mxu0 (!%p413_p2), %v5892_v12  ;;  %v5898_v50 = vld [vmem:[%s7515_s3 + $0x18] sm:$0xff] (!%p413_p2)   ;;  %v5900_v52 = vld [vmem:[%s7515_s3 + $0x20] sm:$0xff] (!%p413_p2)   ;;  %v5902_v54 = vld [vmem:[%s7515_s3 + $0x28] sm:$0xff] (!%p413_p2)  }
   0x8   : > { %5404 = vmatpush3.bf16.msra.mxu1 (!%p413_p2), %v5893_v13  ;;  %5381 = vmatprep.subr.bf16.mxu0 (!%p413_p2), %v5894_v46  ;;  %v5899_v51 = vld [vmem:[%s7516_s4 + $0x18] sm:$0xff] (!%p413_p2)   ;;  %v5901_v53 = vld [vmem:[%s7516_s4 + $0x20] sm:$0xff] (!%p413_p2)   ;;  %v5903_v55 = vld [vmem:[%s7516_s4 + $0x28] sm:$0xff] (!%p413_p2)  }
   0x9   : > { %5405 = vmatprep.subr.bf16.mxu1 (!%p413_p2), %v5895_v47  ;;  %v5904_v56 = vld [vmem:[%s7515_s3 + $0x30] sm:$0xff] (!%p413_p2)   ;;  %v5906_v58 = vld [vmem:[%s7515_s3 + $0x38] sm:$0xff] (!%p413_p2)   ;;  %v6451_v60 = vld [vmem:[%s7517_s5] sm:$0xff] (!%p413_p2)  }
   0xa   : > { %v5905_v57 = vld [vmem:[%s7516_s4 + $0x30] sm:$0xff] (!%p413_p2)   ;;  %v5907_v59 = vld [vmem:[%s7516_s4 + $0x38] sm:$0xff] (!%p413_p2)  }
   0xb   : > { %5382 = vmatpush3.bf16.msra.mxu0 (!%p413_p2), %v5894_v46 }
   0xc   : > { %5406 = vmatpush3.bf16.msra.mxu1 (!%p413_p2), %v5895_v47  ;;  %5383 = vmatprep.subr.bf16.mxu0 (!%p413_p2), %v5896_v48 }
   0xd   : > { %s7528_s30 = smov (!%p458_p3, %s4774_s30), 3  ;;  %5407 = vmatprep.subr.bf16.mxu1 %v5897_v49 }
   0xe   : > { %s5015_s15 = sshll.u32 %s7528_s30, 5 }
   0xf   : > { %s462_s18 = scalar_lea.vmem %s7512_s0, %s5015_s15  ;;  %5384 = vmatpush3.bf16.msra.mxu0 %v5896_v48  ;;  %s7491_s20 = scalar_lea.vmem %s7526_s14, %s5015_s15 }
  0x10   : > { %v5026_v0 = vld [vmem:[%s462_s18] sm:$0xff]   ;;  %v5061_v1 = vld [vmem:[%s462_s18 + $0x8] sm:$0xff]   ;;  %v5062_v4 = vld [vmem:[%s462_s18 + $0x10] sm:$0xff]   ;;  %5408 = vmatpush3.bf16.msra.mxu1 %v5897_v49  ;;  %5385 = vmatprep.subr.bf16.mxu0 %v5898_v50 }
  0x11   : > { %v6336_v2 = vunpack.c.l.bf16 %v5026_v0  ;;  %v6338_v3 = vunpack.c.l.bf16 %v5061_v1  ;;  %v6342_v5 = vunpack.c.h.bf16 %v5026_v0  ;;  %v6344_v6 = vunpack.c.h.bf16 %v5061_v1  ;;  %v5063_v7 = vld [vmem:[%s462_s18 + $0x18] sm:$0xff]   ;;  %5409 = vmatprep.subr.bf16.mxu1 %v5899_v51 }
  0x12   : > { %v6348_v8 = vunpack.c.l.bf16 %v5062_v4  ;;  %v6350_v9 = vunpack.c.h.bf16 %v5062_v4  ;;  %v6354_v10 = vunpack.c.l.bf16 %v5063_v7  ;;  %v6356_v11 = vunpack.c.h.bf16 %v5063_v7 }
  0x13   : > { %796 = vadd.xlane.f32.xlu0 %v6336_v2  ;;  %800 = vadd.xlane.f32.xlu1 %v6338_v3 }
  0x14   : > { %5386 = vmatpush3.bf16.msra.mxu0 %v5898_v50  ;;  %5410 = vmatpush3.bf16.msra.mxu1 %v5899_v51 }
  0x15   : > { %5387 = vmatprep.subr.bf16.mxu0 %v5900_v52  ;;  %5411 = vmatprep.subr.bf16.mxu1 %v5901_v53 }
  0x17   : > { %798 = vadd.xlane.f32.xlu0 %v6342_v5  ;;  %802 = vadd.xlane.f32.xlu1 %v6344_v6 }
  0x18   : > { %5388 = vmatpush3.bf16.msra.mxu0 %v5900_v52  ;;  %5412 = vmatpush3.bf16.msra.mxu1 %v5901_v53 }
  0x19   : > { %5389 = vmatprep.subr.bf16.mxu0 %v5902_v54  ;;  %5413 = vmatprep.subr.bf16.mxu1 %v5903_v55 }
  0x1b   : > { %804 = vadd.xlane.f32.xlu0 %v6348_v8  ;;  %806 = vadd.xlane.f32.xlu1 %v6350_v9 }
  0x1c   : > { %5390 = vmatpush3.bf16.msra.mxu0 %v5902_v54  ;;  %5414 = vmatpush3.bf16.msra.mxu1 %v5903_v55 }
  0x1d   : > { %5391 = vmatprep.subr.bf16.mxu0 %v5904_v56  ;;  %5415 = vmatprep.subr.bf16.mxu1 %v5905_v57 }
  0x1f   : > { %808 = vadd.xlane.f32.xlu0 %v6354_v10  ;;  %810 = vadd.xlane.f32.xlu1 %v6356_v11 }
  0x20   : > { %5392 = vmatpush3.bf16.msra.mxu0 %v5904_v56  ;;  %5416 = vmatpush3.bf16.msra.mxu1 %v5905_v57 }
  0x21   : > { %5393 = vmatprep.subr.bf16.mxu0 %v5906_v58  ;;  %5417 = vmatprep.subr.bf16.mxu1 %v5907_v59 }
  0x24   : > { %5394 = vmatpush3.bf16.msra.mxu0 %v5906_v58  ;;  %5418 = vmatpush3.bf16.msra.mxu1 %v5907_v59 }
  0x25   : > { %5427 = vmatprep.subr.bf16.mxu0 %v6451_v60 }
  0xa0   : > { %v797_v14 = vpop.xlane.xlu0 %796  ;;  %v801_v15 = vpop.xlane.xlu1 %800 }
  0xa1   : > { %v813_v16 = vmul.f32 0.0078125, %v797_v14  ;;  %v815_v17 = vmul.f32 0.0078125, %v801_v15 }
  0xa3   : > { %v6367_v18 = vsub.f32 %v6336_v2, %v813_v16  ;;  %v6370_v19 = vsub.f32 %v6338_v3, %v815_v17 }
  0xa4   : > { %v799_v20 = vpop.xlane.xlu0 %798  ;;  %v803_v21 = vpop.xlane.xlu1 %802 }
  0xa5   : > { %v814_v22 = vmul.f32 0.0078125, %v799_v20  ;;  %v829_v23 = vmul.f32 %v6367_v18, %v6367_v18  ;;  %v816_v24 = vmul.f32 0.0078125, %v803_v21  ;;  %v831_v27 = vmul.f32 %v6370_v19, %v6370_v19 }
  0xa7   : > { %v6375_v25 = vsub.f32 %v6342_v5, %v814_v22  ;;  %837 = vadd.xlane.f32.xlu0 %v829_v23  ;;  %v6378_v26 = vsub.f32 %v6344_v6, %v816_v24 }
  0xa8   : > { %v805_v28 = vpop.xlane.xlu0 %804  ;;  %v807_v29 = vpop.xlane.xlu1 %806 }
  0xa9   : > { %v817_v30 = vmul.f32 0.0078125, %v805_v28  ;;  %v830_v31 = vmul.f32 %v6375_v25, %v6375_v25  ;;  %v818_v32 = vmul.f32 0.0078125, %v807_v29  ;;  %v832_v35 = vmul.f32 %v6378_v26, %v6378_v26 }
  0xab   : > { %v6385_v33 = vsub.f32 %v6348_v8, %v817_v30  ;;  %841 = vadd.xlane.f32.xlu0 %v831_v27  ;;  %839 = vadd.xlane.f32.xlu1 %v830_v31  ;;  %v6388_v34 = vsub.f32 %v6350_v9, %v818_v32 }
  0xac   : > { %v809_v36 = vpop.xlane.xlu0 %808  ;;  %v811_v37 = vpop.xlane.xlu1 %810 }
  0xad   : > { %v819_v38 = vmul.f32 0.0078125, %v809_v36  ;;  %v833_v39 = vmul.f32 %v6385_v33, %v6385_v33  ;;  %v820_v40 = vmul.f32 0.0078125, %v811_v37  ;;  %v834_v43 = vmul.f32 %v6388_v34, %v6388_v34 }
  0xaf   : > { %v6395_v41 = vsub.f32 %v6354_v10, %v819_v38  ;;  %843 = vadd.xlane.f32.xlu1 %v832_v35  ;;  %845 = vadd.xlane.f32.xlu0 %v833_v39  ;;  %v6398_v42 = vsub.f32 %v6356_v11, %v820_v40  ;;  %v4783_v35 = vld [vmem:[%s7513_s1] ss:$0 sm:$0xff] }
  0xb1   : > { %v835_v44 = vmul.f32 %v6395_v41, %v6395_v41  ;;  %v836_v45 = vmul.f32 %v6398_v42, %v6398_v42 }
  0xb3   : > { %847 = vadd.xlane.f32.xlu1 %v834_v43  ;;  %849 = vadd.xlane.f32.xlu0 %v835_v44  ;;  %v4784_v44 = vld [vmem:[%s7514_s2] ss:$0 sm:$0xff] }
  0xb7   : > { %851 = vadd.xlane.f32.xlu1 %v836_v45 }
 0x134   : > { %v838_v61 = vpop.xlane.xlu0 %837 }
 0x135   : > { %v853_v62 = vmul.f32 0.0078125, %v838_v61 }
 0x137   : > { %v861_v63 = vadd.f32 1e-05, %v853_v62 }
 0x138   : > { %v840_v0 = vpop.xlane.xlu1 %839  ;;  %v842_v1 = vpop.xlane.xlu0 %841 }
 0x139   : > { %6076 = vrsqrt.f32 %v861_v63  ;;  %v854_v4 = vmul.f32 0.0078125, %v840_v0  ;;  %v855_v7 = vmul.f32 0.0078125, %v842_v1 }
 0x13b   : > { %v862_v12 = vadd.f32 1e-05, %v854_v4  ;;  %v863_v13 = vadd.f32 1e-05, %v855_v7  ;;  %v5910_v7 = vld [vmem:[%s7517_s5 + $0x10] sm:$0xff]  }
 0x13c   : > { %v844_v14 = vpop.xlane.xlu1 %843  ;;  %v846_v15 = vpop.xlane.xlu0 %845 }
 0x13d   : > { %6078 = vrsqrt.f32 %v862_v12  ;;  %v856_v16 = vmul.f32 0.0078125, %v844_v14  ;;  %v857_v17 = vmul.f32 0.0078125, %v846_v15  ;;  %v5912_v14 = vld [vmem:[%s7517_s5 + $0x20] sm:$0xff]   ;;  %v5913_v15 = vld [vmem:[%s7517_s5 + $0x28] sm:$0xff]  }
 0x13e   : > { %6080 = vrsqrt.f32 %v863_v13 }
 0x13f   : > { %v864_v20 = vadd.f32 1e-05, %v856_v16  ;;  %v865_v21 = vadd.f32 1e-05, %v857_v17  ;;  %v5914_v16 = vld [vmem:[%s7517_s5 + $0x30] sm:$0xff]   ;;  %v5915_v17 = vld [vmem:[%s7517_s5 + $0x38] sm:$0xff]  }
 0x140   : > { %v848_v22 = vpop.xlane.xlu1 %847  ;;  %v850_v23 = vpop.xlane.xlu0 %849 }
 0x141   : > { %6082 = vrsqrt.f32 %v864_v20  ;;  %v858_v24 = vmul.f32 0.0078125, %v848_v22  ;;  %v859_v27 = vmul.f32 0.0078125, %v850_v23  ;;  %v5916_v20 = vld [vmem:[%s7516_s4 + $0x40] sm:$0xff]   ;;  %v5918_v22 = vld [vmem:[%s7516_s4 + $0x50] sm:$0xff]   ;;  %v5919_v23 = vld [vmem:[%s7516_s4 + $0x58] sm:$0xff]  }
 0x142   : > { %6084 = vrsqrt.f32 %v865_v21  ;;  %v5917_v21 = vld [vmem:[%s7516_s4 + $0x48] sm:$0xff]  }
 0x143   : > { %v6077_v28 = vpop.eup %6076  ;;  %v866_v29 = vadd.f32 1e-05, %v858_v24  ;;  %v867_v30 = vadd.f32 1e-05, %v859_v27  ;;  %v5920_v24 = vld [vmem:[%s7516_s4 + $0x60] sm:$0xff]   ;;  %v5921_v27 = vld [vmem:[%s7516_s4 + $0x68] sm:$0xff]  }
 0x144   : > { %v877_v31 = vmul.f32 %v6077_v28, %v6367_v18  ;;  %v852_v32 = vpop.xlane.xlu1 %851  ;;  %v5922_v28 = vld [vmem:[%s7516_s4 + $0x70] sm:$0xff]  }
 0x145   : > { %6086 = vrsqrt.f32 %v866_v29  ;;  %v860_v36 = vmul.f32 0.0078125, %v852_v32  ;;  %v5923_v29 = vld [vmem:[%s7516_s4 + $0x78] sm:$0xff]  }
 0x146   : > { %6088 = vrsqrt.f32 %v867_v30  ;;  %v891_v40 = vmul.f32 %v4783_v35, %v877_v31 }
 0x147   : > { %v6079_v37 = vpop.eup %6078  ;;  %v868_v38 = vadd.f32 1e-05, %v860_v36 }
 0x148   : > { %v6081_v39 = vpop.eup %6080  ;;  %v878_v43 = vmul.f32 %v6079_v37, %v6375_v25  ;;  %v905_v48 = vadd.f32 %v4784_v44, %v891_v40 }
 0x149   : > { %v879_v18 = vmul.f32 %v6081_v39, %v6370_v19  ;;  %6090 = vrsqrt.f32 %v868_v38 }
 0x14a   : > { %v892_v45 = vmul.f32 %v4783_v35, %v878_v43 }
 0x14b   : > { %v6083_v46 = vpop.eup %6082  ;;  %v893_v50 = vmul.f32 %v4783_v35, %v879_v18 }
 0x14c   : > { %v6085_v47 = vpop.eup %6084  ;;  %v906_v49 = vadd.f32 %v4784_v44, %v892_v45  ;;  %v880_v51 = vmul.f32 %v6083_v46, %v6378_v26 }
 0x14d   : > { %v881_v52 = vmul.f32 %v6085_v47, %v6385_v33  ;;  %v907_v57 = vadd.f32 %v4784_v44, %v893_v50  ;;  %v5909_v33 = vld [vmem:[%s7517_s5 + $0x8] sm:$0xff]  }
 0x14e   : > { %v6465_v53 = vpack.c.bf16 %v906_v49, %v905_v48  ;;  %v894_v25 = vmul.f32 %v4783_v35, %v880_v51 }
 0x14f   : > { %v6087_v54 = vpop.eup %6086  ;;  %v895_v55 = vmul.f32 %v4783_v35, %v881_v52 }
 0x150   : > { %v6089_v56 = vpop.eup %6088  ;;  %v908_v58 = vadd.f32 %v4784_v44, %v894_v25  ;;  %v882_v19 = vmul.f32 %v6087_v54, %v6388_v34  ;;  %5395 = vmatprep.mubr.bf16.mxu0 %v6465_v53  ;;  %5419 = vmatprep.mubr.bf16.mxu1 %v6465_v53 }
 0x151   : > { %v883_v59 = vmul.f32 %v6089_v56, %v6395_v41  ;;  %v909_v63 = vadd.f32 %v4784_v44, %v895_v55 }
 0x152   : > { %v6471_v61 = vpack.c.bf16 %v908_v58, %v907_v57  ;;  %v896_v26 = vmul.f32 %v4783_v35, %v882_v19 }
 0x153   : > { %v6091_v62 = vpop.eup %6090  ;;  %v897_v1 = vmul.f32 %v4783_v35, %v883_v59 }
 0x154   : > { %v910_v0 = vadd.f32 %v4784_v44, %v896_v26  ;;  %v884_v4 = vmul.f32 %v6091_v62, %v6398_v42  ;;  %5396 = vmatmul.mubr.bf16.vlgmr.msra.gmra.mrb[0].mxu0 %v6471_v61  ;;  %5420 = vmatmul.mubr.bf16.vlgmr.msra.gmra.mrb[0].mxu1 %v6471_v61 }
 0x155   : > { %5428 = vmatpush3.bf16.msra.mxu0 %v6451_v60  ;;  %v911_v12 = vadd.f32 %v4784_v44, %v897_v1  ;;  %v5911_v60 = vld [vmem:[%s7517_s5 + $0x18] sm:$0xff]  }
 0x156   : > { %v6480_v34 = vpack.c.bf16 %v910_v0, %v909_v63  ;;  %v898_v41 = vmul.f32 %v4783_v35, %v884_v4  ;;  %5429 = vmatprep.subr.bf16.mxu0 %v5909_v33 }
 0x158   : > { %v912_v13 = vadd.f32 %v4784_v44, %v898_v41  ;;  %5399 = vmatprep.mubr.bf16.mxu0 %v6480_v34  ;;  %5423 = vmatprep.mubr.bf16.mxu1 %v6480_v34 }
 0x159   : > { %5430 = vmatpush3.bf16.msra.mxu0 %v5909_v33 }
 0x15a   : > { %v6487_v42 = vpack.c.bf16 %v912_v13, %v911_v12  ;;  %5431 = vmatprep.subr.bf16.mxu0 %v5910_v7 }
 0x15c   : > { %5400 = vmatmul.mubr.bf16.gmra.mrb[4].mxu0 %v6487_v42  ;;  %5424 = vmatmul.mubr.bf16.gmra.mrb[4].mxu1 %v6487_v42 }
 0x15d   : > { %5432 = vmatpush3.bf16.msra.mxu0 %v5910_v7  ;;  %5443 = vmatprep.mubr.bf16.mxu0 %v6465_v53 }
 0x15e   : > { %5433 = vmatprep.subr.bf16.mxu0 %v5911_v60 }
 0x161   : > { %5434 = vmatpush3.bf16.msra.mxu0 %v5911_v60 }
 0x162   : > { %5435 = vmatprep.subr.bf16.mxu0 %v5912_v14 }
 0x165   : > { %5436 = vmatpush3.bf16.msra.mxu0 %v5912_v14 }
 0x166   : > { %5437 = vmatprep.subr.bf16.mxu0 %v5913_v15 }
 0x169   : > { %5438 = vmatpush3.bf16.msra.mxu0 %v5913_v15 }
 0x16a   : > { %5439 = vmatprep.subr.bf16.mxu0 %v5914_v16 }
 0x16d   : > { %5440 = vmatpush3.bf16.msra.mxu0 %v5914_v16 }
 0x16e   : > { %5441 = vmatprep.subr.bf16.mxu0 %v5915_v17 }
 0x171   : > { %5442 = vmatpush3.bf16.msra.mxu0 %v5915_v17 }
 0x172   : > { %5507 = vmatprep.subr.bf16.mxu0 %v5916_v20 }
 0x174   : > { %5444 = vmatmul.mubr.bf16.vlgmr.msra.gmra.mrb[8].mxu0 %v6471_v61 }
 0x175   : > { %5447 = vmatprep.mubr.bf16.mxu0 %v6480_v34  ;;  %5508 = vmatpush3.bf16.msra.mxu0 %v5916_v20 }
 0x176   : > { %5509 = vmatprep.subr.bf16.mxu0 %v5917_v21 }
 0x179   : > { %5510 = vmatpush3.bf16.msra.mxu0 %v5917_v21 }
 0x17a   : > { %5511 = vmatprep.subr.bf16.mxu0 %v5918_v22 }
 0x17c   : > { %5448 = vmatmul.mubr.bf16.gmra.mrb[12].mxu0 %v6487_v42 }
 0x17d   : > { %5512 = vmatpush3.bf16.msra.mxu0 %v5918_v22  ;;  %5523 = vmatprep.mubr.bf16.mxu0 %v6465_v53 }
 0x17e   : > { %5513 = vmatprep.subr.bf16.mxu0 %v5919_v23 }
 0x181   : > { %5514 = vmatpush3.bf16.msra.mxu0 %v5919_v23 }
 0x182   : > { %5515 = vmatprep.subr.bf16.mxu0 %v5920_v24 }
 0x185   : > { %5516 = vmatpush3.bf16.msra.mxu0 %v5920_v24 }
 0x186   : > { %5517 = vmatprep.subr.bf16.mxu0 %v5921_v27 }
 0x189   : > { %5518 = vmatpush3.bf16.msra.mxu0 %v5921_v27 }
 0x18a   : > { %5519 = vmatprep.subr.bf16.mxu0 %v5922_v28 }
 0x18d   : > { %5520 = vmatpush3.bf16.msra.mxu0 %v5922_v28 }
 0x18e   : > { %5521 = vmatprep.subr.bf16.mxu0 %v5923_v29 }
 0x191   : > { %5522 = vmatpush3.bf16.msra.mxu0 %v5923_v29 }
 0x194   : > { %5524 = vmatmul.mubr.bf16.vlgmr.msra.gmra.mrb[16].mxu0 %v6471_v61 }
 0x195   : > { %5527 = vmatprep.mubr.bf16.mxu0 %v6480_v34 }
 0x19c   : > { %5528 = vmatmul.mubr.bf16.gmra.mrb[20].mxu0 %v6487_v42 }
 0x227   : > { %v5397_v30 = vpop.f32.mrb[0].mxu0  ;;  %v5421_v31 = vpop.f32.mrb[0].mxu1 }
 0x228   : > { %v1018_v32 = vpop.f32.mrb[1].mxu0  ;;  %v1131_v35 = vpop.f32.mrb[1].mxu1 }
 0x229   : > { %v5398_v36 = vpop.f32.mrb[2].mxu0  ;;  %v5422_v37 = vpop.f32.mrb[2].mxu1 }
 0x22a   : > { %v1276_v38 = vpack.c.bf16 %v5398_v36, %v5397_v30  ;;  %v1280_v39 = vpack.c.bf16 %v5422_v37, %v5421_v31  ;;  %v1021_v40 = vpop.f32.mrb[3].mxu0  ;;  %v1134_v43 = vpop.f32.mrb[3].mxu1  ;;  %v917_v36 = vlaneseq }
 0x22b   : > { %v1275_v44 = vpack.c.bf16 %v1021_v40, %v1018_v32  ;;  %v1279_v18 = vpack.c.bf16 %v1134_v43, %v1131_v35 }
 0x22c   : > { %v1300_v58 = vsel %vm1283_vm0, %v1280_v39, 0  ;;  %v6558_v37 = vshrl.u32 %v917_v36, 7 }
 0x22d   : > { %v1297_v45 = vsel %vm1283_vm0, %v1279_v18, 0  ;;  %5867 = vmatprep.subr.msk.bf16.mxu1 %vm1283_vm0, %v1279_v18  ;;  %5459 = vmatprep.mubr.msk.bf16.mxu1 %vm1283_vm0, %v1275_v44 }
 0x22e   : > { %5452 = vmatpush3.bf16.xpose.msra.mxu1 %v1297_v45  ;;  %v6566_v40 = vadd.s32 16, %v6558_v37  ;;  %v6571_v18 = vadd.s32 24, %v6558_v37 }
 0x22f   : > { %v5401_v46 = vpop.f32.mrb[4].mxu0  ;;  %v5425_v47 = vpop.f32.mrb[4].mxu1  ;;  %5868 = vmatprep.subr.msk.bf16.mxu1 %vm1283_vm0, %v1280_v39  ;;  %v6563_v39 = vadd.s32 8, %v6558_v37 }
 0x230   : > { %v1034_v48 = vpop.f32.mrb[5].mxu0  ;;  %v1147_v49 = vpop.f32.mrb[5].mxu1 }
 0x231   : > { %v5402_v50 = vpop.f32.mrb[6].mxu0  ;;  %v5426_v51 = vpop.f32.mrb[6].mxu1 }
 0x232   : > { %v1278_v52 = vpack.c.bf16 %v5402_v50, %v5401_v46  ;;  %v1282_v25 = vpack.c.bf16 %v5426_v51, %v5425_v47  ;;  %v1037_v54 = vpop.f32.mrb[7].mxu0  ;;  %v1150_v55 = vpop.f32.mrb[7].mxu1 }
 0x233   : > { %v1277_v56 = vpack.c.bf16 %v1037_v54, %v1034_v48  ;;  %v1281_v57 = vpack.c.bf16 %v1150_v55, %v1147_v49 }
 0x234   : > { %v1306_v59 = vsel %vm1283_vm0, %v1282_v25, 0 }
 0x235   : > { %v1303_v19 = vsel %vm1283_vm0, %v1281_v57, 0 }
 0x236   : > { %5454 = vmatpush3.bf16.xpose.msra.mxu1 %v1300_v58  ;;  %v6597_v58 = vadd.s32 48, %v6558_v37 }
 0x237   : > { %5869 = vmatprep.subr.msk.bf16.mxu1 %vm1283_vm0, %v1281_v57  ;;  %v6594_v57 = vadd.s32 40, %v6558_v37 }
 0x23e   : > { %5456 = vmatpush3.bf16.xpose.msra.mxu1 %v1303_v19 }
 0x23f   : > { %5870 = vmatprep.subr.msk.bf16.mxu1 %vm1283_vm0, %v1282_v25  ;;  %v6584_v25 = vadd.s32 32, %v6558_v37 }
 0x246   : > { %5458 = vmatpush3.bf16.xpose.msra.mxu1 %v1306_v59 }
 0x247   : > { %v5445_v26 = vpop.f32.mrb[8].mxu0 }
 0x248   : > { %v1244_v33 = vpop.f32.mrb[9].mxu0 }
 0x249   : > { %v5446_v62 = vpop.f32.mrb[10].mxu0 }
 0x24a   : > { %v1483_v63 = vpack.c.bf16 %v5446_v62, %v5445_v26  ;;  %v1247_v0 = vpop.f32.mrb[11].mxu0  ;;  %v6606_v62 = vadd.s32 56, %v6558_v37 }
 0x24b   : > { %v1482_v1 = vpack.c.bf16 %v1247_v0, %v1244_v33 }
 0x24d   : > { %5467 = vmatprep.subr.bf16.mxu1 %v1482_v1  ;;  %5460 = vmatmul.mubr.msk.bf16.vlgmr.msra.gmra.mrb[8].mxu1 %vm1283_vm0, %v1276_v38  ;;  %v6560_v38 = vand.u32 127, %v917_v36 }
 0x24e   : > { %5463 = vmatprep.mubr.msk.bf16.mxu1 %vm1283_vm0, %v1277_v56  ;;  %5468 = vmatpush3.bf16.msra.mxu1 %v1482_v1 }
 0x24f   : > { %v5449_v4 = vpop.f32.mrb[12].mxu0  ;;  %5469 = vmatprep.subr.bf16.mxu1 %v1483_v63  ;;  %vm928_vm1 = vcmp.ge.s32.totalorder %v6558_v37, %v6560_v38  ;;  %vm929_vm3 = vcmp.ge.s32.totalorder %v6563_v39, %v6560_v38  ;;  %vm930_vm4 = vcmp.ge.s32.totalorder %v6566_v40, %v6560_v38  ;;  %vm931_vm5 = vcmp.ge.s32.totalorder %v6571_v18, %v6560_v38 }
 0x250   : > { %v1260_v41 = vpop.f32.mrb[13].mxu0  ;;  %vm932_vm6 = vcmp.ge.s32.totalorder %v6584_v25, %v6560_v38  ;;  %vm933_vm7 = vcmp.ge.s32.totalorder %v6594_v57, %v6560_v38  ;;  %vm934_vm8 = vcmp.ge.s32.totalorder %v6597_v58, %v6560_v38  ;;  %vm935_vm9 = vcmp.ge.s32.totalorder %v6606_v62, %v6560_v38 }
 0x251   : > { %v5450_v7 = vpop.f32.mrb[14].mxu0 }
 0x252   : > { %v1485_v12 = vpack.c.bf16 %v5450_v7, %v5449_v4  ;;  %v1263_v13 = vpop.f32.mrb[15].mxu0  ;;  %5470 = vmatpush3.bf16.msra.mxu1 %v1483_v63 }
 0x253   : > { %v1484_v60 = vpack.c.bf16 %v1263_v13, %v1260_v41 }
 0x255   : > { %5471 = vmatprep.subr.bf16.mxu1 %v1484_v60  ;;  %5464 = vmatmul.mubr.msk.bf16.gmra.mrb[12].mxu1 %vm1283_vm0, %v1278_v52 }
 0x256   : > { %5472 = vmatpush3.bf16.msra.mxu1 %v1484_v60 }
 0x257   : > { %5473 = vmatprep.subr.bf16.mxu1 %v1485_v12 }
 0x25a   : > { %5474 = vmatpush3.bf16.msra.mxu1 %v1485_v12 }
 0x267   : > { %v5525_v14 = vpop.f32.mrb[16].mxu0 }
 0x268   : > { %v1762_v15 = vpop.f32.mrb[17].mxu0 }
 0x269   : > { %v5526_v16 = vpop.f32.mrb[18].mxu0 }
 0x26a   : > { %v1911_v17 = vpack.c.bf16 %v5526_v16, %v5525_v14  ;;  %v1765_v20 = vpop.f32.mrb[19].mxu0 }
 0x26b   : > { %v1910_v21 = vpack.c.bf16 %v1765_v20, %v1762_v15 }
 0x26c   : > { %v1930_v31 = vsel %vm1283_vm0, %v1911_v17, 0 }
 0x26d   : > { %v1927_v22 = vsel %vm1283_vm0, %v1910_v21, 0  ;;  %5871 = vmatprep.subr.msk.bf16.mxu0 %vm1283_vm0, %v1910_v21 }
 0x26e   : > { %5556 = vmatpush3.bf16.xpose.msra.mxu0 %v1927_v22 }
 0x26f   : > { %v5529_v23 = vpop.f32.mrb[20].mxu0  ;;  %5872 = vmatprep.subr.msk.bf16.mxu0 %vm1283_vm0, %v1911_v17 }
 0x270   : > { %v1778_v24 = vpop.f32.mrb[21].mxu0 }
 0x271   : > { %v5530_v27 = vpop.f32.mrb[22].mxu0 }
 0x272   : > { %v1913_v28 = vpack.c.bf16 %v5530_v27, %v5529_v23  ;;  %v1781_v29 = vpop.f32.mrb[23].mxu0 }
 0x273   : > { %v1912_v30 = vpack.c.bf16 %v1781_v29, %v1778_v24 }
 0x274   : > { %v1936_v35 = vsel %vm1283_vm0, %v1913_v28, 0 }
 0x275   : > { %v1933_v32 = vsel %vm1283_vm0, %v1912_v30, 0 }
 0x276   : > { %5558 = vmatpush3.bf16.xpose.msra.mxu0 %v1930_v31 }
 0x277   : > { %5873 = vmatprep.subr.msk.bf16.mxu0 %vm1283_vm0, %v1912_v30 }
 0x27e   : > { %5560 = vmatpush3.bf16.xpose.msra.mxu0 %v1933_v32 }
 0x27f   : > { %5874 = vmatprep.subr.msk.bf16.mxu0 %vm1283_vm0, %v1913_v28 }
 0x286   : > { %5562 = vmatpush3.bf16.xpose.msra.mxu0 %v1936_v35 }
 0x320   : > { %v5461_v43 = vpop.f32.mrb[8].mxu1 }
 0x321   : > { %v1342_v44 = vpop.f32.mrb[9].mxu1  ;;  %v1375_v45 = vmul.f32 0.17677669, %v5461_v43 }
 0x322   : > { %v1373_v46 = vmul.f32 0.17677669, %v1342_v44  ;;  %v5462_v47 = vpop.f32.mrb[10].mxu1 }
 0x323   : > { %v1345_v48 = vpop.f32.mrb[11].mxu1  ;;  %v1376_v49 = vmul.f32 0.17677669, %v5462_v47  ;;  %v1383_v55 = vsel %vm930_vm4, %v1375_v45, -1e+30 }
 0x324   : > { %v1374_v50 = vmul.f32 0.17677669, %v1345_v48  ;;  %v1381_v51 = vsel %vm928_vm1, %v1373_v46, -1e+30  ;;  %v1396_v33 = vsel %vm1389_vm2, %v1383_v55, -inf }
 0x325   : > { %v1390_v52 = vsel %vm1389_vm2, %v1381_v51, -inf  ;;  %v1384_v59 = vsel %vm931_vm5, %v1376_v49, -1e+30 }
 0x326   : > { %1391 = vmax.xlane.f32.xlu0 %v1390_v52  ;;  %v1382_v54 = vsel %vm929_vm3, %v1374_v50, -1e+30  ;;  %v1399_v41 = vsel %vm1389_vm2, %v1384_v59, -inf }
 0x327   : > { %v1393_v56 = vsel %vm1389_vm2, %v1382_v54, -inf }
 0x328   : > { %1394 = vmax.xlane.f32.xlu1 %v1393_v56  ;;  %v5465_v19 = vpop.f32.mrb[12].mxu1 }
 0x329   : > { %v1358_v26 = vpop.f32.mrb[13].mxu1  ;;  %v1379_v63 = vmul.f32 0.17677669, %v5465_v19 }
 0x32a   : > { %v1377_v0 = vmul.f32 0.17677669, %v1358_v26  ;;  %1397 = vmax.xlane.f32.xlu0 %v1396_v33  ;;  %v5466_v1 = vpop.f32.mrb[14].mxu1 }
 0x32b   : > { %v1361_v4 = vpop.f32.mrb[15].mxu1  ;;  %v1380_v7 = vmul.f32 0.17677669, %v5466_v1  ;;  %v1387_v15 = vsel %vm934_vm8, %v1379_v63, -1e+30 }
 0x32c   : > { %v1378_v12 = vmul.f32 0.17677669, %v1361_v4  ;;  %1400 = vmax.xlane.f32.xlu1 %v1399_v41  ;;  %v1385_v13 = vsel %vm932_vm6, %v1377_v0, -1e+30  ;;  %v1408_v20 = vsel %vm1389_vm2, %v1387_v15, -inf }
 0x32d   : > { %v1402_v60 = vsel %vm1389_vm2, %v1385_v13, -inf  ;;  %v1388_v17 = vsel %vm935_vm9, %v1380_v7, -1e+30 }
 0x32e   : > { %1403 = vmax.xlane.f32.xlu0 %v1402_v60  ;;  %v1386_v14 = vsel %vm933_vm7, %v1378_v12, -1e+30  ;;  %v1411_v21 = vsel %vm1389_vm2, %v1388_v17, -inf }
 0x32f   : > { %v1405_v16 = vsel %vm1389_vm2, %v1386_v14, -inf }
 0x330   : > { %1406 = vmax.xlane.f32.xlu1 %v1405_v16 }
 0x332   : > { %1409 = vmax.xlane.f32.xlu0 %v1408_v20 }
 0x334   : > { %1412 = vmax.xlane.f32.xlu1 %v1411_v21 }
 0x3b3   : > { %v1392_v22 = vpop.xlane.xlu0 %1391 }
 0x3b4   : > { %v1414_v23 = vsub.f32 %v1381_v51, %v1392_v22 }
 0x3b5   : > { %v1395_v24 = vpop.xlane.xlu1 %1394 }
 0x3b6   : > { %v1422_v27 = vmul.f32 1.442695, %v1414_v23  ;;  %v1415_v28 = vsub.f32 %v1382_v54, %v1395_v24 }
 0x3b7   : > { %v1398_v29 = vpop.xlane.xlu0 %1397 }
 0x3b8   : > { %6092 = vpow2.f32 %v1422_v27  ;;  %v1424_v30 = vmul.f32 1.442695, %v1415_v28  ;;  %v1416_v31 = vsub.f32 %v1383_v55, %v1398_v29 }
 0x3b9   : > { %v1401_v32 = vpop.xlane.xlu1 %1400 }
 0x3ba   : > { %6094 = vpow2.f32 %v1424_v30  ;;  %v1426_v35 = vmul.f32 1.442695, %v1416_v31  ;;  %v1417_v36 = vsub.f32 %v1384_v59, %v1401_v32 }
 0x3bb   : > { %v1404_v43 = vpop.xlane.xlu0 %1403 }
 0x3bc   : > { %6096 = vpow2.f32 %v1426_v35  ;;  %v1428_v44 = vmul.f32 1.442695, %v1417_v36  ;;  %v1418_v45 = vsub.f32 %v1385_v13, %v1404_v43 }
 0x3bd   : > { %v1407_v46 = vpop.xlane.xlu1 %1406 }
 0x3be   : > { %6098 = vpow2.f32 %v1428_v44  ;;  %v1430_v47 = vmul.f32 1.442695, %v1418_v45  ;;  %v1419_v48 = vsub.f32 %v1386_v14, %v1407_v46 }
 0x3bf   : > { %v1410_v49 = vpop.xlane.xlu0 %1409 }
 0x3c0   : > { %6100 = vpow2.f32 %v1430_v47  ;;  %v1432_v50 = vmul.f32 1.442695, %v1419_v48  ;;  %v1420_v51 = vsub.f32 %v1387_v15, %v1410_v49  ;;  %v5925_v49 = vld [vmem:[%s7515_s3 + $0x48] sm:$0xff]  }
 0x3c1   : > { %v1413_v52 = vpop.xlane.xlu1 %1412 }
 0x3c2   : > { %v6093_v54 = vpop.eup %6092  ;;  %6102 = vpow2.f32 %v1432_v50  ;;  %v1434_v55 = vmul.f32 1.442695, %v1420_v51  ;;  %v1421_v56 = vsub.f32 %v1388_v17, %v1413_v52  ;;  %v5924_v17 = vld [vmem:[%s7515_s3 + $0x40] sm:$0xff]  }
 0x3c3   : > { %v1438_v19 = vsel %vm1389_vm2, %v6093_v54, 0.0  ;;  %5483 = vmatprep.subr.bf16.mxu1 %v5924_v17 }
 0x3c4   : > { %v6095_v59 = vpop.eup %6094  ;;  %6104 = vpow2.f32 %v1434_v55  ;;  %v1436_v26 = vmul.f32 1.442695, %v1421_v56  ;;  %1439 = vadd.xlane.f32.xlu0 %v1438_v19  ;;  %v5926_v56 = vld [vmem:[%s7515_s3 + $0x50] sm:$0xff]  }
 0x3c5   : > { %v1441_v33 = vsel %vm1389_vm2, %v6095_v59, 0.0 }
 0x3c6   : > { %v6097_v63 = vpop.eup %6096  ;;  %6106 = vpow2.f32 %v1436_v26  ;;  %1442 = vadd.xlane.f32.xlu1 %v1441_v33 }
 0x3c7   : > { %v1444_v0 = vsel %vm1389_vm2, %v6097_v63, 0.0 }
 0x3c8   : > { %v6099_v1 = vpop.eup %6098  ;;  %1445 = vadd.xlane.f32.xlu0 %v1444_v0  ;;  %v5928_v0 = vld [vmem:[%s7515_s3 + $0x60] sm:$0xff]  }
 0x3c9   : > { %v1447_v4 = vsel %vm1389_vm2, %v6099_v1, 0.0 }
 0x3ca   : > { %v6101_v41 = vpop.eup %6100  ;;  %1448 = vadd.xlane.f32.xlu1 %v1447_v4  ;;  %v5930_v4 = vld [vmem:[%s7515_s3 + $0x70] sm:$0xff]  }
 0x3cb   : > { %v1450_v7 = vsel %vm1389_vm2, %v6101_v41, 0.0 }
 0x3cc   : > { %v6103_v12 = vpop.eup %6102  ;;  %1451 = vadd.xlane.f32.xlu0 %v1450_v7  ;;  %v5932_v7 = vld [vmem:[%s7517_s5 + $0x40] sm:$0xff]  }
 0x3cd   : > { %v1453_v13 = vsel %vm1389_vm2, %v6103_v12, 0.0 }
 0x3ce   : > { %v6105_v60 = vpop.eup %6104  ;;  %1454 = vadd.xlane.f32.xlu1 %v1453_v13  ;;  %v5934_v13 = vld [vmem:[%s7517_s5 + $0x50] sm:$0xff]  }
 0x3cf   : > { %v1456_v14 = vsel %vm1389_vm2, %v6105_v60, 0.0 }
 0x3d0   : > { %v6107_v15 = vpop.eup %6106  ;;  %1457 = vadd.xlane.f32.xlu0 %v1456_v14  ;;  %v5936_v14 = vld [vmem:[%s7517_s5 + $0x60] sm:$0xff]  }
 0x3d1   : > { %v1459_v16 = vsel %vm1389_vm2, %v6107_v15, 0.0 }
 0x3d2   : > { %1460 = vadd.xlane.f32.xlu1 %v1459_v16  ;;  %v5938_v16 = vld [vmem:[%s7517_s5 + $0x70] sm:$0xff]  }
 0x451   : > { %v1440_v20 = vpop.xlane.xlu0 %1439 }
 0x452   : > { %6108 = vrcp.f32 %v1440_v20 }
 0x453   : > { %v1443_v21 = vpop.xlane.xlu1 %1442 }
 0x454   : > { %6110 = vrcp.f32 %v1443_v21 }
 0x455   : > { %v1446_v22 = vpop.xlane.xlu0 %1445 }
 0x456   : > { %6112 = vrcp.f32 %v1446_v22 }
 0x457   : > { %v1449_v23 = vpop.xlane.xlu1 %1448 }
 0x458   : > { %6114 = vrcp.f32 %v1449_v23 }
 0x459   : > { %v1452_v24 = vpop.xlane.xlu0 %1451 }
 0x45a   : > { %6116 = vrcp.f32 %v1452_v24 }
 0x45b   : > { %v1455_v27 = vpop.xlane.xlu1 %1454 }
 0x45c   : > { %v6109_v28 = vpop.eup %6108  ;;  %6118 = vrcp.f32 %v1455_v27 }
 0x45d   : > { %v1458_v29 = vpop.xlane.xlu0 %1457  ;;  %v1463_v32 = vmul.f32 %v6109_v28, %v6093_v54 }
 0x45e   : > { %v6111_v30 = vpop.eup %6110  ;;  %6120 = vrcp.f32 %v1458_v29 }
 0x45f   : > { %v1461_v31 = vpop.xlane.xlu1 %1460  ;;  %v1465_v35 = vmul.f32 %v6111_v30, %v6095_v59 }
 0x460   : > { %v6113_v36 = vpop.eup %6112  ;;  %6122 = vrcp.f32 %v1461_v31 }
 0x461   : > { %v1478_v43 = vpack.c.bf16 %v1465_v35, %v1463_v32  ;;  %v1467_v45 = vmul.f32 %v6113_v36, %v6097_v63  ;;  %v5927_v63 = vld [vmem:[%s7515_s3 + $0x58] sm:$0xff]  }
 0x462   : > { %v6115_v44 = vpop.eup %6114 }
 0x463   : > { %v1469_v46 = vmul.f32 %v6115_v44, %v6099_v1  ;;  %5475 = vmatprep.mubr.msk.bf16.mxu1 %vm1389_vm2, %v1478_v43  ;;  %v5929_v1 = vld [vmem:[%s7515_s3 + $0x68] sm:$0xff]  }
 0x464   : > { %v6117_v47 = vpop.eup %6116 }
 0x465   : > { %v1479_v48 = vpack.c.bf16 %v1469_v46, %v1467_v45  ;;  %v1471_v51 = vmul.f32 %v6117_v47, %v6101_v41  ;;  %v5931_v41 = vld [vmem:[%s7515_s3 + $0x78] sm:$0xff]  }
 0x466   : > { %v6119_v50 = vpop.eup %6118 }
 0x467   : > { %5476 = vmatmul.mubr.msk.bf16.vlgmr.msra.gmra.mrb[16].mxu1 %vm1389_vm2, %v1479_v48  ;;  %v1473_v52 = vmul.f32 %v6119_v50, %v6103_v12  ;;  %v5933_v12 = vld [vmem:[%s7517_s5 + $0x48] sm:$0xff]  }
 0x468   : > { %v6121_v54 = vpop.eup %6120  ;;  %5484 = vmatpush3.bf16.msra.mxu1 %v5924_v17  ;;  %v5939_v17 = vld [vmem:[%s7517_s5 + $0x78] sm:$0xff]  }
 0x469   : > { %5485 = vmatprep.subr.bf16.mxu1 %v5925_v49  ;;  %v1480_v55 = vpack.c.bf16 %v1473_v52, %v1471_v51  ;;  %v1475_v59 = vmul.f32 %v6121_v54, %v6105_v60  ;;  %v5935_v60 = vld [vmem:[%s7517_s5 + $0x58] sm:$0xff]  }
 0x46a   : > { %v6123_v19 = vpop.eup %6122 }
 0x46b   : > { %5479 = vmatprep.mubr.msk.bf16.mxu1 %vm1389_vm2, %v1480_v55  ;;  %v1477_v26 = vmul.f32 %v6123_v19, %v6107_v15  ;;  %v5937_v15 = vld [vmem:[%s7517_s5 + $0x68] sm:$0xff]  }
 0x46c   : > { %5486 = vmatpush3.bf16.msra.mxu1 %v5925_v49 }
 0x46d   : > { %5487 = vmatprep.subr.bf16.mxu1 %v5926_v56  ;;  %v1481_v33 = vpack.c.bf16 %v1477_v26, %v1475_v59 }
 0x46f   : > { %5480 = vmatmul.mubr.msk.bf16.gmra.mrb[20].mxu1 %vm1389_vm2, %v1481_v33 }
 0x470   : > { %5488 = vmatpush3.bf16.msra.mxu1 %v5926_v56  ;;  %5499 = vmatprep.mubr.bf16.mxu1 %v6465_v53 }
 0x471   : > { %5489 = vmatprep.subr.bf16.mxu1 %v5927_v63 }
 0x474   : > { %5490 = vmatpush3.bf16.msra.mxu1 %v5927_v63 }
 0x475   : > { %5491 = vmatprep.subr.bf16.mxu1 %v5928_v0 }
 0x478   : > { %5492 = vmatpush3.bf16.msra.mxu1 %v5928_v0 }
 0x479   : > { %5493 = vmatprep.subr.bf16.mxu1 %v5929_v1 }
 0x47c   : > { %5494 = vmatpush3.bf16.msra.mxu1 %v5929_v1 }
 0x47d   : > { %5495 = vmatprep.subr.bf16.mxu1 %v5930_v4 }
 0x480   : > { %5496 = vmatpush3.bf16.msra.mxu1 %v5930_v4 }
 0x481   : > { %5497 = vmatprep.subr.bf16.mxu1 %v5931_v41 }
 0x484   : > { %5498 = vmatpush3.bf16.msra.mxu1 %v5931_v41 }
 0x485   : > { %5531 = vmatprep.subr.bf16.mxu1 %v5932_v7 }
 0x487   : > { %5500 = vmatmul.mubr.bf16.vlgmr.msra.gmra.mrb[24].mxu1 %v6471_v61 }
 0x488   : > { %5503 = vmatprep.mubr.bf16.mxu1 %v6480_v34  ;;  %5532 = vmatpush3.bf16.msra.mxu1 %v5932_v7 }
 0x489   : > { %5533 = vmatprep.subr.bf16.mxu1 %v5933_v12 }
 0x48c   : > { %5534 = vmatpush3.bf16.msra.mxu1 %v5933_v12 }
 0x48d   : > { %5535 = vmatprep.subr.bf16.mxu1 %v5934_v13 }
 0x48f   : > { %5504 = vmatmul.mubr.bf16.gmra.mrb[28].mxu1 %v6487_v42 }
 0x490   : > { %5536 = vmatpush3.bf16.msra.mxu1 %v5934_v13  ;;  %5547 = vmatprep.mubr.bf16.mxu1 %v6465_v53 }
 0x491   : > { %5537 = vmatprep.subr.bf16.mxu1 %v5935_v60 }
 0x494   : > { %5538 = vmatpush3.bf16.msra.mxu1 %v5935_v60 }
 0x495   : > { %5539 = vmatprep.subr.bf16.mxu1 %v5936_v14 }
 0x498   : > { %5540 = vmatpush3.bf16.msra.mxu1 %v5936_v14 }
 0x499   : > { %5541 = vmatprep.subr.bf16.mxu1 %v5937_v15 }
 0x49c   : > { %5542 = vmatpush3.bf16.msra.mxu1 %v5937_v15 }
 0x49d   : > { %5543 = vmatprep.subr.bf16.mxu1 %v5938_v16 }
 0x4a0   : > { %5544 = vmatpush3.bf16.msra.mxu1 %v5938_v16 }
 0x4a1   : > { %5545 = vmatprep.subr.bf16.mxu1 %v5939_v17 }
 0x4a4   : > { %5546 = vmatpush3.bf16.msra.mxu1 %v5939_v17 }
 0x4a7   : > { %5548 = vmatmul.mubr.bf16.vlgmr.msra.gmra.mrb[32].mxu1 %v6471_v61 }
 0x4a8   : > { %5551 = vmatprep.mubr.bf16.mxu1 %v6480_v34 }
 0x4af   : > { %5552 = vmatmul.mubr.bf16.gmra.mrb[36].mxu1 %v6487_v42 }
 0x53a   : > { %v6699_v20 = vpop.f32.mrb[16].mxu1 }
 0x53b   : > { %v6701_v21 = vpop.f32.mrb[17].mxu1 }
 0x53c   : > { %v6703_v22 = vpop.f32.mrb[18].mxu1 }
 0x53d   : > { %v1564_v23 = vpack.c.bf16 %v6703_v22, %v6699_v20  ;;  %v6707_v24 = vpop.f32.mrb[19].mxu1 }
 0x53e   : > { %v1563_v27 = vpack.c.bf16 %v6707_v24, %v6701_v21  ;;  %v5962_v21 = vld [vmem:[%s7516_s4 + $0x90] sm:$0xff]   ;;  %v5963_v24 = vld [vmem:[%s7516_s4 + $0x98] sm:$0xff]  }
 0x542   : > { %v6711_v28 = vpop.f32.mrb[20].mxu1 }
 0x543   : > { %v6713_v29 = vpop.f32.mrb[21].mxu1 }
 0x544   : > { %v6715_v30 = vpop.f32.mrb[22].mxu1 }
 0x545   : > { %v1566_v31 = vpack.c.bf16 %v6715_v30, %v6711_v28  ;;  %v6719_v32 = vpop.f32.mrb[23].mxu1  ;;  %v5965_v30 = vld [vmem:[%s7516_s4 + $0xa8] sm:$0xff]  }
 0x546   : > { %v1565_v35 = vpack.c.bf16 %v6719_v32, %v6713_v29 }
 0x55a   : > { %v5501_v36 = vpop.f32.mrb[24].mxu1 }
 0x55b   : > { %v1649_v43 = vpop.f32.mrb[25].mxu1 }
 0x55c   : > { %v5502_v44 = vpop.f32.mrb[26].mxu1 }
 0x55d   : > { %v1907_v45 = vpack.c.bf16 %v5502_v44, %v5501_v36  ;;  %v1652_v46 = vpop.f32.mrb[27].mxu1 }
 0x55e   : > { %v1906_v47 = vpack.c.bf16 %v1652_v46, %v1649_v43 }
 0x560   : > { %5563 = vmatprep.mubr.msk.bf16.mxu0 %vm1283_vm0, %v1906_v47 }
 0x561   : > { %5564 = vmatmul.mubr.msk.bf16.vlgmr.msra.gmra.mrb[24].mxu0 %vm1283_vm0, %v1907_v45 }
 0x562   : > { %v5505_v48 = vpop.f32.mrb[28].mxu1 }
 0x563   : > { %v1665_v49 = vpop.f32.mrb[29].mxu1 }
 0x564   : > { %v5506_v50 = vpop.f32.mrb[30].mxu1 }
 0x565   : > { %v1909_v51 = vpack.c.bf16 %v5506_v50, %v5505_v48  ;;  %v1668_v52 = vpop.f32.mrb[31].mxu1 }
 0x566   : > { %v1908_v54 = vpack.c.bf16 %v1668_v52, %v1665_v49 }
 0x568   : > { %5567 = vmatprep.mubr.msk.bf16.mxu0 %vm1283_vm0, %v1908_v54 }
 0x569   : > { %5568 = vmatmul.mubr.msk.bf16.gmra.mrb[28].mxu0 %vm1283_vm0, %v1909_v51 }
 0x57a   : > { %v5549_v55 = vpop.f32.mrb[32].mxu1 }
 0x57b   : > { %v1875_v56 = vpop.f32.mrb[33].mxu1 }
 0x57c   : > { %v5550_v19 = vpop.f32.mrb[34].mxu1 }
 0x57d   : > { %v2112_v59 = vpack.c.bf16 %v5550_v19, %v5549_v55  ;;  %v1878_v26 = vpop.f32.mrb[35].mxu1 }
 0x57e   : > { %v2111_v33 = vpack.c.bf16 %v1878_v26, %v1875_v56 }
 0x580   : > { %5571 = vmatprep.subr.bf16.mxu1 %v2111_v33 }
 0x581   : > { %5572 = vmatpush3.bf16.msra.mxu1 %v2111_v33 }
 0x582   : > { %v5553_v63 = vpop.f32.mrb[36].mxu1  ;;  %5573 = vmatprep.subr.bf16.mxu1 %v2112_v59 }
 0x583   : > { %v1891_v0 = vpop.f32.mrb[37].mxu1 }
 0x584   : > { %v5554_v1 = vpop.f32.mrb[38].mxu1 }
 0x585   : > { %v2114_v4 = vpack.c.bf16 %v5554_v1, %v5553_v63  ;;  %v1894_v41 = vpop.f32.mrb[39].mxu1  ;;  %5574 = vmatpush3.bf16.msra.mxu1 %v2112_v59 }
 0x586   : > { %v2113_v7 = vpack.c.bf16 %v1894_v41, %v1891_v0 }
 0x588   : > { %5575 = vmatprep.subr.bf16.mxu1 %v2113_v7 }
 0x589   : > { %5576 = vmatpush3.bf16.msra.mxu1 %v2113_v7 }
 0x58a   : > { %5577 = vmatprep.subr.bf16.mxu1 %v2114_v4 }
 0x58d   : > { %5578 = vmatpush3.bf16.msra.mxu1 %v2114_v4 }
 0x634   : > { %v5565_v12 = vpop.f32.mrb[24].mxu0 }
 0x635   : > { %v1972_v13 = vpop.f32.mrb[25].mxu0  ;;  %v2005_v60 = vmul.f32 0.17677669, %v5565_v12 }
 0x636   : > { %v2003_v14 = vmul.f32 0.17677669, %v1972_v13  ;;  %v5566_v15 = vpop.f32.mrb[26].mxu0 }
 0x637   : > { %v1975_v16 = vpop.f32.mrb[27].mxu0  ;;  %v2006_v17 = vmul.f32 0.17677669, %v5566_v15  ;;  %v2013_v46 = vsel %vm930_vm4, %v2005_v60, -1e+30 }
 0x638   : > { %v2004_v36 = vmul.f32 0.17677669, %v1975_v16  ;;  %v2011_v43 = vsel %vm928_vm1, %v2003_v14, -1e+30  ;;  %v2025_v51 = vsel %vm1389_vm2, %v2013_v46, -inf }
 0x639   : > { %v2019_v44 = vsel %vm1389_vm2, %v2011_v43, -inf  ;;  %v2014_v49 = vsel %vm931_vm5, %v2006_v17, -1e+30 }
 0x63a   : > { %2020 = vmax.xlane.f32.xlu0 %v2019_v44  ;;  %v2012_v45 = vsel %vm929_vm3, %v2004_v36, -1e+30  ;;  %v2028_v19 = vsel %vm1389_vm2, %v2014_v49, -inf }
 0x63b   : > { %v2022_v47 = vsel %vm1389_vm2, %v2012_v45, -inf }
 0x63c   : > { %2023 = vmax.xlane.f32.xlu1 %v2022_v47  ;;  %v5569_v48 = vpop.f32.mrb[28].mxu0 }
 0x63d   : > { %v1988_v50 = vpop.f32.mrb[29].mxu0  ;;  %v2009_v52 = vmul.f32 0.17677669, %v5569_v48 }
 0x63e   : > { %v2007_v54 = vmul.f32 0.17677669, %v1988_v50  ;;  %2026 = vmax.xlane.f32.xlu0 %v2025_v51  ;;  %v5570_v55 = vpop.f32.mrb[30].mxu0 }
 0x63f   : > { %v1991_v56 = vpop.f32.mrb[31].mxu0  ;;  %v2010_v59 = vmul.f32 0.17677669, %v5570_v55  ;;  %v2017_v1 = vsel %vm934_vm8, %v2009_v52, -1e+30 }
 0x640   : > { %v2008_v26 = vmul.f32 0.17677669, %v1991_v56  ;;  %2029 = vmax.xlane.f32.xlu1 %v2028_v19  ;;  %v2015_v33 = vsel %vm932_vm6, %v2007_v54, -1e+30  ;;  %v2037_v7 = vsel %vm1389_vm2, %v2017_v1, -inf }
 0x641   : > { %v2031_v63 = vsel %vm1389_vm2, %v2015_v33, -inf  ;;  %v2018_v41 = vsel %vm935_vm9, %v2010_v59, -1e+30 }
 0x642   : > { %2032 = vmax.xlane.f32.xlu0 %v2031_v63  ;;  %v2016_v0 = vsel %vm933_vm7, %v2008_v26, -1e+30  ;;  %v2040_v12 = vsel %vm1389_vm2, %v2018_v41, -inf }
 0x643   : > { %v2034_v4 = vsel %vm1389_vm2, %v2016_v0, -inf }
 0x644   : > { %2035 = vmax.xlane.f32.xlu1 %v2034_v4 }
 0x646   : > { %2038 = vmax.xlane.f32.xlu0 %v2037_v7 }
 0x648   : > { %2041 = vmax.xlane.f32.xlu1 %v2040_v12 }
 0x6c7   : > { %v2021_v13 = vpop.xlane.xlu0 %2020 }
 0x6c8   : > { %v2043_v60 = vsub.f32 %v2011_v43, %v2021_v13 }
 0x6c9   : > { %v2024_v14 = vpop.xlane.xlu1 %2023 }
 0x6ca   : > { %v2051_v15 = vmul.f32 1.442695, %v2043_v60  ;;  %v2044_v16 = vsub.f32 %v2012_v45, %v2024_v14 }
 0x6cb   : > { %v2027_v17 = vpop.xlane.xlu0 %2026 }
 0x6cc   : > { %6124 = vpow2.f32 %v2051_v15  ;;  %v2053_v36 = vmul.f32 1.442695, %v2044_v16  ;;  %v2045_v44 = vsub.f32 %v2013_v46, %v2027_v17 }
 0x6cd   : > { %v2030_v47 = vpop.xlane.xlu1 %2029 }
 0x6ce   : > { %6126 = vpow2.f32 %v2053_v36  ;;  %v2055_v48 = vmul.f32 1.442695, %v2045_v44  ;;  %v2046_v50 = vsub.f32 %v2014_v49, %v2030_v47 }
 0x6cf   : > { %v2033_v51 = vpop.xlane.xlu0 %2032 }
 0x6d0   : > { %6128 = vpow2.f32 %v2055_v48  ;;  %v2057_v52 = vmul.f32 1.442695, %v2046_v50  ;;  %v2047_v54 = vsub.f32 %v2015_v33, %v2033_v51  ;;  %v5940_v48 = vld [vmem:[%s7515_s3 + $0x80] sm:$0xff]   ;;  %v5956_v50 = vld [vmem:[%s7518_s6 + $0x10] sm:$0xff]   ;;  %v5957_v51 = vld [vmem:[%s7518_s6 + $0x18] sm:$0xff]  }
 0x6d1   : > { %v2036_v55 = vpop.xlane.xlu1 %2035  ;;  %5611 = vmatprep.subr.bf16.mxu1 %v5940_v48  ;;  %5587 = vmatprep.subr.bf16.mxu0 %v5956_v50 }
 0x6d2   : > { %6130 = vpow2.f32 %v2057_v52  ;;  %v2059_v56 = vmul.f32 1.442695, %v2047_v54  ;;  %v2048_v19 = vsub.f32 %v2016_v0, %v2036_v55  ;;  %5588 = vmatpush3.bf16.msra.mxu0 %v5956_v50 }
 0x6d3   : > { %v2039_v43 = vpop.xlane.xlu0 %2038  ;;  %5589 = vmatprep.subr.bf16.mxu0 %v5957_v51 }
 0x6d4   : > { %6132 = vpow2.f32 %v2059_v56  ;;  %v2061_v59 = vmul.f32 1.442695, %v2048_v19  ;;  %v2049_v45 = vsub.f32 %v2017_v1, %v2039_v43 }
 0x6d5   : > { %v2042_v26 = vpop.xlane.xlu1 %2041 }
 0x6d6   : > { %v6125_v63 = vpop.eup %6124  ;;  %6134 = vpow2.f32 %v2061_v59  ;;  %v2063_v46 = vmul.f32 1.442695, %v2049_v45  ;;  %v2050_v4 = vsub.f32 %v2018_v41, %v2042_v26  ;;  %5590 = vmatpush3.bf16.msra.mxu0 %v5957_v51 }
 0x6d7   : > { %v2067_v7 = vsel %vm1389_vm2, %v6125_v63, 0.0 }
 0x6d8   : > { %v6127_v49 = vpop.eup %6126  ;;  %6136 = vpow2.f32 %v2063_v46  ;;  %v2065_v12 = vmul.f32 1.442695, %v2050_v4  ;;  %2068 = vadd.xlane.f32.xlu0 %v2067_v7 }
 0x6d9   : > { %v2070_v33 = vsel %vm1389_vm2, %v6127_v49, 0.0 }
 0x6da   : > { %v6129_v13 = vpop.eup %6128  ;;  %6138 = vpow2.f32 %v2065_v12  ;;  %2071 = vadd.xlane.f32.xlu1 %v2070_v33 }
 0x6db   : > { %v2073_v0 = vsel %vm1389_vm2, %v6129_v13, 0.0 }
 0x6dc   : > { %v6131_v60 = vpop.eup %6130  ;;  %2074 = vadd.xlane.f32.xlu0 %v2073_v0 }
 0x6dd   : > { %v2076_v1 = vsel %vm1389_vm2, %v6131_v60, 0.0 }
 0x6de   : > { %v6133_v14 = vpop.eup %6132  ;;  %2077 = vadd.xlane.f32.xlu1 %v2076_v1 }
 0x6df   : > { %v2079_v41 = vsel %vm1389_vm2, %v6133_v14, 0.0 }
 0x6e0   : > { %v6135_v15 = vpop.eup %6134  ;;  %2080 = vadd.xlane.f32.xlu0 %v2079_v41 }
 0x6e1   : > { %v2082_v16 = vsel %vm1389_vm2, %v6135_v15, 0.0 }
 0x6e2   : > { %v6137_v17 = vpop.eup %6136  ;;  %2083 = vadd.xlane.f32.xlu1 %v2082_v16 }
 0x6e3   : > { %v2085_v36 = vsel %vm1389_vm2, %v6137_v17, 0.0 }
 0x6e4   : > { %v6139_v44 = vpop.eup %6138  ;;  %2086 = vadd.xlane.f32.xlu0 %v2085_v36 }
 0x6e5   : > { %v2088_v47 = vsel %vm1389_vm2, %v6139_v44, 0.0 }
 0x6e6   : > { %2089 = vadd.xlane.f32.xlu1 %v2088_v47  ;;  %v5941_v47 = vld [vmem:[%s7515_s3 + $0x88] sm:$0xff]  }
 0x765   : > { %v2069_v52 = vpop.xlane.xlu0 %2068 }
 0x766   : > { %6140 = vrcp.f32 %v2069_v52 }
 0x767   : > { %v2072_v54 = vpop.xlane.xlu1 %2071 }
 0x768   : > { %6142 = vrcp.f32 %v2072_v54 }
 0x769   : > { %v2075_v55 = vpop.xlane.xlu0 %2074 }
 0x76a   : > { %6144 = vrcp.f32 %v2075_v55 }
 0x76b   : > { %v2078_v56 = vpop.xlane.xlu1 %2077 }
 0x76c   : > { %6146 = vrcp.f32 %v2078_v56 }
 0x76d   : > { %v2081_v19 = vpop.xlane.xlu0 %2080 }
 0x76e   : > { %6148 = vrcp.f32 %v2081_v19  ;;  %v5948_v19 = vld [vmem:[%s7517_s5 + $0x80] sm:$0xff]  }
 0x76f   : > { %v2084_v43 = vpop.xlane.xlu1 %2083 }
 0x770   : > { %v6141_v59 = vpop.eup %6140  ;;  %6150 = vrcp.f32 %v2084_v43  ;;  %v5949_v43 = vld [vmem:[%s7517_s5 + $0x88] sm:$0xff]  }
 0x771   : > { %v2087_v45 = vpop.xlane.xlu0 %2086  ;;  %v2092_v4 = vmul.f32 %v6141_v59, %v6125_v63  ;;  %v5950_v59 = vld [vmem:[%s7517_s5 + $0x90] sm:$0xff]  }
 0x772   : > { %v6143_v26 = vpop.eup %6142  ;;  %6152 = vrcp.f32 %v2087_v45  ;;  %v5951_v45 = vld [vmem:[%s7517_s5 + $0x98] sm:$0xff]  }
 0x773   : > { %v2090_v46 = vpop.xlane.xlu1 %2089  ;;  %v2094_v7 = vmul.f32 %v6143_v26, %v6127_v49  ;;  %v5952_v26 = vld [vmem:[%s7517_s5 + $0xa0] sm:$0xff]  }
 0x774   : > { %v6145_v12 = vpop.eup %6144  ;;  %6154 = vrcp.f32 %v2090_v46  ;;  %v5953_v46 = vld [vmem:[%s7517_s5 + $0xa8] sm:$0xff]  }
 0x775   : > { %v2107_v33 = vpack.c.bf16 %v2094_v7, %v2092_v4  ;;  %v2096_v1 = vmul.f32 %v6145_v12, %v6129_v13  ;;  %v5942_v13 = vld [vmem:[%s7515_s3 + $0x90] sm:$0xff]   ;;  %v5955_v7 = vld [vmem:[%s7517_s5 + $0xb8] sm:$0xff]   ;;  %v5958_v12 = vld [vmem:[%s7518_s6] sm:$0xff]  }
 0x776   : > { %v6147_v0 = vpop.eup %6146  ;;  %v5954_v4 = vld [vmem:[%s7517_s5 + $0xb0] sm:$0xff]   ;;  %5599 = vmatprep.subr.bf16.mxu0 %v5958_v12 }
 0x777   : > { %v2098_v41 = vmul.f32 %v6147_v0, %v6131_v60  ;;  %5579 = vmatprep.mubr.msk.bf16.mxu1 %vm1389_vm2, %v2107_v33 }
 0x778   : > { %v6149_v16 = vpop.eup %6148 }
 0x779   : > { %v2108_v36 = vpack.c.bf16 %v2098_v41, %v2096_v1  ;;  %v2100_v51 = vmul.f32 %v6149_v16, %v6133_v14  ;;  %v5943_v14 = vld [vmem:[%s7515_s3 + $0x98] sm:$0xff]  }
 0x77a   : > { %v6151_v50 = vpop.eup %6150 }
 0x77b   : > { %5580 = vmatmul.mubr.msk.bf16.vlgmr.msra.gmra.mrb[40].mxu1 %vm1389_vm2, %v2108_v36  ;;  %v2102_v63 = vmul.f32 %v6151_v50, %v6135_v15  ;;  %v5944_v15 = vld [vmem:[%s7515_s3 + $0xa0] sm:$0xff]  }
 0x77c   : > { %v6153_v49 = vpop.eup %6152  ;;  %5612 = vmatpush3.bf16.msra.mxu1 %v5940_v48  ;;  %v5947_v48 = vld [vmem:[%s7515_s3 + $0xb8] sm:$0xff]  }
 0x77d   : > { %5613 = vmatprep.subr.bf16.mxu1 %v5941_v47  ;;  %v2109_v52 = vpack.c.bf16 %v2102_v63, %v2100_v51  ;;  %v2104_v54 = vmul.f32 %v6153_v49, %v6137_v17  ;;  %v5945_v17 = vld [vmem:[%s7515_s3 + $0xa8] sm:$0xff]   ;;  %v5960_v63 = vld [vmem:[%s7516_s4 + $0x80] sm:$0xff]  }
 0x77e   : > { %v6155_v60 = vpop.eup %6154 }
 0x77f   : > { %5583 = vmatprep.mubr.msk.bf16.mxu1 %vm1389_vm2, %v2109_v52  ;;  %v2106_v55 = vmul.f32 %v6155_v60, %v6139_v44  ;;  %v5946_v44 = vld [vmem:[%s7515_s3 + $0xb0] sm:$0xff]  }
 0x780   : > { %5614 = vmatpush3.bf16.msra.mxu1 %v5941_v47  ;;  %v5959_v47 = vld [vmem:[%s7518_s6 + $0x8] sm:$0xff]  }
 0x781   : > { %5615 = vmatprep.subr.bf16.mxu1 %v5942_v13  ;;  %v2110_v56 = vpack.c.bf16 %v2106_v55, %v2104_v54  ;;  %v5961_v54 = vld [vmem:[%s7516_s4 + $0x88] sm:$0xff]   ;;  %v5966_v55 = vld [vmem:[%s7516_s4 + $0xb0] sm:$0xff]  }
 0x783   : > { %5584 = vmatmul.mubr.msk.bf16.gmra.mrb[44].mxu1 %vm1389_vm2, %v2110_v56 }
 0x784   : > { %5616 = vmatpush3.bf16.msra.mxu1 %v5942_v13  ;;  %5627 = vmatprep.mubr.bf16.mxu1 %v6465_v53 }
 0x785   : > { %5617 = vmatprep.subr.bf16.mxu1 %v5943_v14 }
 0x788   : > { %5618 = vmatpush3.bf16.msra.mxu1 %v5943_v14 }
 0x789   : > { %5619 = vmatprep.subr.bf16.mxu1 %v5944_v15 }
 0x78c   : > { %5620 = vmatpush3.bf16.msra.mxu1 %v5944_v15 }
 0x78d   : > { %5621 = vmatprep.subr.bf16.mxu1 %v5945_v17 }
 0x790   : > { %5622 = vmatpush3.bf16.msra.mxu1 %v5945_v17 }
 0x791   : > { %5623 = vmatprep.subr.bf16.mxu1 %v5946_v44 }
 0x794   : > { %5624 = vmatpush3.bf16.msra.mxu1 %v5946_v44  ;;  %v5967_v44 = vld [vmem:[%s7516_s4 + $0xb8] sm:$0xff]  }
 0x795   : > { %5625 = vmatprep.subr.bf16.mxu1 %v5947_v48 }
 0x798   : > { %5626 = vmatpush3.bf16.msra.mxu1 %v5947_v48 }
 0x799   : > { %5659 = vmatprep.subr.bf16.mxu1 %v5948_v19 }
 0x79b   : > { %5628 = vmatmul.mubr.bf16.vlgmr.msra.gmra.mrb[48].mxu1 %v6471_v61 }
 0x79c   : > { %5631 = vmatprep.mubr.bf16.mxu1 %v6480_v34  ;;  %5660 = vmatpush3.bf16.msra.mxu1 %v5948_v19 }
 0x79d   : > { %5661 = vmatprep.subr.bf16.mxu1 %v5949_v43 }
 0x7a0   : > { %5662 = vmatpush3.bf16.msra.mxu1 %v5949_v43 }
 0x7a1   : > { %5663 = vmatprep.subr.bf16.mxu1 %v5950_v59 }
 0x7a3   : > { %5632 = vmatmul.mubr.bf16.gmra.mrb[52].mxu1 %v6487_v42 }
 0x7a4   : > { %5664 = vmatpush3.bf16.msra.mxu1 %v5950_v59  ;;  %5675 = vmatprep.mubr.bf16.mxu1 %v6465_v53 }
 0x7a5   : > { %5665 = vmatprep.subr.bf16.mxu1 %v5951_v45 }
 0x7a8   : > { %5666 = vmatpush3.bf16.msra.mxu1 %v5951_v45 }
 0x7a9   : > { %5667 = vmatprep.subr.bf16.mxu1 %v5952_v26 }
 0x7ac   : > { %5668 = vmatpush3.bf16.msra.mxu1 %v5952_v26 }
 0x7ad   : > { %5669 = vmatprep.subr.bf16.mxu1 %v5953_v46 }
 0x7b0   : > { %5670 = vmatpush3.bf16.msra.mxu1 %v5953_v46 }
 0x7b1   : > { %5671 = vmatprep.subr.bf16.mxu1 %v5954_v4 }
 0x7b4   : > { %5672 = vmatpush3.bf16.msra.mxu1 %v5954_v4 }
 0x7b5   : > { %5673 = vmatprep.subr.bf16.mxu1 %v5955_v7 }
 0x7b8   : > { %5674 = vmatpush3.bf16.msra.mxu1 %v5955_v7 }
 0x7bb   : > { %5676 = vmatmul.mubr.bf16.vlgmr.msra.gmra.mrb[56].mxu1 %v6471_v61 }
 0x7bc   : > { %5679 = vmatprep.mubr.bf16.mxu1 %v6480_v34 }
 0x7c3   : > { %5680 = vmatmul.mubr.bf16.gmra.mrb[60].mxu1 %v6487_v42 }
 0x84e   : > { %v5581_v33 = vpop.f32.mrb[40].mxu1 }
 0x84f   : > { %v2161_v0 = vpop.f32.mrb[41].mxu1 }
 0x850   : > { %v5582_v1 = vpop.f32.mrb[42].mxu1 }
 0x851   : > { %v2193_v41 = vpack.c.bf16 %v5582_v1, %v5581_v33  ;;  %v2164_v16 = vpop.f32.mrb[43].mxu1 }
 0x852   : > { %v2192_v36 = vpack.c.bf16 %v2164_v16, %v2161_v0 }
 0x854   : > { %5591 = vmatprep.mubr.msk.bf16.mxu0 %vm1283_vm0, %v2192_v36 }
 0x855   : > { %5592 = vmatmul.mubr.msk.bf16.vlgmr.msra.gmra.mrb[32].mxu0 %vm1283_vm0, %v2193_v41 }
 0x856   : > { %5600 = vmatpush3.bf16.msra.mxu0 %v5958_v12  ;;  %v5585_v50 = vpop.f32.mrb[44].mxu1 }
 0x857   : > { %v2177_v51 = vpop.f32.mrb[45].mxu1  ;;  %5601 = vmatprep.subr.bf16.mxu0 %v5959_v47 }
 0x858   : > { %v5586_v49 = vpop.f32.mrb[46].mxu1 }
 0x859   : > { %v2195_v52 = vpack.c.bf16 %v5586_v49, %v5585_v50  ;;  %v2180_v13 = vpop.f32.mrb[47].mxu1 }
 0x85a   : > { %v2194_v60 = vpack.c.bf16 %v2180_v13, %v2177_v51  ;;  %5602 = vmatpush3.bf16.msra.mxu0 %v5959_v47 }
 0x85b   : > { %5635 = vmatprep.subr.bf16.mxu0 %v5960_v63 }
 0x85c   : > { %5595 = vmatprep.mubr.msk.bf16.mxu0 %vm1283_vm0, %v2194_v60 }
 0x85d   : > { %5596 = vmatmul.mubr.msk.bf16.gmra.mrb[36].mxu0 %vm1283_vm0, %v2195_v52 }
 0x85e   : > { %5603 = vmatprep.mubr.msk.bf16.mxu0 %vm1283_vm0, %v1563_v27 }
 0x865   : > { %5604 = vmatmul.mubr.msk.bf16.vlgmr.msra.gmra.mrb[32].mxu0 %vm1283_vm0, %v1564_v23  ;;  %v5964_v23 = vld [vmem:[%s7516_s4 + $0xa0] sm:$0xff]  }
 0x866   : > { %5636 = vmatpush3.bf16.msra.mxu0 %v5960_v63  ;;  %5607 = vmatprep.mubr.msk.bf16.mxu0 %vm1283_vm0, %v1565_v35 }
 0x867   : > { %5637 = vmatprep.subr.bf16.mxu0 %v5961_v54 }
 0x86a   : > { %5638 = vmatpush3.bf16.msra.mxu0 %v5961_v54 }
 0x86b   : > { %5639 = vmatprep.subr.bf16.mxu0 %v5962_v21 }
 0x86d   : > { %5608 = vmatmul.mubr.msk.bf16.gmra.mrb[36].mxu0 %vm1283_vm0, %v1566_v31 }
 0x86e   : > { %v6871_v20 = vpop.f32.mrb[48].mxu1  ;;  %5640 = vmatpush3.bf16.msra.mxu0 %v5962_v21  ;;  %5651 = vmatprep.mubr.bf16.mxu0 %v6465_v53 }
 0x86f   : > { %v2456_v22 = vpop.f32.mrb[49].mxu1  ;;  %5641 = vmatprep.subr.bf16.mxu0 %v5963_v24 }
 0x870   : > { %v6877_v27 = vpop.f32.mrb[50].mxu1 }
 0x871   : > { %v2714_v29 = vpack.c.bf16 %v6877_v27, %v6871_v20  ;;  %v2459_v32 = vpop.f32.mrb[51].mxu1 }
 0x872   : > { %v2713_v28 = vpack.c.bf16 %v2459_v32, %v2456_v22  ;;  %5642 = vmatpush3.bf16.msra.mxu0 %v5963_v24 }
 0x873   : > { %5643 = vmatprep.subr.bf16.mxu0 %v5964_v23 }
 0x876   : > { %v6884_v31 = vpop.f32.mrb[52].mxu1  ;;  %5644 = vmatpush3.bf16.msra.mxu0 %v5964_v23 }
 0x877   : > { %v6886_v35 = vpop.f32.mrb[53].mxu1  ;;  %5645 = vmatprep.subr.bf16.mxu0 %v5965_v30 }
 0x878   : > { %v5634_v56 = vpop.f32.mrb[54].mxu1 }
 0x879   : > { %v2716_v14 = vpack.c.bf16 %v5634_v56, %v6884_v31  ;;  %v2475_v15 = vpop.f32.mrb[55].mxu1 }
 0x87a   : > { %v2715_v17 = vpack.c.bf16 %v2475_v15, %v6886_v35  ;;  %5646 = vmatpush3.bf16.msra.mxu0 %v5965_v30 }
 0x87b   : > { %5647 = vmatprep.subr.bf16.mxu0 %v5966_v55 }
 0x87e   : > { %5648 = vmatpush3.bf16.msra.mxu0 %v5966_v55 }
 0x87f   : > { %5649 = vmatprep.subr.bf16.mxu0 %v5967_v44 }
 0x882   : > { %5650 = vmatpush3.bf16.msra.mxu0 %v5967_v44 }
 0x885   : > { %5652 = vmatmul.mubr.bf16.vlgmr.msra.gmra.mrb[40].mxu0 %v6471_v61 }
 0x886   : > { %5655 = vmatprep.mubr.bf16.mxu0 %v6480_v34 }
 0x88d   : > { %5656 = vmatmul.mubr.bf16.gmra.mrb[44].mxu0 %v6487_v42 }
 0x88e   : > { %v5677_v48 = vpop.f32.mrb[56].mxu1  ;;  %5691 = vmatprep.mubr.msk.bf16.mxu0 %vm1283_vm0, %v2713_v28 }
 0x88f   : > { %v2682_v19 = vpop.f32.mrb[57].mxu1 }
 0x890   : > { %v5678_v43 = vpop.f32.mrb[58].mxu1 }
 0x891   : > { %v2919_v59 = vpack.c.bf16 %v5678_v43, %v5677_v48  ;;  %v2685_v45 = vpop.f32.mrb[59].mxu1 }
 0x892   : > { %v2918_v26 = vpack.c.bf16 %v2685_v45, %v2682_v19 }
 0x894   : > { %5699 = vmatprep.subr.bf16.mxu1 %v2918_v26 }
 0x895   : > { %5700 = vmatpush3.bf16.msra.mxu1 %v2918_v26 }
 0x896   : > { %v5681_v46 = vpop.f32.mrb[60].mxu1  ;;  %5701 = vmatprep.subr.bf16.mxu1 %v2919_v59 }
 0x897   : > { %v2698_v4 = vpop.f32.mrb[61].mxu1 }
 0x898   : > { %v5682_v7 = vpop.f32.mrb[62].mxu1 }
 0x899   : > { %v2921_v12 = vpack.c.bf16 %v5682_v7, %v5681_v46  ;;  %v2701_v33 = vpop.f32.mrb[63].mxu1  ;;  %5702 = vmatpush3.bf16.msra.mxu1 %v2919_v59 }
 0x89a   : > { %v2920_v0 = vpack.c.bf16 %v2701_v33, %v2698_v4 }
 0x89c   : > { %5703 = vmatprep.subr.bf16.mxu1 %v2920_v0 }
 0x89d   : > { %5704 = vmatpush3.bf16.msra.mxu1 %v2920_v0 }
 0x89e   : > { %5705 = vmatprep.subr.bf16.mxu1 %v2921_v12 }
 0x8a1   : > { %5706 = vmatpush3.bf16.msra.mxu1 %v2921_v12 }
 0x958   : > { %v5653_v1 = vpop.f32.mrb[40].mxu0 }
 0x959   : > { %v2569_v41 = vpop.f32.mrb[41].mxu0 }
 0x95a   : > { %v5654_v16 = vpop.f32.mrb[42].mxu0 }
 0x95b   : > { %v2718_v36 = vpack.c.bf16 %v5654_v16, %v5653_v1  ;;  %v2572_v47 = vpop.f32.mrb[43].mxu0 }
 0x95c   : > { %v2717_v50 = vpack.c.bf16 %v2572_v47, %v2569_v41 }
 0x95d   : > { %v2737_v21 = vsel %vm1283_vm0, %v2718_v36, 0 }
 0x95e   : > { %v2734_v51 = vsel %vm1283_vm0, %v2717_v50, 0  ;;  %5875 = vmatprep.subr.msk.bf16.mxu0 %vm1283_vm0, %v2717_v50 }
 0x95f   : > { %5684 = vmatpush3.bf16.xpose.msra.mxu0 %v2734_v51 }
 0x960   : > { %v5657_v63 = vpop.f32.mrb[44].mxu0  ;;  %5876 = vmatprep.subr.msk.bf16.mxu0 %vm1283_vm0, %v2718_v36 }
 0x961   : > { %v2585_v49 = vpop.f32.mrb[45].mxu0 }
 0x962   : > { %v5658_v52 = vpop.f32.mrb[46].mxu0 }
 0x963   : > { %v2720_v13 = vpack.c.bf16 %v5658_v52, %v5657_v63  ;;  %v2588_v60 = vpop.f32.mrb[47].mxu0 }
 0x964   : > { %v2719_v54 = vpack.c.bf16 %v2588_v60, %v2585_v49 }
 0x965   : > { %v2743_v22 = vsel %vm1283_vm0, %v2720_v13, 0 }
 0x966   : > { %v2740_v24 = vsel %vm1283_vm0, %v2719_v54, 0 }
 0x967   : > { %5686 = vmatpush3.bf16.xpose.msra.mxu0 %v2737_v21 }
 0x968   : > { %5877 = vmatprep.subr.msk.bf16.mxu0 %vm1283_vm0, %v2719_v54 }
 0x96f   : > { %5688 = vmatpush3.bf16.xpose.msra.mxu0 %v2740_v24 }
 0x970   : > { %5878 = vmatprep.subr.msk.bf16.mxu0 %vm1283_vm0, %v2720_v13 }
 0x977   : > { %5690 = vmatpush3.bf16.xpose.msra.mxu0 %v2743_v22 }
 0x97e   : > { %5692 = vmatmul.mubr.msk.bf16.vlgmr.msra.gmra.mrb[48].mxu0 %vm1283_vm0, %v2714_v29 }
 0x97f   : > { %5695 = vmatprep.mubr.msk.bf16.mxu0 %vm1283_vm0, %v2715_v17 }
 0x986   : > { %5696 = vmatmul.mubr.msk.bf16.gmra.mrb[52].mxu0 %vm1283_vm0, %v2716_v14 }
 0xa51   : > { %v5693_v23 = vpop.f32.mrb[48].mxu0 }
 0xa52   : > { %v2779_v32 = vpop.f32.mrb[49].mxu0  ;;  %v2812_v28 = vmul.f32 0.17677669, %v5693_v23 }
 0xa53   : > { %v2810_v30 = vmul.f32 0.17677669, %v2779_v32  ;;  %v5694_v31 = vpop.f32.mrb[50].mxu0 }
 0xa54   : > { %v2782_v35 = vpop.f32.mrb[51].mxu0  ;;  %v2813_v55 = vmul.f32 0.17677669, %v5694_v31  ;;  %v2820_v29 = vsel %vm930_vm4, %v2812_v28, -1e+30 }
 0xa55   : > { %v2811_v56 = vmul.f32 0.17677669, %v2782_v35  ;;  %v2818_v15 = vsel %vm928_vm1, %v2810_v30, -1e+30  ;;  %v2832_v19 = vsel %vm1389_vm2, %v2820_v29, -inf }
 0xa56   : > { %v2826_v20 = vsel %vm1389_vm2, %v2818_v15, -inf  ;;  %v2821_v44 = vsel %vm931_vm5, %v2813_v55, -1e+30 }
 0xa57   : > { %2827 = vmax.xlane.f32.xlu0 %v2826_v20  ;;  %v2819_v27 = vsel %vm929_vm3, %v2811_v56, -1e+30  ;;  %v2835_v46 = vsel %vm1389_vm2, %v2821_v44, -inf }
 0xa58   : > { %v2829_v14 = vsel %vm1389_vm2, %v2819_v27, -inf }
 0xa59   : > { %2830 = vmax.xlane.f32.xlu1 %v2829_v14  ;;  %v5697_v17 = vpop.f32.mrb[52].mxu0 }
 0xa5a   : > { %v2795_v48 = vpop.f32.mrb[53].mxu0  ;;  %v2816_v43 = vmul.f32 0.17677669, %v5697_v17 }
 0xa5b   : > { %v2814_v59 = vmul.f32 0.17677669, %v2795_v48  ;;  %2833 = vmax.xlane.f32.xlu0 %v2832_v19  ;;  %v5698_v45 = vpop.f32.mrb[54].mxu0 }
 0xa5c   : > { %v2798_v26 = vpop.f32.mrb[55].mxu0  ;;  %v2817_v4 = vmul.f32 0.17677669, %v5698_v45  ;;  %v2824_v1 = vsel %vm934_vm8, %v2816_v43, -1e+30 }
 0xa5d   : > { %v2815_v7 = vmul.f32 0.17677669, %v2798_v26  ;;  %2836 = vmax.xlane.f32.xlu1 %v2835_v46  ;;  %v2822_v12 = vsel %vm932_vm6, %v2814_v59, -1e+30  ;;  %v2844_v36 = vsel %vm1389_vm2, %v2824_v1, -inf }
 0xa5e   : > { %v2838_v33 = vsel %vm1389_vm2, %v2822_v12, -inf  ;;  %v2825_v16 = vsel %vm935_vm9, %v2817_v4, -1e+30 }
 0xa5f   : > { %2839 = vmax.xlane.f32.xlu0 %v2838_v33  ;;  %v2823_v0 = vsel %vm933_vm7, %v2815_v7, -1e+30  ;;  %v2847_v47 = vsel %vm1389_vm2, %v2825_v16, -inf }
 0xa60   : > { %v2841_v41 = vsel %vm1389_vm2, %v2823_v0, -inf }
 0xa61   : > { %2842 = vmax.xlane.f32.xlu1 %v2841_v41 }
 0xa63   : > { %2845 = vmax.xlane.f32.xlu0 %v2844_v36  ;;  %v5984_v36 = vld [vmem:[%s7518_s6 + $0x20] sm:$0xff]  }
 0xa64   : > { %5715 = vmatprep.subr.bf16.mxu0 %v5984_v36 }
 0xa65   : > { %2848 = vmax.xlane.f32.xlu1 %v2847_v47  ;;  %v5985_v47 = vld [vmem:[%s7518_s6 + $0x28] sm:$0xff]   ;;  %5716 = vmatpush3.bf16.msra.mxu0 %v5984_v36  ;;  %v5982_v36 = vld [vmem:[%s7517_s5 + $0xf0] sm:$0xff]  }
 0xa66   : > { %5717 = vmatprep.subr.bf16.mxu0 %v5985_v47 }
 0xa69   : > { %5718 = vmatpush3.bf16.msra.mxu0 %v5985_v47  ;;  %v5983_v47 = vld [vmem:[%s7517_s5 + $0xf8] sm:$0xff]  }
 0xae4   : > { %v2828_v50 = vpop.xlane.xlu0 %2827 }
 0xae5   : > { %v2850_v51 = vsub.f32 %v2818_v15, %v2828_v50 }
 0xae6   : > { %v2831_v63 = vpop.xlane.xlu1 %2830 }
 0xae7   : > { %v2858_v49 = vmul.f32 1.442695, %v2850_v51  ;;  %v2851_v52 = vsub.f32 %v2819_v27, %v2831_v63 }
 0xae8   : > { %v2834_v13 = vpop.xlane.xlu0 %2833 }
 0xae9   : > { %6156 = vpow2.f32 %v2858_v49  ;;  %v2860_v60 = vmul.f32 1.442695, %v2851_v52  ;;  %v2852_v54 = vsub.f32 %v2820_v29, %v2834_v13 }
 0xaea   : > { %v2837_v21 = vpop.xlane.xlu1 %2836 }
 0xaeb   : > { %6158 = vpow2.f32 %v2860_v60  ;;  %v2862_v24 = vmul.f32 1.442695, %v2852_v54  ;;  %v2853_v22 = vsub.f32 %v2821_v44, %v2837_v21 }
 0xaec   : > { %v2840_v23 = vpop.xlane.xlu0 %2839 }
 0xaed   : > { %6160 = vpow2.f32 %v2862_v24  ;;  %v2864_v32 = vmul.f32 1.442695, %v2853_v22  ;;  %v2854_v28 = vsub.f32 %v2822_v12, %v2840_v23 }
 0xaee   : > { %v2843_v30 = vpop.xlane.xlu1 %2842 }
 0xaef   : > { %6162 = vpow2.f32 %v2864_v32  ;;  %v2866_v31 = vmul.f32 1.442695, %v2854_v28  ;;  %v2855_v35 = vsub.f32 %v2823_v0, %v2843_v30 }
 0xaf0   : > { %v2846_v55 = vpop.xlane.xlu0 %2845 }
 0xaf1   : > { %6164 = vpow2.f32 %v2866_v31  ;;  %v2868_v56 = vmul.f32 1.442695, %v2855_v35  ;;  %v2856_v15 = vsub.f32 %v2824_v1, %v2846_v55 }
 0xaf2   : > { %v2849_v20 = vpop.xlane.xlu1 %2848 }
 0xaf3   : > { %v6157_v27 = vpop.eup %6156  ;;  %6166 = vpow2.f32 %v2868_v56  ;;  %v2870_v29 = vmul.f32 1.442695, %v2856_v15  ;;  %v2857_v14 = vsub.f32 %v2825_v16, %v2849_v20  ;;  %v5968_v16 = vld [vmem:[%s7515_s3 + $0xc0] sm:$0xff]   ;;  %v5969_v15 = vld [vmem:[%s7515_s3 + $0xc8] sm:$0xff]  }
 0xaf4   : > { %v2874_v17 = vsel %vm1389_vm2, %v6157_v27, 0.0  ;;  %5727 = vmatprep.subr.bf16.mxu1 %v5968_v16 }
 0xaf5   : > { %v6159_v44 = vpop.eup %6158  ;;  %6168 = vpow2.f32 %v2870_v29  ;;  %v2872_v48 = vmul.f32 1.442695, %v2857_v14  ;;  %2875 = vadd.xlane.f32.xlu0 %v2874_v17 }
 0xaf6   : > { %v2877_v19 = vsel %vm1389_vm2, %v6159_v44, 0.0 }
 0xaf7   : > { %v6161_v43 = vpop.eup %6160  ;;  %6170 = vpow2.f32 %v2872_v48  ;;  %2878 = vadd.xlane.f32.xlu1 %v2877_v19 }
 0xaf8   : > { %v2880_v59 = vsel %vm1389_vm2, %v6161_v43, 0.0 }
 0xaf9   : > { %v6163_v45 = vpop.eup %6162  ;;  %2881 = vadd.xlane.f32.xlu0 %v2880_v59 }
 0xafa   : > { %v2883_v26 = vsel %vm1389_vm2, %v6163_v45, 0.0 }
 0xafb   : > { %v6165_v46 = vpop.eup %6164  ;;  %2884 = vadd.xlane.f32.xlu1 %v2883_v26  ;;  %v5972_v26 = vld [vmem:[%s7515_s3 + $0xe0] sm:$0xff]  }
 0xafc   : > { %v2886_v4 = vsel %vm1389_vm2, %v6165_v46, 0.0 }
 0xafd   : > { %v6167_v7 = vpop.eup %6166  ;;  %2887 = vadd.xlane.f32.xlu0 %v2886_v4  ;;  %v5974_v4 = vld [vmem:[%s7515_s3 + $0xf0] sm:$0xff]  }
 0xafe   : > { %v2889_v12 = vsel %vm1389_vm2, %v6167_v7, 0.0 }
 0xaff   : > { %v6169_v33 = vpop.eup %6168  ;;  %2890 = vadd.xlane.f32.xlu1 %v2889_v12  ;;  %v5976_v12 = vld [vmem:[%s7517_s5 + $0xc0] sm:$0xff]  }
 0xb00   : > { %v2892_v0 = vsel %vm1389_vm2, %v6169_v33, 0.0 }
 0xb01   : > { %v6171_v1 = vpop.eup %6170  ;;  %2893 = vadd.xlane.f32.xlu0 %v2892_v0  ;;  %v5978_v0 = vld [vmem:[%s7517_s5 + $0xd0] sm:$0xff]  }
 0xb02   : > { %v2895_v41 = vsel %vm1389_vm2, %v6171_v1, 0.0 }
 0xb03   : > { %2896 = vadd.xlane.f32.xlu1 %v2895_v41  ;;  %v5980_v41 = vld [vmem:[%s7517_s5 + $0xe0] sm:$0xff]  }
 0xb82   : > { %v2876_v50 = vpop.xlane.xlu0 %2875 }
 0xb83   : > { %6172 = vrcp.f32 %v2876_v50  ;;  %v5986_v50 = vld [vmem:[%s7516_s4 + $0xc0] sm:$0xff]  }
 0xb84   : > { %v2879_v51 = vpop.xlane.xlu1 %2878  ;;  %5751 = vmatprep.subr.bf16.mxu0 %v5986_v50 }
 0xb85   : > { %6174 = vrcp.f32 %v2879_v51 }
 0xb86   : > { %v2882_v63 = vpop.xlane.xlu0 %2881 }
 0xb87   : > { %6176 = vrcp.f32 %v2882_v63 }
 0xb88   : > { %v2885_v49 = vpop.xlane.xlu1 %2884 }
 0xb89   : > { %6178 = vrcp.f32 %v2885_v49 }
 0xb8a   : > { %v2888_v52 = vpop.xlane.xlu0 %2887 }
 0xb8b   : > { %6180 = vrcp.f32 %v2888_v52 }
 0xb8c   : > { %v2891_v13 = vpop.xlane.xlu1 %2890 }
 0xb8d   : > { %v6173_v60 = vpop.eup %6172  ;;  %6182 = vrcp.f32 %v2891_v13 }
 0xb8e   : > { %v2894_v54 = vpop.xlane.xlu0 %2893  ;;  %v2899_v22 = vmul.f32 %v6173_v60, %v6157_v27 }
 0xb8f   : > { %v6175_v21 = vpop.eup %6174  ;;  %6184 = vrcp.f32 %v2894_v54  ;;  %v5987_v54 = vld [vmem:[%s7516_s4 + $0xc8] sm:$0xff]  }
 0xb90   : > { %v2897_v24 = vpop.xlane.xlu1 %2896  ;;  %v2901_v23 = vmul.f32 %v6175_v21, %v6159_v44  ;;  %v5970_v44 = vld [vmem:[%s7515_s3 + $0xd0] sm:$0xff]  }
 0xb91   : > { %v6177_v32 = vpop.eup %6176  ;;  %6186 = vrcp.f32 %v2897_v24 }
 0xb92   : > { %v2914_v28 = vpack.c.bf16 %v2901_v23, %v2899_v22  ;;  %v2903_v31 = vmul.f32 %v6177_v32, %v6161_v43  ;;  %v5988_v22 = vld [vmem:[%s7516_s4 + $0xd0] sm:$0xff]  }
 0xb93   : > { %v6179_v30 = vpop.eup %6178 }
 0xb94   : > { %v2905_v35 = vmul.f32 %v6179_v30, %v6163_v45  ;;  %5707 = vmatprep.mubr.msk.bf16.mxu1 %vm1389_vm2, %v2914_v28  ;;  %v5971_v45 = vld [vmem:[%s7515_s3 + $0xd8] sm:$0xff]  }
 0xb95   : > { %v6181_v55 = vpop.eup %6180 }
 0xb96   : > { %v2915_v56 = vpack.c.bf16 %v2905_v35, %v2903_v31  ;;  %v2907_v29 = vmul.f32 %v6181_v55, %v6165_v46  ;;  %v5973_v46 = vld [vmem:[%s7515_s3 + $0xe8] sm:$0xff]   ;;  %v5989_v31 = vld [vmem:[%s7516_s4 + $0xd8] sm:$0xff]   ;;  %v5990_v35 = vld [vmem:[%s7516_s4 + $0xe0] sm:$0xff]  }
 0xb97   : > { %v6183_v20 = vpop.eup %6182  ;;  %v5991_v55 = vld [vmem:[%s7516_s4 + $0xe8] sm:$0xff]  }
 0xb98   : > { %5708 = vmatmul.mubr.msk.bf16.vlgmr.msra.gmra.mrb[64].mxu1 %vm1389_vm2, %v2915_v56  ;;  %v2909_v27 = vmul.f32 %v6183_v20, %v6167_v7  ;;  %v5975_v7 = vld [vmem:[%s7515_s3 + $0xf8] sm:$0xff]   ;;  %v5992_v56 = vld [vmem:[%s7516_s4 + $0xf0] sm:$0xff]  }
 0xb99   : > { %v6185_v14 = vpop.eup %6184  ;;  %5728 = vmatpush3.bf16.msra.mxu1 %v5968_v16  ;;  %v5981_v16 = vld [vmem:[%s7517_s5 + $0xe8] sm:$0xff]  }
 0xb9a   : > { %5729 = vmatprep.subr.bf16.mxu1 %v5969_v15  ;;  %v2916_v17 = vpack.c.bf16 %v2909_v27, %v2907_v29  ;;  %v2911_v19 = vmul.f32 %v6185_v14, %v6169_v33  ;;  %v5977_v33 = vld [vmem:[%s7517_s5 + $0xc8] sm:$0xff]  }
 0xb9b   : > { %v6187_v48 = vpop.eup %6186 }
 0xb9c   : > { %5711 = vmatprep.mubr.msk.bf16.mxu1 %vm1389_vm2, %v2916_v17  ;;  %v2913_v43 = vmul.f32 %v6187_v48, %v6171_v1  ;;  %v5979_v1 = vld [vmem:[%s7517_s5 + $0xd8] sm:$0xff]  }
 0xb9d   : > { %5730 = vmatpush3.bf16.msra.mxu1 %v5969_v15 }
 0xb9e   : > { %5731 = vmatprep.subr.bf16.mxu1 %v5970_v44  ;;  %v2917_v59 = vpack.c.bf16 %v2913_v43, %v2911_v19 }
 0xba0   : > { %5712 = vmatmul.mubr.msk.bf16.gmra.mrb[68].mxu1 %vm1389_vm2, %v2917_v59 }
 0xba1   : > { %5732 = vmatpush3.bf16.msra.mxu1 %v5970_v44  ;;  %5743 = vmatprep.mubr.bf16.mxu1 %v6465_v53 }
 0xba2   : > { %5733 = vmatprep.subr.bf16.mxu1 %v5971_v45 }
 0xba5   : > { %5734 = vmatpush3.bf16.msra.mxu1 %v5971_v45 }
 0xba6   : > { %5735 = vmatprep.subr.bf16.mxu1 %v5972_v26 }
 0xba9   : > { %5736 = vmatpush3.bf16.msra.mxu1 %v5972_v26 }
 0xbaa   : > { %5737 = vmatprep.subr.bf16.mxu1 %v5973_v46 }
 0xbad   : > { %5738 = vmatpush3.bf16.msra.mxu1 %v5973_v46 }
 0xbae   : > { %5739 = vmatprep.subr.bf16.mxu1 %v5974_v4 }
 0xbb1   : > { %5740 = vmatpush3.bf16.msra.mxu1 %v5974_v4 }
 0xbb2   : > { %5741 = vmatprep.subr.bf16.mxu1 %v5975_v7 }
 0xbb5   : > { %5742 = vmatpush3.bf16.msra.mxu1 %v5975_v7 }
 0xbb6   : > { %5775 = vmatprep.subr.bf16.mxu1 %v5976_v12 }
 0xbb8   : > { %5744 = vmatmul.mubr.bf16.vlgmr.msra.gmra.mrb[72].mxu1 %v6471_v61 }
 0xbb9   : > { %5747 = vmatprep.mubr.bf16.mxu1 %v6480_v34  ;;  %5776 = vmatpush3.bf16.msra.mxu1 %v5976_v12 }
 0xbba   : > { %5777 = vmatprep.subr.bf16.mxu1 %v5977_v33 }
 0xbbd   : > { %5778 = vmatpush3.bf16.msra.mxu1 %v5977_v33 }
 0xbbe   : > { %5779 = vmatprep.subr.bf16.mxu1 %v5978_v0 }
 0xbc0   : > { %5748 = vmatmul.mubr.bf16.gmra.mrb[76].mxu1 %v6487_v42 }
 0xbc1   : > { %5780 = vmatpush3.bf16.msra.mxu1 %v5978_v0  ;;  %5791 = vmatprep.mubr.bf16.mxu1 %v6465_v53 }
 0xbc2   : > { %5781 = vmatprep.subr.bf16.mxu1 %v5979_v1 }
 0xbc5   : > { %5782 = vmatpush3.bf16.msra.mxu1 %v5979_v1 }
 0xbc6   : > { %5783 = vmatprep.subr.bf16.mxu1 %v5980_v41 }
 0xbc9   : > { %5784 = vmatpush3.bf16.msra.mxu1 %v5980_v41 }
 0xbca   : > { %5785 = vmatprep.subr.bf16.mxu1 %v5981_v16 }
 0xbcd   : > { %5786 = vmatpush3.bf16.msra.mxu1 %v5981_v16 }
 0xbce   : > { %5787 = vmatprep.subr.bf16.mxu1 %v5982_v36 }
 0xbd1   : > { %5788 = vmatpush3.bf16.msra.mxu1 %v5982_v36 }
 0xbd2   : > { %5789 = vmatprep.subr.bf16.mxu1 %v5983_v47 }
 0xbd5   : > { %5790 = vmatpush3.bf16.msra.mxu1 %v5983_v47 }
 0xbd8   : > { %5792 = vmatmul.mubr.bf16.vlgmr.msra.gmra.mrb[80].mxu1 %v6471_v61 }
 0xbd9   : > { %5795 = vmatprep.mubr.bf16.mxu1 %v6480_v34 }
 0xbe0   : > { %5796 = vmatmul.mubr.bf16.gmra.mrb[84].mxu1 %v6487_v42 }
 0xc6b   : > { %v5709_v51 = vpop.f32.mrb[64].mxu1 }
 0xc6c   : > { %v2968_v63 = vpop.f32.mrb[65].mxu1 }
 0xc6d   : > { %v5710_v49 = vpop.f32.mrb[66].mxu1 }
 0xc6e   : > { %v3000_v52 = vpack.c.bf16 %v5710_v49, %v5709_v51  ;;  %v2971_v13 = vpop.f32.mrb[67].mxu1 }
 0xc6f   : > { %v2999_v60 = vpack.c.bf16 %v2971_v13, %v2968_v63 }
 0xc71   : > { %5719 = vmatprep.mubr.msk.bf16.mxu0 %vm1283_vm0, %v2999_v60 }
 0xc72   : > { %5720 = vmatmul.mubr.msk.bf16.vlgmr.msra.gmra.mrb[32].mxu0 %vm1283_vm0, %v3000_v52 }
 0xc73   : > { %5752 = vmatpush3.bf16.msra.mxu0 %v5986_v50  ;;  %v5713_v21 = vpop.f32.mrb[68].mxu1 }
 0xc74   : > { %v2984_v24 = vpop.f32.mrb[69].mxu1  ;;  %5753 = vmatprep.subr.bf16.mxu0 %v5987_v54 }
 0xc75   : > { %v5714_v23 = vpop.f32.mrb[70].mxu1 }
 0xc76   : > { %v3002_v32 = vpack.c.bf16 %v5714_v23, %v5713_v21  ;;  %v2987_v28 = vpop.f32.mrb[71].mxu1 }
 0xc77   : > { %v3001_v30 = vpack.c.bf16 %v2987_v28, %v2984_v24  ;;  %5754 = vmatpush3.bf16.msra.mxu0 %v5987_v54 }
 0xc78   : > { %5755 = vmatprep.subr.bf16.mxu0 %v5988_v22 }
 0xc79   : > { %5723 = vmatprep.mubr.msk.bf16.mxu0 %vm1283_vm0, %v3001_v30 }
 0xc7a   : > { %5724 = vmatmul.mubr.msk.bf16.gmra.mrb[36].mxu0 %vm1283_vm0, %v3002_v32 }
 0xc7b   : > { %5756 = vmatpush3.bf16.msra.mxu0 %v5988_v22  ;;  %5767 = vmatprep.mubr.bf16.mxu0 %v6465_v53  ;;  %v5993_v53 = vld [vmem:[%s7516_s4 + $0xf8] sm:$0xff]  }
 0xc7c   : > { %5757 = vmatprep.subr.bf16.mxu0 %v5989_v31 }
 0xc7f   : > { %5758 = vmatpush3.bf16.msra.mxu0 %v5989_v31 }
 0xc80   : > { %5759 = vmatprep.subr.bf16.mxu0 %v5990_v35 }
 0xc83   : > { %5760 = vmatpush3.bf16.msra.mxu0 %v5990_v35 }
 0xc84   : > { %5761 = vmatprep.subr.bf16.mxu0 %v5991_v55 }
 0xc87   : > { %5762 = vmatpush3.bf16.msra.mxu0 %v5991_v55 }
 0xc88   : > { %5763 = vmatprep.subr.bf16.mxu0 %v5992_v56 }
 0xc8b   : > { %v7049_v15 = vpop.f32.mrb[72].mxu1  ;;  %5764 = vmatpush3.bf16.msra.mxu0 %v5992_v56 }
 0xc8c   : > { %v3182_v20 = vpop.f32.mrb[73].mxu1  ;;  %5765 = vmatprep.subr.bf16.mxu0 %v5993_v53 }
 0xc8d   : > { %v5746_v29 = vpop.f32.mrb[74].mxu1 }
 0xc8e   : > { %v3440_v27 = vpack.c.bf16 %v5746_v29, %v7049_v15  ;;  %v3185_v14 = vpop.f32.mrb[75].mxu1 }
 0xc8f   : > { %v3439_v17 = vpack.c.bf16 %v3185_v14, %v3182_v20  ;;  %5766 = vmatpush3.bf16.msra.mxu0 %v5993_v53 }
 0xc92   : > { %5768 = vmatmul.mubr.bf16.vlgmr.msra.gmra.mrb[56].mxu0 %v6471_v61 }
 0xc93   : > { %v5749_v44 = vpop.f32.mrb[76].mxu1  ;;  %5771 = vmatprep.mubr.bf16.mxu0 %v6480_v34 }
 0xc94   : > { %v3198_v48 = vpop.f32.mrb[77].mxu1 }
 0xc95   : > { %v5750_v19 = vpop.f32.mrb[78].mxu1 }
 0xc96   : > { %v3442_v43 = vpack.c.bf16 %v5750_v19, %v5749_v44  ;;  %v3201_v59 = vpop.f32.mrb[79].mxu1 }
 0xc97   : > { %v3441_v45 = vpack.c.bf16 %v3201_v59, %v3198_v48 }
 0xc9a   : > { %5772 = vmatmul.mubr.bf16.gmra.mrb[60].mxu0 %v6487_v42 }
 0xc9b   : > { %5807 = vmatprep.mubr.msk.bf16.mxu0 %vm1283_vm0, %v3439_v17 }
 0xcab   : > { %v5793_v26 = vpop.f32.mrb[80].mxu1 }
 0xcac   : > { %v3408_v46 = vpop.f32.mrb[81].mxu1 }
 0xcad   : > { %v5794_v4 = vpop.f32.mrb[82].mxu1 }
 0xcae   : > { %v3645_v7 = vpack.c.bf16 %v5794_v4, %v5793_v26  ;;  %v3411_v12 = vpop.f32.mrb[83].mxu1 }
 0xcaf   : > { %v3644_v33 = vpack.c.bf16 %v3411_v12, %v3408_v46 }
 0xcb1   : > { %5815 = vmatprep.subr.bf16.mxu1 %v3644_v33 }
 0xcb2   : > { %5816 = vmatpush3.bf16.msra.mxu1 %v3644_v33 }
 0xcb3   : > { %v5797_v61 = vpop.f32.mrb[84].mxu1  ;;  %5817 = vmatprep.subr.bf16.mxu1 %v3645_v7 }
 0xcb4   : > { %v3424_v34 = vpop.f32.mrb[85].mxu1 }
 0xcb5   : > { %v5798_v0 = vpop.f32.mrb[86].mxu1 }
 0xcb6   : > { %v3647_v1 = vpack.c.bf16 %v5798_v0, %v5797_v61  ;;  %v3427_v41 = vpop.f32.mrb[87].mxu1  ;;  %5818 = vmatpush3.bf16.msra.mxu1 %v3645_v7 }
 0xcb7   : > { %v3646_v16 = vpack.c.bf16 %v3427_v41, %v3424_v34 }
 0xcb9   : > { %5819 = vmatprep.subr.bf16.mxu1 %v3646_v16 }
 0xcba   : > { %5820 = vmatpush3.bf16.msra.mxu1 %v3646_v16 }
 0xcbb   : > { %5821 = vmatprep.subr.bf16.mxu1 %v3647_v1 }
 0xcbe   : > { %5822 = vmatpush3.bf16.msra.mxu1 %v3647_v1 }
 0xd65   : > { %v5769_v42 = vpop.f32.mrb[56].mxu0 }
 0xd66   : > { %v3295_v36 = vpop.f32.mrb[57].mxu0 }
 0xd67   : > { %v5770_v47 = vpop.f32.mrb[58].mxu0 }
 0xd68   : > { %v3444_v50 = vpack.c.bf16 %v5770_v47, %v5769_v42  ;;  %v3298_v51 = vpop.f32.mrb[59].mxu0 }
 0xd69   : > { %v3443_v63 = vpack.c.bf16 %v3298_v51, %v3295_v36 }
 0xd6a   : > { %v3463_v22 = vsel %vm1283_vm0, %v3444_v50, 0 }
 0xd6b   : > { %v3460_v49 = vsel %vm1283_vm0, %v3443_v63, 0  ;;  %5879 = vmatprep.subr.msk.bf16.mxu0 %vm1283_vm0, %v3443_v63 }
 0xd6c   : > { %5800 = vmatpush3.bf16.xpose.msra.mxu0 %v3460_v49 }
 0xd6d   : > { %v5773_v52 = vpop.f32.mrb[60].mxu0  ;;  %5880 = vmatprep.subr.msk.bf16.mxu0 %vm1283_vm0, %v3444_v50 }
 0xd6e   : > { %v3311_v13 = vpop.f32.mrb[61].mxu0 }
 0xd6f   : > { %v5774_v60 = vpop.f32.mrb[62].mxu0 }
 0xd70   : > { %v3446_v54 = vpack.c.bf16 %v5774_v60, %v5773_v52  ;;  %v3314_v21 = vpop.f32.mrb[63].mxu0 }
 0xd71   : > { %v3445_v24 = vpack.c.bf16 %v3314_v21, %v3311_v13 }
 0xd72   : > { %v3469_v32 = vsel %vm1283_vm0, %v3446_v54, 0 }
 0xd73   : > { %v3466_v23 = vsel %vm1283_vm0, %v3445_v24, 0 }
 0xd74   : > { %5802 = vmatpush3.bf16.xpose.msra.mxu0 %v3463_v22 }
 0xd75   : > { %5881 = vmatprep.subr.msk.bf16.mxu0 %vm1283_vm0, %v3445_v24 }
 0xd7c   : > { %5804 = vmatpush3.bf16.xpose.msra.mxu0 %v3466_v23 }
 0xd7d   : > { %5882 = vmatprep.subr.msk.bf16.mxu0 %vm1283_vm0, %v3446_v54 }
 0xd84   : > { %5806 = vmatpush3.bf16.xpose.msra.mxu0 %v3469_v32 }
 0xd8b   : > { %5808 = vmatmul.mubr.msk.bf16.vlgmr.msra.gmra.mrb[64].mxu0 %vm1283_vm0, %v3440_v27 }
 0xd8c   : > { %5811 = vmatprep.mubr.msk.bf16.mxu0 %vm1283_vm0, %v3441_v45 }
 0xd93   : > { %5812 = vmatmul.mubr.msk.bf16.gmra.mrb[68].mxu0 %vm1283_vm0, %v3442_v43 }
 0xe5e   : > { %v5809_v28 = vpop.f32.mrb[64].mxu0 }
 0xe5f   : > { %v3505_v30 = vpop.f32.mrb[65].mxu0  ;;  %v3538_v31 = vmul.f32 0.17677669, %v5809_v28 }
 0xe60   : > { %v3536_v35 = vmul.f32 0.17677669, %v3505_v30  ;;  %v5810_v55 = vpop.f32.mrb[66].mxu0 }
 0xe61   : > { %v3508_v56 = vpop.f32.mrb[67].mxu0  ;;  %v3539_v53 = vmul.f32 0.17677669, %v5810_v55  ;;  %v3546_v14 = vsel %vm930_vm4, %v3538_v31, -1e+30 }
 0xe62   : > { %v3537_v15 = vmul.f32 0.17677669, %v3508_v56  ;;  %v3544_v20 = vsel %vm928_vm1, %v3536_v35, -1e+30  ;;  %v3558_v43 = vsel %vm1389_vm2, %v3546_v14, -inf }
 0xe63   : > { %v3552_v29 = vsel %vm1389_vm2, %v3544_v20, -inf  ;;  %v3547_v48 = vsel %vm931_vm5, %v3539_v53, -1e+30 }
 0xe64   : > { %3553 = vmax.xlane.f32.xlu0 %v3552_v29  ;;  %v3545_v27 = vsel %vm929_vm3, %v3537_v15, -1e+30  ;;  %v3561_v46 = vsel %vm1389_vm2, %v3547_v48, -inf }
 0xe65   : > { %v3555_v17 = vsel %vm1389_vm2, %v3545_v27, -inf }
 0xe66   : > { %3556 = vmax.xlane.f32.xlu1 %v3555_v17  ;;  %v5813_v44 = vpop.f32.mrb[68].mxu0 }
 0xe67   : > { %v3521_v19 = vpop.f32.mrb[69].mxu0  ;;  %v3542_v59 = vmul.f32 0.17677669, %v5813_v44 }
 0xe68   : > { %v3540_v45 = vmul.f32 0.17677669, %v3521_v19  ;;  %3559 = vmax.xlane.f32.xlu0 %v3558_v43  ;;  %v5814_v39 = vpop.f32.mrb[70].mxu0 }
 0xe69   : > { %v3524_v26 = vpop.f32.mrb[71].mxu0  ;;  %v3543_v40 = vmul.f32 0.17677669, %v5814_v39  ;;  %v3550_v33 = vsel %vm934_vm8, %v3542_v59, -1e+30  ;;  %v5994_v59 = vld [vmem:[%s7518_s6 + $0x30] sm:$0xff]  }
 0xe6a   : > { %v3541_v4 = vmul.f32 0.17677669, %v3524_v26  ;;  %3562 = vmax.xlane.f32.xlu1 %v3561_v46  ;;  %v3548_v7 = vsel %vm932_vm6, %v3540_v45, -1e+30  ;;  %v3570_v25 = vsel %vm1389_vm2, %v3550_v33, -inf  ;;  %v5995_v45 = vld [vmem:[%s7518_s6 + $0x38] sm:$0xff]   ;;  %5831 = vmatprep.subr.bf16.mxu0 %v5994_v59 }
 0xe6b   : > { %v3564_v18 = vsel %vm1389_vm2, %v3548_v7, -inf  ;;  %v3551_v34 = vsel %vm935_vm9, %v3543_v40, -1e+30  ;;  %5832 = vmatpush3.bf16.msra.mxu0 %v5994_v59 }
 0xe6c   : > { %3565 = vmax.xlane.f32.xlu0 %v3564_v18  ;;  %v3549_v12 = vsel %vm933_vm7, %v3541_v4, -1e+30  ;;  %v3573_v0 = vsel %vm1389_vm2, %v3551_v34, -inf  ;;  %5833 = vmatprep.subr.bf16.mxu0 %v5995_v45 }
 0xe6d   : > { %v3567_v61 = vsel %vm1389_vm2, %v3549_v12, -inf }
 0xe6e   : > { %3568 = vmax.xlane.f32.xlu1 %v3567_v61 }
 0xe6f   : > { %5834 = vmatpush3.bf16.msra.mxu0 %v5995_v45 }
 0xe70   : > { %3571 = vmax.xlane.f32.xlu0 %v3570_v25 }
 0xe72   : > { %3574 = vmax.xlane.f32.xlu1 %v3573_v0 }
 0xef1   : > { %v3554_v1 = vpop.xlane.xlu0 %3553 }
 0xef2   : > { %v3576_v57 = vsub.f32 %v3544_v20, %v3554_v1 }
 0xef3   : > { %v3557_v41 = vpop.xlane.xlu1 %3556 }
 0xef4   : > { %v3584_v16 = vmul.f32 1.442695, %v3576_v57  ;;  %v3577_v42 = vsub.f32 %v3545_v27, %v3557_v41 }
 0xef5   : > { %v3560_v58 = vpop.xlane.xlu0 %3559 }
 0xef6   : > { %6188 = vpow2.f32 %v3584_v16  ;;  %v3586_v36 = vmul.f32 1.442695, %v3577_v42  ;;  %v3578_v47 = vsub.f32 %v3546_v14, %v3560_v58 }
 0xef7   : > { %v3563_v50 = vpop.xlane.xlu1 %3562 }
 0xef8   : > { %6190 = vpow2.f32 %v3586_v36  ;;  %v3588_v51 = vmul.f32 1.442695, %v3578_v47  ;;  %v3579_v38 = vsub.f32 %v3547_v48, %v3563_v50 }
 0xef9   : > { %v3566_v62 = vpop.xlane.xlu0 %3565 }
 0xefa   : > { %6192 = vpow2.f32 %v3588_v51  ;;  %v3590_v63 = vmul.f32 1.442695, %v3579_v38  ;;  %v3580_v49 = vsub.f32 %v3548_v7, %v3566_v62 }
 0xefb   : > { %v3569_v52 = vpop.xlane.xlu1 %3568 }
 0xefc   : > { %6194 = vpow2.f32 %v3590_v63  ;;  %v3592_v13 = vmul.f32 1.442695, %v3580_v49  ;;  %v3581_v60 = vsub.f32 %v3549_v12, %v3569_v52 }
 0xefd   : > { %v3572_v54 = vpop.xlane.xlu0 %3571 }
 0xefe   : > { %6196 = vpow2.f32 %v3592_v13  ;;  %v3594_v21 = vmul.f32 1.442695, %v3581_v60  ;;  %v3582_v24 = vsub.f32 %v3550_v33, %v3572_v54 }
 0xeff   : > { %v3575_v22 = vpop.xlane.xlu1 %3574 }
 0xf00   : > { %v6189_v23 = vpop.eup %6188  ;;  %6198 = vpow2.f32 %v3594_v21  ;;  %v3596_v32 = vmul.f32 1.442695, %v3582_v24  ;;  %v3583_v28 = vsub.f32 %v3551_v34, %v3575_v22 }
 0xf01   : > { %v3600_v30 = vsel %vm1389_vm2, %v6189_v23, 0.0 }
 0xf02   : > { %v6191_v31 = vpop.eup %6190  ;;  %6200 = vpow2.f32 %v3596_v32  ;;  %v3598_v35 = vmul.f32 1.442695, %v3583_v28  ;;  %3601 = vadd.xlane.f32.xlu0 %v3600_v30 }
 0xf03   : > { %v3603_v55 = vsel %vm1389_vm2, %v6191_v31, 0.0 }
 0xf04   : > { %v6193_v56 = vpop.eup %6192  ;;  %6202 = vpow2.f32 %v3598_v35  ;;  %3604 = vadd.xlane.f32.xlu1 %v3603_v55  ;;  %v4937_v55 = vld [vmem:[%s7519_s7] ss:$0 sm:$0xff] }
 0xf05   : > { %v3606_v53 = vsel %vm1389_vm2, %v6193_v56, 0.0 }
 0xf06   : > { %v6195_v15 = vpop.eup %6194  ;;  %3607 = vadd.xlane.f32.xlu0 %v3606_v53 }
 0xf07   : > { %v3609_v20 = vsel %vm1389_vm2, %v6195_v15, 0.0 }
 0xf08   : > { %v6197_v29 = vpop.eup %6196  ;;  %3610 = vadd.xlane.f32.xlu1 %v3609_v20 }
 0xf09   : > { %v3612_v27 = vsel %vm1389_vm2, %v6197_v29, 0.0 }
 0xf0a   : > { %v6199_v14 = vpop.eup %6198  ;;  %3613 = vadd.xlane.f32.xlu0 %v3612_v27 }
 0xf0b   : > { %v3615_v17 = vsel %vm1389_vm2, %v6199_v14, 0.0 }
 0xf0c   : > { %v6201_v44 = vpop.eup %6200  ;;  %3616 = vadd.xlane.f32.xlu1 %v3615_v17 }
 0xf0d   : > { %v3618_v48 = vsel %vm1389_vm2, %v6201_v44, 0.0 }
 0xf0e   : > { %v6203_v19 = vpop.eup %6202  ;;  %3619 = vadd.xlane.f32.xlu0 %v3618_v48 }
 0xf0f   : > { %v3621_v43 = vsel %vm1389_vm2, %v6203_v19, 0.0 }
 0xf10   : > { %3622 = vadd.xlane.f32.xlu1 %v3621_v43 }
 0xf8f   : > { %v3602_v39 = vpop.xlane.xlu0 %3601 }
 0xf90   : > { %6204 = vrcp.f32 %v3602_v39 }
 0xf91   : > { %v3605_v26 = vpop.xlane.xlu1 %3604 }
 0xf92   : > { %6206 = vrcp.f32 %v3605_v26 }
 0xf93   : > { %v3608_v46 = vpop.xlane.xlu0 %3607 }
 0xf94   : > { %6208 = vrcp.f32 %v3608_v46 }
 0xf95   : > { %v3611_v40 = vpop.xlane.xlu1 %3610 }
 0xf96   : > { %6210 = vrcp.f32 %v3611_v40 }
 0xf97   : > { %v3614_v4 = vpop.xlane.xlu0 %3613 }
 0xf98   : > { %6212 = vrcp.f32 %v3614_v4 }
 0xf99   : > { %v3617_v7 = vpop.xlane.xlu1 %3616 }
 0xf9a   : > { %v6205_v18 = vpop.eup %6204  ;;  %6214 = vrcp.f32 %v3617_v7 }
 0xf9b   : > { %v3620_v12 = vpop.xlane.xlu0 %3619  ;;  %v3625_v34 = vmul.f32 %v6205_v18, %v6189_v23  ;;  %v6004_v18 = vld [vmem:[%s7522_s10 + $0x24] ss:$16 sps:$4 sm:$0xff]  }
 0xf9c   : > { %v6207_v33 = vpop.eup %6206  ;;  %6216 = vrcp.f32 %v3620_v12  ;;  %v6007_v12 = vld [vmem:[%s7522_s10 + $0x2c] ss:$16 sps:$4 sm:$0xff]  }
 0xf9d   : > { %v3623_v61 = vpop.xlane.xlu1 %3622  ;;  %v3627_v25 = vmul.f32 %v6207_v33, %v6191_v31  ;;  %v6002_v33 = vld [vmem:[%s7522_s10 + $0x20] ss:$16 sps:$4 sm:$0xff]  }
 0xf9e   : > { %v6209_v0 = vpop.eup %6208  ;;  %6218 = vrcp.f32 %v3623_v61  ;;  %v6005_v61 = vld [vmem:[%s7522_s10 + $0x28] ss:$16 sps:$4 sm:$0xff]  }
 0xf9f   : > { %v3640_v1 = vpack.c.bf16 %v3627_v25, %v3625_v34  ;;  %v3629_v41 = vmul.f32 %v6209_v0, %v6193_v56 }
 0xfa0   : > { %v6211_v57 = vpop.eup %6210 }
 0xfa1   : > { %v3631_v16 = vmul.f32 %v6211_v57, %v6195_v15  ;;  %5823 = vmatprep.mubr.msk.bf16.mxu1 %vm1389_vm2, %v3640_v1 }
 0xfa2   : > { %v6213_v42 = vpop.eup %6212 }
 0xfa3   : > { %v3641_v58 = vpack.c.bf16 %v3631_v16, %v3629_v41  ;;  %v3633_v47 = vmul.f32 %v6213_v42, %v6197_v29 }
 0xfa4   : > { %v6215_v36 = vpop.eup %6214 }
 0xfa5   : > { %5824 = vmatmul.mubr.msk.bf16.vlgmr.msra.gmra.mrb[88].mxu1 %vm1389_vm2, %v3641_v58  ;;  %v3635_v50 = vmul.f32 %v6215_v36, %v6199_v14 }
 0xfa6   : > { %v6217_v51 = vpop.eup %6216 }
 0xfa7   : > { %v3642_v38 = vpack.c.bf16 %v3635_v50, %v3633_v47  ;;  %v3637_v63 = vmul.f32 %v6217_v51, %v6201_v44 }
 0xfa8   : > { %v6219_v62 = vpop.eup %6218 }
 0xfa9   : > { %5827 = vmatprep.mubr.msk.bf16.mxu1 %vm1389_vm2, %v3642_v38  ;;  %v3639_v49 = vmul.f32 %v6219_v62, %v6203_v19 }
 0xfab   : > { %v3643_v52 = vpack.c.bf16 %v3639_v49, %v3637_v63 }
 0xfad   : > { %5828 = vmatmul.mubr.msk.bf16.gmra.mrb[92].mxu1 %vm1389_vm2, %v3643_v52 }
0x1078   : > { %v5825_v13 = vpop.f32.mrb[88].mxu1 }
0x1079   : > { %v3694_v60 = vpop.f32.mrb[89].mxu1 }
0x107a   : > { %v5826_v54 = vpop.f32.mrb[90].mxu1 }
0x107b   : > { %v3726_v21 = vpack.c.bf16 %v5826_v54, %v5825_v13  ;;  %v3697_v24 = vpop.f32.mrb[91].mxu1 }
0x107c   : > { %v3725_v22 = vpack.c.bf16 %v3697_v24, %v3694_v60 }
0x107e   : > { %5835 = vmatprep.mubr.msk.bf16.mxu0 %vm1283_vm0, %v3725_v22 }
0x107f   : > { %5836 = vmatmul.mubr.msk.bf16.vlgmr.msra.gmra.mrb[32].mxu0 %vm1283_vm0, %v3726_v21 }
0x1080   : > { %v5829_v23 = vpop.f32.mrb[92].mxu1 }
0x1081   : > { %v3710_v32 = vpop.f32.mrb[93].mxu1 }
0x1082   : > { %v5830_v28 = vpop.f32.mrb[94].mxu1 }
0x1083   : > { %v3728_v30 = vpack.c.bf16 %v5830_v28, %v5829_v23  ;;  %v3713_v31 = vpop.f32.mrb[95].mxu1 }
0x1084   : > { %v3727_v35 = vpack.c.bf16 %v3713_v31, %v3710_v32 }
0x1086   : > { %5839 = vmatprep.mubr.msk.bf16.mxu0 %vm1283_vm0, %v3727_v35 }
0x1087   : > { %5840 = vmatmul.mubr.msk.bf16.gmra.mrb[36].mxu0 %vm1283_vm0, %v3728_v30 }
0x1152   : > { %v5837_v56 = vpop.f32.mrb[32].mxu0 }
0x1153   : > { %v3787_v53 = vpop.f32.mrb[33].mxu0  ;;  %v3834_v27 = vadd.f32 %v5837_v56, %v4937_v55 }
0x1154   : > { %v3832_v15 = vadd.f32 %v4937_v55, %v3787_v53  ;;  %v5838_v20 = vpop.f32.mrb[34].mxu0  ;;  %v6010_v53 = vld [vmem:[%s7522_s10 + $0x44] ss:$16 sps:$4 sm:$0xff]  }
0x1155   : > { %v3790_v29 = vpop.f32.mrb[35].mxu0  ;;  %v3835_v44 = vadd.f32 %v5838_v20, %v4937_v55  ;;  %v7132_v19 = vadd.f32 %v6338_v3, %v3834_v27  ;;  %v6008_v20 = vld [vmem:[%s7522_s10 + $0x40] ss:$16 sps:$4 sm:$0xff]   ;;  %v6016_v27 = vld [vmem:[%s7522_s10 + $0x64] ss:$16 sps:$4 sm:$0xff]  }
0x1156   : > { %v7125_v14 = vadd.f32 %v6336_v2, %v3832_v15  ;;  %v3833_v17 = vadd.f32 %v4937_v55, %v3790_v29  ;;  %v6013_v15 = vld [vmem:[%s7522_s10 + $0x4c] ss:$16 sps:$4 sm:$0xff]   ;;  %v6011_v29 = vld [vmem:[%s7522_s10 + $0x48] ss:$16 sps:$4 sm:$0xff]  }
0x1157   : > { %v7136_v45 = vadd.f32 %v6344_v6, %v3835_v44  ;;  %v6014_v44 = vld [vmem:[%s7522_s10 + $0x60] ss:$16 sps:$4 sm:$0xff]  }
0x1158   : > { %v7128_v48 = vadd.f32 %v6342_v5, %v3833_v17  ;;  %3848 = vadd.xlane.f32.xlu0 %v7125_v14  ;;  %v6019_v17 = vld [vmem:[%s7522_s10 + $0x6c] ss:$16 sps:$4 sm:$0xff]  }
0x115a   : > { %3850 = vadd.xlane.f32.xlu1 %v7128_v48  ;;  %v5841_v43 = vpop.f32.mrb[36].mxu0 }
0x115b   : > { %v3803_v59 = vpop.f32.mrb[37].mxu0  ;;  %v3838_v46 = vadd.f32 %v5841_v43, %v4937_v55  ;;  %v6017_v43 = vld [vmem:[%s7522_s10 + $0x68] ss:$16 sps:$4 sm:$0xff]  }
0x115c   : > { %v3836_v39 = vadd.f32 %v4937_v55, %v3803_v59  ;;  %3852 = vadd.xlane.f32.xlu0 %v7132_v19  ;;  %v5842_v2 = vpop.f32.mrb[38].mxu0  ;;  %v6022_v59 = vld [vmem:[%s7522_s10 + $0x84] ss:$16 sps:$4 sm:$0xff]  }
0x115d   : > { %v3806_v26 = vpop.f32.mrb[39].mxu0  ;;  %v3839_v3 = vadd.f32 %v5842_v2, %v4937_v55  ;;  %v7148_v6 = vadd.f32 %v6354_v10, %v3838_v46  ;;  %v5999_v10 = vld [vmem:[%s7522_s10 + $0x8] ss:$16 sps:$4 sm:$0xff]   ;;  %v6020_v2 = vld [vmem:[%s7522_s10 + $0x80] ss:$16 sps:$4 sm:$0xff]  }
0x115e   : > { %v7140_v5 = vadd.f32 %v6348_v8, %v3836_v39  ;;  %v3837_v40 = vadd.f32 %v4937_v55, %v3806_v26  ;;  %3854 = vadd.xlane.f32.xlu1 %v7136_v45  ;;  %v5996_v8 = vld [vmem:[%s7522_s10] ss:$16 sps:$4 sm:$0xff]   ;;  %v6025_v39 = vld [vmem:[%s7522_s10 + $0x8c] ss:$16 sps:$4 sm:$0xff]   ;;  %v6023_v26 = vld [vmem:[%s7522_s10 + $0x88] ss:$16 sps:$4 sm:$0xff]  }
0x115f   : > { %v7152_v7 = vadd.f32 %v6356_v11, %v3839_v3  ;;  %v6001_v11 = vld [vmem:[%s7522_s10 + $0xc] ss:$16 sps:$4 sm:$0xff]   ;;  %v6028_v46 = vld [vmem:[%s7522_s10 + $0xa4] ss:$16 sps:$4 sm:$0xff]   ;;  %v6026_v3 = vld [vmem:[%s7522_s10 + $0xa0] ss:$16 sps:$4 sm:$0xff]  }
0x1160   : > { %v7144_v4 = vadd.f32 %v6350_v9, %v3837_v40  ;;  %3856 = vadd.xlane.f32.xlu0 %v7140_v5  ;;  %v5998_v9 = vld [vmem:[%s7522_s10 + $0x4] ss:$16 sps:$4 sm:$0xff]   ;;  %4222 = vmatprep.subr.bf16.mxu0 %v6001_v11  ;;  %v6031_v40 = vld [vmem:[%s7522_s10 + $0xac] ss:$16 sps:$4 sm:$0xff]   ;;  %v6032_v11 = vld [vmem:[%s7522_s10 + $0xc0] ss:$16 sps:$4 sm:$0xff]  }
0x1161   : > { %4149 = vmatprep.subr.bf16.mxu1 %v5998_v9  ;;  %4223 = vmatpush1.bf16.msra.mxu0 %v5999_v10  ;;  %v6034_v9 = vld [vmem:[%s7522_s10 + $0xc4] ss:$16 sps:$4 sm:$0xff]   ;;  %v6037_v10 = vld [vmem:[%s7522_s10 + $0xcc] ss:$16 sps:$4 sm:$0xff]  }
0x1162   : > { %3858 = vadd.xlane.f32.xlu1 %v7144_v4  ;;  %4150 = vmatpush1.bf16.msra.mxu1 %v5996_v8  ;;  %v6029_v8 = vld [vmem:[%s7522_s10 + $0xa8] ss:$16 sps:$4 sm:$0xff]  }
0x1163   : > { %4151 = vmatprep.subr.bf16.mxu1 %v6004_v18  ;;  %4224 = vmatprep.subr.bf16.mxu0 %v6007_v12  ;;  %v6035_v18 = vld [vmem:[%s7522_s10 + $0xc8] ss:$16 sps:$4 sm:$0xff]   ;;  %v6038_v12 = vld [vmem:[%s7522_s10 + $0xe0] ss:$16 sps:$4 sm:$0xff]  }
0x1164   : > { %3860 = vadd.xlane.f32.xlu0 %v7148_v6 }
0x1165   : > { %4225 = vmatpush1.bf16.msra.mxu0 %v6005_v61  ;;  %v6041_v61 = vld [vmem:[%s7522_s10 + $0xe8] ss:$16 sps:$4 sm:$0xff]  }
0x1166   : > { %3862 = vadd.xlane.f32.xlu1 %v7152_v7  ;;  %4152 = vmatpush1.bf16.msra.mxu1 %v6002_v33  ;;  %v6040_v33 = vld [vmem:[%s7522_s10 + $0xe4] ss:$16 sps:$4 sm:$0xff]  }
0x1167   : > { %4153 = vmatprep.subr.bf16.mxu1 %v6010_v53  ;;  %4226 = vmatprep.subr.bf16.mxu0 %v6013_v15  ;;  %v7303_v15 = vld [vmem:[%s7520_s8] ss:$0 sm:$0xff] }
0x1169   : > { %4227 = vmatpush1.bf16.msra.mxu0 %v6011_v29 }
0x116a   : > { %4154 = vmatpush1.bf16.msra.mxu1 %v6008_v20  ;;  %4228 = vmatprep.subr.bf16.mxu0 %v6019_v17 }
0x116b   : > { %4155 = vmatprep.subr.bf16.mxu1 %v6016_v27 }
0x116d   : > { %4229 = vmatpush1.bf16.msra.mxu0 %v6017_v43 }
0x116e   : > { %4156 = vmatpush1.bf16.msra.mxu1 %v6014_v44  ;;  %4230 = vmatprep.subr.bf16.mxu0 %v6025_v39 }
0x116f   : > { %4157 = vmatprep.subr.bf16.mxu1 %v6022_v59 }
0x1171   : > { %4231 = vmatpush1.bf16.msra.mxu0 %v6023_v26 }
0x1172   : > { %4158 = vmatpush1.bf16.msra.mxu1 %v6020_v2  ;;  %4232 = vmatprep.subr.bf16.mxu0 %v6031_v40  ;;  %v7311_v2 = vld [vmem:[%s7521_s9] ss:$0 sm:$0xff] }
0x1173   : > { %4159 = vmatprep.subr.bf16.mxu1 %v6028_v46 }
0x1175   : > { %4233 = vmatpush1.bf16.msra.mxu0 %v6029_v8 }
0x1176   : > { %4160 = vmatpush1.bf16.msra.mxu1 %v6026_v3  ;;  %4234 = vmatprep.subr.bf16.mxu0 %v6037_v10 }
0x1177   : > { %4161 = vmatprep.subr.bf16.mxu1 %v6034_v9 }
0x1179   : > { %4235 = vmatpush1.bf16.msra.mxu0 %v6035_v18 }
0x117a   : > { %4162 = vmatpush1.bf16.msra.mxu1 %v6032_v11  ;;  %v6045_v11 = vld [vmem:[%s7524_s12] sm:$0xff]  }
0x117b   : > { %4163 = vmatprep.subr.bf16.mxu1 %v6040_v33  ;;  %v6050_v33 = vld [vmem:[%s7524_s12 + $0xc8] sm:$0xff]  }
0x117e   : > { %4164 = vmatpush1.bf16.msra.mxu1 %v6038_v12  ;;  %v6047_v12 = vld [vmem:[%s7524_s12 + $0x80] sm:$0xff]  }
0x11e5   : > { %v3849_v34 = vpop.xlane.xlu0 %3848 }
0x11e6   : > { %v3864_v25 = vmul.f32 0.0078125, %v3849_v34  ;;  %v6043_v34 = vld [vmem:[%s7522_s10 + $0xec] ss:$16 sps:$4 sm:$0xff]  }
0x11e7   : > { %v3851_v0 = vpop.xlane.xlu1 %3850  ;;  %4236 = vmatprep.subr.bf16.mxu0 %v6043_v34 }
0x11e8   : > { %v7181_v1 = vsub.f32 %v7125_v14, %v3864_v25  ;;  %v3865_v57 = vmul.f32 0.0078125, %v3851_v0  ;;  %v6244_v25 = vmov 0   ;;  %4237 = vmatpush1.bf16.msra.mxu0 %v6041_v61  ;;  %v6044_v0 = vld [vmem:[%s7524_s12 + $0x40] sm:$0xff]  }
0x11e9   : > { %v3853_v41 = vpop.xlane.xlu0 %3852  ;;  %4181 = vmatprep.mubr.bf16.mxu1 %v6244_v25  ;;  %4254 = vmatprep.mubr.bf16.mxu0 %v6244_v25 }
0x11ea   : > { %v7184_v16 = vsub.f32 %v7128_v48, %v3865_v57  ;;  %v3866_v42 = vmul.f32 0.0078125, %v3853_v41  ;;  %v3880_v58 = vmul.f32 %v7181_v1, %v7181_v1  ;;  %v6046_v57 = vld [vmem:[%s7524_s12 + $0xc0] sm:$0xff]   ;;  %5299 = vmatprep.subr.bf16.mxu1 %v6044_v0 }
0x11eb   : > { %v3855_v36 = vpop.xlane.xlu1 %3854  ;;  %5339 = vmatprep.subr.bf16.mxu0 %v6046_v57  ;;  %v6049_v57 = vld [vmem:[%s7524_s12 + $0x8] sm:$0xff]  }
0x11ec   : > { %v7189_v47 = vsub.f32 %v7132_v19, %v3866_v42  ;;  %v3867_v50 = vmul.f32 0.0078125, %v3855_v36  ;;  %3888 = vadd.xlane.f32.xlu0 %v3880_v58  ;;  %v3881_v51 = vmul.f32 %v7184_v16, %v7184_v16 }
0x11ed   : > { %v3857_v38 = vpop.xlane.xlu0 %3856 }
0x11ee   : > { %v7194_v62 = vsub.f32 %v7136_v45, %v3867_v50  ;;  %v3868_v63 = vmul.f32 0.0078125, %v3857_v38  ;;  %3890 = vadd.xlane.f32.xlu1 %v3881_v51  ;;  %v3882_v49 = vmul.f32 %v7189_v47, %v7189_v47 }
0x11ef   : > { %v3859_v52 = vpop.xlane.xlu1 %3858 }
0x11f0   : > { %v7199_v13 = vsub.f32 %v7140_v5, %v3868_v63  ;;  %v3869_v60 = vmul.f32 0.0078125, %v3859_v52  ;;  %3892 = vadd.xlane.f32.xlu0 %v3882_v49  ;;  %v3883_v54 = vmul.f32 %v7194_v62, %v7194_v62 }
0x11f1   : > { %v3861_v21 = vpop.xlane.xlu0 %3860 }
0x11f2   : > { %v7204_v24 = vsub.f32 %v7144_v4, %v3869_v60  ;;  %v3870_v22 = vmul.f32 0.0078125, %v3861_v21  ;;  %3894 = vadd.xlane.f32.xlu1 %v3883_v54  ;;  %v3884_v23 = vmul.f32 %v7199_v13, %v7199_v13 }
0x11f3   : > { %v3863_v32 = vpop.xlane.xlu1 %3862 }
0x11f4   : > { %v7209_v28 = vsub.f32 %v7148_v6, %v3870_v22  ;;  %v3871_v30 = vmul.f32 0.0078125, %v3863_v32  ;;  %3896 = vadd.xlane.f32.xlu0 %v3884_v23  ;;  %v3885_v31 = vmul.f32 %v7204_v24, %v7204_v24 }
0x11f6   : > { %v7214_v35 = vsub.f32 %v7152_v7, %v3871_v30  ;;  %3898 = vadd.xlane.f32.xlu1 %v3885_v31  ;;  %v3886_v55 = vmul.f32 %v7209_v28, %v7209_v28 }
0x11f8   : > { %3900 = vadd.xlane.f32.xlu0 %v3886_v55  ;;  %v3887_v56 = vmul.f32 %v7214_v35, %v7214_v35 }
0x11fa   : > { %3902 = vadd.xlane.f32.xlu1 %v3887_v56 }
0x1279   : > { %v3889_v41 = vpop.xlane.xlu0 %3888 }
0x127a   : > { %v3904_v42 = vmul.f32 0.0078125, %v3889_v41  ;;  %v6051_v41 = vld [vmem:[%s7524_s12 + $0x88] sm:$0xff]  }
0x127b   : > { %v3891_v58 = vpop.xlane.xlu1 %3890 }
0x127c   : > { %v3912_v36 = vadd.f32 1e-05, %v3904_v42  ;;  %v3905_v50 = vmul.f32 0.0078125, %v3891_v58  ;;  %v6052_v42 = vld [vmem:[%s7524_s12 + $0x50] sm:$0xff]  }
0x127d   : > { %v3893_v51 = vpop.xlane.xlu0 %3892 }
0x127e   : > { %6220 = vrsqrt.f32 %v3912_v36  ;;  %v3913_v38 = vadd.f32 1e-05, %v3905_v50  ;;  %v3906_v63 = vmul.f32 0.0078125, %v3893_v51  ;;  %v6053_v51 = vld [vmem:[%s7524_s12 + $0x10] sm:$0xff]  }
0x127f   : > { %v3895_v49 = vpop.xlane.xlu1 %3894 }
0x1280   : > { %6222 = vrsqrt.f32 %v3913_v38  ;;  %v3914_v52 = vadd.f32 1e-05, %v3906_v63  ;;  %v3907_v60 = vmul.f32 0.0078125, %v3895_v49  ;;  %v6054_v38 = vld [vmem:[%s7524_s12 + $0xd0] sm:$0xff]   ;;  %v6056_v49 = vld [vmem:[%s7524_s12 + $0x58] sm:$0xff]  }
0x1281   : > { %v3897_v54 = vpop.xlane.xlu0 %3896 }
0x1282   : > { %6224 = vrsqrt.f32 %v3914_v52  ;;  %v3915_v21 = vadd.f32 1e-05, %v3907_v60  ;;  %v3908_v22 = vmul.f32 0.0078125, %v3897_v54  ;;  %v6058_v60 = vld [vmem:[%s7524_s12 + $0xd8] sm:$0xff]  }
0x1283   : > { %v3899_v23 = vpop.xlane.xlu1 %3898 }
0x1284   : > { %6226 = vrsqrt.f32 %v3915_v21  ;;  %v3909_v32 = vmul.f32 0.0078125, %v3899_v23  ;;  %v3916_v30 = vadd.f32 1e-05, %v3908_v22  ;;  %v6057_v23 = vld [vmem:[%s7524_s12 + $0x18] sm:$0xff]  }
0x1285   : > { %v3901_v55 = vpop.xlane.xlu0 %3900 }
0x1286   : > { %v3917_v31 = vadd.f32 1e-05, %v3909_v32  ;;  %v3910_v17 = vmul.f32 0.0078125, %v3901_v55  ;;  %v6059_v32 = vld [vmem:[%s7524_s12 + $0x98] sm:$0xff]  }
0x1287   : > { %v3903_v56 = vpop.xlane.xlu1 %3902 }
0x1288   : > { %v6221_v53 = vpop.eup %6220  ;;  %6228 = vrsqrt.f32 %v3917_v31  ;;  %v3911_v20 = vmul.f32 0.0078125, %v3903_v56  ;;  %v3918_v40 = vadd.f32 1e-05, %v3910_v17  ;;  %v6066_v17 = vld [vmem:[%s7524_s12 + $0xe8] sm:$0xff]  }
0x1289   : > { %v3928_v29 = vmul.f32 %v6221_v53, %v7181_v1  ;;  %6230 = vrsqrt.f32 %v3916_v30  ;;  %v6060_v30 = vld [vmem:[%s7524_s12 + $0x60] sm:$0xff]  }
0x128a   : > { %v6223_v27 = vpop.eup %6222  ;;  %v3919_v39 = vadd.f32 1e-05, %v3911_v20  ;;  %v6061_v53 = vld [vmem:[%s7524_s12 + $0x20] sm:$0xff]  }
0x128b   : > { %v3942_v44 = vmul.f32 %v7303_v15, %v3928_v29  ;;  %v3929_v43 = vmul.f32 %v6223_v27, %v7184_v16  ;;  %v6062_v20 = vld [vmem:[%s7524_s12 + $0xe0] sm:$0xff]  }
0x128c   : > { %v6225_v59 = vpop.eup %6224  ;;  %6232 = vrsqrt.f32 %v3919_v39  ;;  %v6063_v29 = vld [vmem:[%s7524_s12 + $0xa0] sm:$0xff]   ;;  %v6068_v39 = vld [vmem:[%s7524_s12 + $0x70] sm:$0xff]  }
0x128d   : > { %v3943_v26 = vmul.f32 %v7303_v15, %v3929_v43  ;;  %v3956_v1 = vadd.f32 %v7311_v2, %v3942_v44  ;;  %v3930_v8 = vmul.f32 %v6225_v59, %v7189_v47  ;;  %6234 = vrsqrt.f32 %v3918_v40  ;;  %v6048_v47 = vld [vmem:[%s7524_s12 + $0x48] sm:$0xff]   ;;  %v6072_v40 = vld [vmem:[%s7524_s12 + $0x78] sm:$0xff]  }
0x128e   : > { %v6227_v46 = vpop.eup %6226  ;;  %v6065_v43 = vld [vmem:[%s7524_s12 + $0x28] sm:$0xff]  }
0x128f   : > { %v3957_v3 = vadd.f32 %v7311_v2, %v3943_v26  ;;  %v3931_v9 = vmul.f32 %v6227_v46, %v7194_v62  ;;  %v3944_v62 = vmul.f32 %v7303_v15, %v3930_v8  ;;  %v6070_v26 = vld [vmem:[%s7524_s12 + $0xf0] sm:$0xff]   ;;  %v6075_v8 = vld [vmem:[%s7524_s12 + $0xb8] sm:$0xff]  }
0x1290   : > { %v6071_v46 = vld [vmem:[%s7524_s12 + $0xb0] sm:$0xff]  }
0x1291   : > { %v3964_v16 = vpack.c.bf16 %v3957_v3, %v3956_v1  ;;  %v3945_v10 = vmul.f32 %v7303_v15, %v3931_v9  ;;  %v3958_v58 = vadd.f32 %v7311_v2, %v3944_v62  ;;  %v6074_v1 = vld [vmem:[%s7524_s12 + $0xf8] sm:$0xff]   ;;  %v3971_v9 = vsub.s32 0, %v6558_v37 }
0x1292   : > { %v6229_v18 = vpop.eup %6228  ;;  %v6073_v3 = vld [vmem:[%s7524_s12 + $0x38] sm:$0xff]  }
0x1293   : > { %4182 = vmatmul.mubr.bf16.vlgmr.msra.gmra.mrb[96].mxu1 %v3964_v16  ;;  %4255 = vmatmul.mubr.bf16.vlgmr.msra.gmra.mrb[72].mxu0 %v3964_v16  ;;  %v6231_v61 = vpop.eup %6230  ;;  %v3959_v34 = vadd.f32 %v7311_v2, %v3945_v10  ;;  %v3933_v0 = vmul.f32 %v6229_v18, %v7204_v24  ;;  %v3979_v16 = vsub.s32 2, %v6558_v37  ;;  %v722_v10 = vld [vmem:[%s7523_s11] sm:$0xf]  ;;  %v3983_v18 = vsub.s32 3, %v6558_v37 }
0x1294   : > { %4191 = vmatprep.mubr.bf16.mxu1 %v6244_v25  ;;  %4264 = vmatprep.mubr.bf16.mxu0 %v6244_v25  ;;  %v3932_v36 = vmul.f32 %v6231_v61, %v7199_v13  ;;  %v6055_v13 = vld [vmem:[%s7524_s12 + $0x90] sm:$0xff]  }
0x1295   : > { %5300 = vmatpush3.bf16.msra.mxu1 %v6045_v11  ;;  %5340 = vmatpush3.bf16.msra.mxu0 %v6047_v12  ;;  %v3965_v24 = vpack.c.bf16 %v3959_v34, %v3958_v58  ;;  %v3947_v50 = vmul.f32 %v7303_v15, %v3933_v0  ;;  %v3975_v11 = vsub.s32 1, %v6558_v37  ;;  %v7437_v12 = vrot.slane %v722_v10, %v3971_v9 }
0x1296   : > { %5301 = vmatprep.subr.bf16.mxu1 %v6048_v47  ;;  %5341 = vmatprep.subr.bf16.mxu0 %v6050_v33  ;;  %v6233_v63 = vpop.eup %6232  ;;  %v3946_v52 = vmul.f32 %v7303_v15, %v3932_v36  ;;  %v7439_v47 = vrot.slane %v722_v10, %v3979_v16  ;;  %v7443_v33 = vrot.slane %v722_v10, %v3983_v18 }
0x1297   : > { %v6235_v54 = vpop.eup %6234  ;;  %v3961_v21 = vadd.f32 %v7311_v2, %v3947_v50  ;;  %v3935_v22 = vmul.f32 %v6233_v63, %v7214_v35  ;;  %v7441_v62 = vrot.slane %v722_v10, %v3975_v11 }
0x1298   : > { %v3960_v31 = vadd.f32 %v7311_v2, %v3946_v52  ;;  %v3934_v35 = vmul.f32 %v6235_v54, %v7209_v28  ;;  %v6064_v28 = vld [vmem:[%s7524_s12 + $0x68] sm:$0xff]  }
0x1299   : > { %5302 = vmatpush3.bf16.msra.mxu1 %v6049_v57  ;;  %5342 = vmatpush3.bf16.msra.mxu0 %v6051_v41  ;;  %v3949_v56 = vmul.f32 %v7303_v15, %v3935_v22 }
0x129a   : > { %5303 = vmatprep.subr.bf16.mxu1 %v6052_v42  ;;  %5343 = vmatprep.subr.bf16.mxu0 %v6054_v38  ;;  %v3966_v55 = vpack.c.bf16 %v3961_v21, %v3960_v31  ;;  %v3948_v27 = vmul.f32 %v7303_v15, %v3934_v35 }
0x129b   : > { %4192 = vmatmul.mubr.bf16.gmra.mrb[100].mxu1 %v3965_v24  ;;  %4265 = vmatmul.mubr.bf16.gmra.mrb[76].mxu0 %v3965_v24  ;;  %v3963_v44 = vadd.f32 %v7311_v2, %v3949_v56 }
0x129c   : > { %4201 = vmatprep.mubr.bf16.mxu1 %v6244_v25  ;;  %4274 = vmatprep.mubr.bf16.mxu0 %v6244_v25  ;;  %v3962_v15 = vadd.f32 %v7311_v2, %v3948_v27  ;;  %v6069_v2 = vld [vmem:[%s7524_s12 + $0x30] sm:$0xff]  }
0x129d   : > { %5304 = vmatpush3.bf16.msra.mxu1 %v6053_v51  ;;  %5344 = vmatpush3.bf16.msra.mxu0 %v6055_v13 }
0x129e   : > { %5305 = vmatprep.subr.bf16.mxu1 %v6056_v49  ;;  %5345 = vmatprep.subr.bf16.mxu0 %v6058_v60  ;;  %v3967_v59 = vpack.c.bf16 %v3963_v44, %v3962_v15 }
0x12a1   : > { %5306 = vmatpush3.bf16.msra.mxu1 %v6057_v23  ;;  %5346 = vmatpush3.bf16.msra.mxu0 %v6059_v32 }
0x12a2   : > { %5307 = vmatprep.subr.bf16.mxu1 %v6060_v30  ;;  %5347 = vmatprep.subr.bf16.mxu0 %v6062_v20 }
0x12a3   : > { %4202 = vmatmul.mubr.bf16.gmra.mrb[104].mxu1 %v3966_v55  ;;  %4275 = vmatmul.mubr.bf16.gmra.mrb[80].mxu0 %v3966_v55 }
0x12a4   : > { %4211 = vmatprep.mubr.bf16.mxu1 %v6244_v25  ;;  %4284 = vmatprep.mubr.bf16.mxu0 %v6244_v25  ;;  %v6067_v25 = vld [vmem:[%s7524_s12 + $0xa8] sm:$0xff]  }
0x12a5   : > { %5308 = vmatpush3.bf16.msra.mxu1 %v6061_v53  ;;  %5348 = vmatpush3.bf16.msra.mxu0 %v6063_v29 }
0x12a6   : > { %5309 = vmatprep.subr.bf16.mxu1 %v6064_v28  ;;  %5349 = vmatprep.subr.bf16.mxu0 %v6066_v17 }
0x12a9   : > { %5310 = vmatpush3.bf16.msra.mxu1 %v6065_v43  ;;  %5350 = vmatpush3.bf16.msra.mxu0 %v6067_v25 }
0x12aa   : > { %5311 = vmatprep.subr.bf16.mxu1 %v6068_v39  ;;  %5351 = vmatprep.subr.bf16.mxu0 %v6070_v26 }
0x12ab   : > { %4212 = vmatmul.mubr.bf16.gmra.mrb[108].mxu1 %v3967_v59  ;;  %4285 = vmatmul.mubr.bf16.gmra.mrb[84].mxu0 %v3967_v59 }
0x12ad   : > { %5312 = vmatpush3.bf16.msra.mxu1 %v6069_v2  ;;  %5352 = vmatpush3.bf16.msra.mxu0 %v6071_v46 }
0x12ae   : > { %5313 = vmatprep.subr.bf16.mxu1 %v6072_v40  ;;  %5353 = vmatprep.subr.bf16.mxu0 %v6074_v1 }
0x12b1   : > { %5314 = vmatpush3.bf16.msra.mxu1 %v6073_v3  ;;  %5354 = vmatpush3.bf16.msra.mxu0 %v6075_v8 }
0x1366   : > { %v4183_v61 = vpop.f32.mrb[96].mxu1  ;;  %v4256_v34 = vpop.f32.mrb[72].mxu0 }
0x1367   : > { %v4184_v0 = vadd.f32 %v4183_v61, %v7437_v12  ;;  %v4257_v57 = vadd.f32 %v4256_v34, %v7439_v47  ;;  %v4185_v41 = vpop.f32.mrb[97].mxu1  ;;  %v4258_v42 = vpop.f32.mrb[73].mxu0 }
0x1368   : > { %v4186_v58 = vadd.f32 %v4185_v41, %v7441_v62  ;;  %v4259_v37 = vadd.f32 %v4258_v42, %v7443_v33  ;;  %v4187_v36 = vpop.f32.mrb[98].mxu1  ;;  %v4260_v24 = vpop.f32.mrb[74].mxu0 }
0x1369   : > { %v4188_v50 = vadd.f32 %v4187_v36, %v7437_v12  ;;  %v4261_v51 = vadd.f32 %v4260_v24, %v7439_v47  ;;  %v4189_v38 = vpop.f32.mrb[99].mxu1  ;;  %v4262_v63 = vpop.f32.mrb[75].mxu0  ;;  %v4295_v52 = vmax.f32 %v4184_v0, 0.0  ;;  %v4297_v60 = vmax.f32 %v4257_v57, 0.0 }
0x136a   : > { %v4190_v13 = vadd.f32 %v4189_v38, %v7441_v62  ;;  %v4263_v49 = vadd.f32 %v4262_v63, %v7443_v33  ;;  %v4296_v22 = vmax.f32 %v4186_v58, 0.0  ;;  %v4298_v23 = vmax.f32 %v4259_v37, 0.0 }
0x136b   : > { %v4299_v54 = vmax.f32 %v4188_v50, 0.0  ;;  %v4301_v21 = vmax.f32 %v4261_v51, 0.0 }
0x136c   : > { %v4300_v32 = vmax.f32 %v4190_v13, 0.0  ;;  %v4302_v30 = vmax.f32 %v4263_v49, 0.0 }
0x136d   : > { %v4327_v31 = vpack.c.bf16 %v4299_v54, %v4295_v52  ;;  %v4329_v35 = vpack.c.bf16 %v4301_v21, %v4297_v60 }
0x136e   : > { %v4328_v55 = vpack.c.bf16 %v4300_v32, %v4296_v22  ;;  %v4330_v56 = vpack.c.bf16 %v4302_v30, %v4298_v23  ;;  %v4193_v53 = vpop.f32.mrb[100].mxu1  ;;  %v4266_v20 = vpop.f32.mrb[76].mxu0 }
0x136f   : > { %v4194_v29 = vadd.f32 %v4193_v53, %v7437_v12  ;;  %v4267_v28 = vadd.f32 %v4266_v20, %v7439_v47  ;;  %v4195_v27 = vpop.f32.mrb[101].mxu1  ;;  %v4268_v17 = vpop.f32.mrb[77].mxu0 }
0x1370   : > { %v4196_v44 = vadd.f32 %v4195_v27, %v7441_v62  ;;  %v4269_v43 = vadd.f32 %v4268_v17, %v7443_v33  ;;  %v4197_v15 = vpop.f32.mrb[102].mxu1  ;;  %v4270_v59 = vpop.f32.mrb[78].mxu0  ;;  %4573 = vmatprep.mubr.bf16.mxu1 %v4328_v55  ;;  %4638 = vmatprep.mubr.bf16.mxu0 %v4330_v56 }
0x1371   : > { %v4198_v25 = vadd.f32 %v4197_v15, %v7437_v12  ;;  %v4271_v39 = vadd.f32 %v4270_v59, %v7439_v47  ;;  %v4199_v26 = vpop.f32.mrb[103].mxu1  ;;  %v4272_v2 = vpop.f32.mrb[79].mxu0  ;;  %4574 = vmatmul.mubr.bf16.vlgmr.msra.gmra.mrb[112].mxu1 %v4327_v31  ;;  %4639 = vmatmul.mubr.bf16.vlgmr.msra.gmra.mrb[88].mxu0 %v4329_v35  ;;  %v4303_v1 = vmax.f32 %v4194_v29, 0.0  ;;  %v4305_v3 = vmax.f32 %v4267_v28, 0.0 }
0x1372   : > { %v4200_v46 = vadd.f32 %v4199_v26, %v7441_v62  ;;  %v4273_v40 = vadd.f32 %v4272_v2, %v7443_v33  ;;  %v4304_v16 = vmax.f32 %v4196_v44, 0.0  ;;  %v4306_v10 = vmax.f32 %v4269_v43, 0.0 }
0x1373   : > { %v4307_v8 = vmax.f32 %v4198_v25, 0.0  ;;  %v4309_v9 = vmax.f32 %v4271_v39, 0.0 }
0x1374   : > { %v4308_v11 = vmax.f32 %v4200_v46, 0.0  ;;  %v4310_v18 = vmax.f32 %v4273_v40, 0.0 }
0x1375   : > { %v4331_v61 = vpack.c.bf16 %v4307_v8, %v4303_v1  ;;  %v4333_v34 = vpack.c.bf16 %v4309_v9, %v4305_v3 }
0x1376   : > { %v4332_v0 = vpack.c.bf16 %v4308_v11, %v4304_v16  ;;  %v4334_v57 = vpack.c.bf16 %v4310_v18, %v4306_v10  ;;  %v4203_v41 = vpop.f32.mrb[104].mxu1  ;;  %v4276_v42 = vpop.f32.mrb[80].mxu0 }
0x1377   : > { %v4204_v58 = vadd.f32 %v4203_v41, %v7437_v12  ;;  %v4277_v37 = vadd.f32 %v4276_v42, %v7439_v47  ;;  %v4205_v36 = vpop.f32.mrb[105].mxu1  ;;  %v4278_v24 = vpop.f32.mrb[81].mxu0 }
0x1378   : > { %v4206_v50 = vadd.f32 %v4205_v36, %v7441_v62  ;;  %v4279_v51 = vadd.f32 %v4278_v24, %v7443_v33  ;;  %v4207_v38 = vpop.f32.mrb[106].mxu1  ;;  %v4280_v63 = vpop.f32.mrb[82].mxu0  ;;  %4581 = vmatprep.mubr.bf16.mxu1 %v4332_v0  ;;  %4646 = vmatprep.mubr.bf16.mxu0 %v4334_v57 }
0x1379   : > { %v4208_v13 = vadd.f32 %v4207_v38, %v7437_v12  ;;  %v4281_v49 = vadd.f32 %v4280_v63, %v7439_v47  ;;  %v4209_v52 = vpop.f32.mrb[107].mxu1  ;;  %v4282_v60 = vpop.f32.mrb[83].mxu0  ;;  %4582 = vmatmul.mubr.bf16.gmra.mrb[116].mxu1 %v4331_v61  ;;  %4647 = vmatmul.mubr.bf16.gmra.mrb[92].mxu0 %v4333_v34  ;;  %v4311_v22 = vmax.f32 %v4204_v58, 0.0  ;;  %v4313_v23 = vmax.f32 %v4277_v37, 0.0 }
0x137a   : > { %v4210_v54 = vadd.f32 %v4209_v52, %v7441_v62  ;;  %v4283_v21 = vadd.f32 %v4282_v60, %v7443_v33  ;;  %v4312_v31 = vmax.f32 %v4206_v50, 0.0  ;;  %v4314_v35 = vmax.f32 %v4279_v51, 0.0 }
0x137b   : > { %v4315_v32 = vmax.f32 %v4208_v13, 0.0  ;;  %v4317_v30 = vmax.f32 %v4281_v49, 0.0 }
0x137c   : > { %v4316_v55 = vmax.f32 %v4210_v54, 0.0  ;;  %v4318_v56 = vmax.f32 %v4283_v21, 0.0 }
0x137d   : > { %v4335_v53 = vpack.c.bf16 %v4315_v32, %v4311_v22  ;;  %v4337_v20 = vpack.c.bf16 %v4317_v30, %v4313_v23 }
0x137e   : > { %v4336_v29 = vpack.c.bf16 %v4316_v55, %v4312_v31  ;;  %v4338_v28 = vpack.c.bf16 %v4318_v56, %v4314_v35  ;;  %v4213_v27 = vpop.f32.mrb[108].mxu1  ;;  %v4286_v17 = vpop.f32.mrb[84].mxu0 }
0x137f   : > { %v4214_v44 = vadd.f32 %v4213_v27, %v7437_v12  ;;  %v4287_v43 = vadd.f32 %v4286_v17, %v7439_v47  ;;  %v4215_v15 = vpop.f32.mrb[109].mxu1  ;;  %v4288_v59 = vpop.f32.mrb[85].mxu0 }
0x1380   : > { %v4216_v25 = vadd.f32 %v4215_v15, %v7441_v62  ;;  %v4289_v39 = vadd.f32 %v4288_v59, %v7443_v33  ;;  %v4217_v26 = vpop.f32.mrb[110].mxu1  ;;  %v4290_v2 = vpop.f32.mrb[86].mxu0  ;;  %4589 = vmatprep.mubr.bf16.mxu1 %v4336_v29  ;;  %4654 = vmatprep.mubr.bf16.mxu0 %v4338_v28 }
0x1381   : > { %v4218_v46 = vadd.f32 %v4217_v26, %v7437_v12  ;;  %v4291_v40 = vadd.f32 %v4290_v2, %v7439_v47  ;;  %v4219_v1 = vpop.f32.mrb[111].mxu1  ;;  %v4292_v3 = vpop.f32.mrb[87].mxu0  ;;  %4590 = vmatmul.mubr.bf16.gmra.mrb[120].mxu1 %v4335_v53  ;;  %4655 = vmatmul.mubr.bf16.gmra.mrb[96].mxu0 %v4337_v20  ;;  %v4319_v16 = vmax.f32 %v4214_v44, 0.0  ;;  %v4321_v10 = vmax.f32 %v4287_v43, 0.0 }
0x1382   : > { %v4220_v8 = vadd.f32 %v4219_v1, %v7441_v62  ;;  %v4293_v9 = vadd.f32 %v4292_v3, %v7443_v33  ;;  %v4320_v61 = vmax.f32 %v4216_v25, 0.0  ;;  %v4322_v34 = vmax.f32 %v4289_v39, 0.0  ;;  %v7480_v33 = vld [vmem:[%s7525_s13] ss:$0 sm:$0xff] }
0x1383   : > { %v4323_v11 = vmax.f32 %v4218_v46, 0.0  ;;  %v4325_v18 = vmax.f32 %v4291_v40, 0.0 }
0x1384   : > { %v4324_v0 = vmax.f32 %v4220_v8, 0.0  ;;  %v4326_v57 = vmax.f32 %v4293_v9, 0.0 }
0x1385   : > { %v4339_v41 = vpack.c.bf16 %v4323_v11, %v4319_v16  ;;  %v4341_v12 = vpack.c.bf16 %v4325_v18, %v4321_v10 }
0x1386   : > { %v4340_v42 = vpack.c.bf16 %v4324_v0, %v4320_v61  ;;  %v4342_v47 = vpack.c.bf16 %v4326_v57, %v4322_v34 }
0x1388   : > { %4597 = vmatprep.mubr.bf16.mxu1 %v4340_v42  ;;  %4662 = vmatprep.mubr.bf16.mxu0 %v4342_v47 }
0x1389   : > { %4598 = vmatmul.mubr.bf16.gmra.mrb[124].mxu1 %v4339_v41  ;;  %4663 = vmatmul.mubr.bf16.gmra.mrb[100].mxu0 %v4341_v12 }
0x1444   : > { %v5315_v58 = vpop.f32.mrb[112].mxu1  ;;  %v5355_v62 = vpop.f32.mrb[88].mxu0 }
0x1445   : > { %v5316_v37 = vpop.f32.mrb[113].mxu1  ;;  %v5356_v36 = vpop.f32.mrb[89].mxu0 }
0x1446   : > { %v5317_v24 = vadd.f32 %v5316_v37, %v5315_v58  ;;  %v5357_v50 = vadd.f32 %v5356_v36, %v5355_v62  ;;  %v5318_v51 = vpop.f32.mrb[114].mxu1  ;;  %v5358_v38 = vpop.f32.mrb[90].mxu0 }
0x1447   : > { %v5319_v63 = vpop.f32.mrb[115].mxu1  ;;  %v5359_v13 = vpop.f32.mrb[91].mxu0 }
0x1448   : > { %v4576_v49 = vadd.f32 %v5317_v24, %v7480_v33  ;;  %v5320_v52 = vadd.f32 %v5319_v63, %v5318_v51  ;;  %v5360_v60 = vadd.f32 %v5359_v13, %v5358_v38 }
0x144a   : > { %v4641_v54 = vadd.f32 %v5357_v50, %v4576_v49  ;;  %v4579_v21 = vadd.f32 %v5320_v52, %v7480_v33 }
0x144c   : > { %v4644_v22 = vadd.f32 %v5360_v60, %v4579_v21  ;;  %v5321_v23 = vpop.f32.mrb[116].mxu1  ;;  %v5361_v32 = vpop.f32.mrb[92].mxu0  ;;  %v4671_v35 = vadd.f32 %v4641_v54, %v7125_v14 }
0x144d   : > { %v5322_v30 = vpop.f32.mrb[117].mxu1  ;;  %v5362_v31 = vpop.f32.mrb[93].mxu0 }
0x144e   : > { %v4672_v55 = vadd.f32 %v4644_v22, %v7128_v48  ;;  %v5323_v56 = vadd.f32 %v5322_v30, %v5321_v23  ;;  %v5363_v53 = vadd.f32 %v5362_v31, %v5361_v32  ;;  %v5324_v20 = vpop.f32.mrb[118].mxu1  ;;  %v5364_v29 = vpop.f32.mrb[94].mxu0 }
0x144f   : > { %v5325_v28 = vpop.f32.mrb[119].mxu1  ;;  %v5365_v27 = vpop.f32.mrb[95].mxu0 }
0x1450   : > { %v5044_v17 = vpack.c.bf16 %v4672_v55, %v4671_v35  ;;  %v4584_v44 = vadd.f32 %v5323_v56, %v7480_v33  ;;  %v5326_v43 = vadd.f32 %v5325_v28, %v5324_v20  ;;  %v5366_v14 = vadd.f32 %v5365_v27, %v5364_v29 }
0x1452   : > { %5045 = vst [vmem:[%s7491_s20] sm:$0xff] %v5044_v17   ;;  %v4649_v48 = vadd.f32 %v5363_v53, %v4584_v44  ;;  %v4587_v15 = vadd.f32 %v5326_v43, %v7480_v33 }
0x1454   : > { %v4652_v59 = vadd.f32 %v5366_v14, %v4587_v15  ;;  %v5327_v25 = vpop.f32.mrb[120].mxu1  ;;  %v5367_v39 = vpop.f32.mrb[96].mxu0  ;;  %v4673_v46 = vadd.f32 %v4649_v48, %v7132_v19 }
0x1455   : > { %v5328_v26 = vpop.f32.mrb[121].mxu1  ;;  %v5368_v2 = vpop.f32.mrb[97].mxu0 }
0x1456   : > { %v4674_v40 = vadd.f32 %v4652_v59, %v7136_v45  ;;  %v5329_v1 = vadd.f32 %v5328_v26, %v5327_v25  ;;  %v5369_v3 = vadd.f32 %v5368_v2, %v5367_v39  ;;  %v5330_v8 = vpop.f32.mrb[122].mxu1  ;;  %v5370_v9 = vpop.f32.mrb[98].mxu0 }
0x1457   : > { %v5331_v16 = vpop.f32.mrb[123].mxu1  ;;  %v5371_v10 = vpop.f32.mrb[99].mxu0 }
0x1458   : > { %v5049_v11 = vpack.c.bf16 %v4674_v40, %v4673_v46  ;;  %v4592_v18 = vadd.f32 %v5329_v1, %v7480_v33  ;;  %v5332_v61 = vadd.f32 %v5331_v16, %v5330_v8  ;;  %v5372_v34 = vadd.f32 %v5371_v10, %v5370_v9 }
0x145a   : > { %5064 = vst [vmem:[%s7491_s20 + $0x8] sm:$0xff] %v5049_v11   ;;  %v4657_v0 = vadd.f32 %v5369_v3, %v4592_v18  ;;  %v4595_v57 = vadd.f32 %v5332_v61, %v7480_v33 }
0x145c   : > { %v4660_v41 = vadd.f32 %v5372_v34, %v4595_v57  ;;  %v5333_v12 = vpop.f32.mrb[124].mxu1  ;;  %v5373_v19 = vpop.f32.mrb[100].mxu0  ;;  %v4675_v47 = vadd.f32 %v4657_v0, %v7140_v5 }
0x145d   : > { %v5334_v45 = vpop.f32.mrb[125].mxu1  ;;  %v5374_v42 = vpop.f32.mrb[101].mxu0 }
0x145e   : > { %v4676_v58 = vadd.f32 %v4660_v41, %v7144_v4  ;;  %v5335_v62 = vadd.f32 %v5334_v45, %v5333_v12  ;;  %v5375_v37 = vadd.f32 %v5374_v42, %v5373_v19  ;;  %v5336_v36 = vpop.f32.mrb[126].mxu1  ;;  %v5376_v24 = vpop.f32.mrb[102].mxu0 }
0x145f   : > { %v5337_v50 = vpop.f32.mrb[127].mxu1  ;;  %v5377_v51 = vpop.f32.mrb[103].mxu0 }
0x1460   : > { %v5054_v38 = vpack.c.bf16 %v4676_v58, %v4675_v47  ;;  %v4600_v63 = vadd.f32 %v5335_v62, %v7480_v33  ;;  %v5338_v13 = vadd.f32 %v5337_v50, %v5336_v36  ;;  %v5378_v49 = vadd.f32 %v5377_v51, %v5376_v24 }
0x1462   : > { %5065 = vst [vmem:[%s7491_s20 + $0x10] sm:$0xff] %v5054_v38   ;;  %v4665_v52 = vadd.f32 %v5375_v37, %v4600_v63  ;;  %v4603_v60 = vadd.f32 %v5338_v13, %v7480_v33 }
0x1464   : > { %v4668_v54 = vadd.f32 %v5378_v49, %v4603_v60  ;;  %v4677_v5 = vadd.f32 %v4665_v52, %v7148_v6 }
0x1466   : > { %v4678_v4 = vadd.f32 %v4668_v54, %v7152_v7 }
0x1468   : > { %v5059_v21 = vpack.c.bf16 %v4678_v4, %v4677_v5 }
0x146a   : > { %5066 = vst [vmem:[%s7491_s20 + $0x18] sm:$0xff] %v5059_v21  }
0x146b PF: > { %s24_s29 = sadd.s32 1, %s6242_s29  }
0x146c   : > { %p21_p4 = scmp.ge.s32.totalorder %s24_s29, 6  }
0x146e   :  { %23 = sbr.rel (!%p21_p4) target bundleno = 1 (0x1), region = 106 }

</bundles_post_ra>
